<compile_context>
chip_gen: v5e
topology: v5e:2x2
jax: 0.10.0
libtpu: 0.0.40
codegen_flags: <defaults>
</compile_context>

<pallas_src>
import math

import jax
import jax.numpy as jnp
from jax import lax
from jax.experimental import pallas as pl
from jax.experimental.pallas import tpu as pltpu
from jax.scipy.special import gammaln

N_HEADS = 8
D_K = 64
MAX_CLAMP = 100.0
MIN_CLAMP = 0.001
SUPPORT = (-0.1, 1.1)

# Set to jnp.bfloat16 on v6e/v7x for several-x MXU throughput (accumulation
# stays f32 via preferred_element_type); default f32 to preserve reference
# numerics of the thresholded eval output.
MATMUL_DTYPE = jnp.float32


def _mm(a, b):
    """a @ b with f32 accumulation (operands optionally downcast for the MXU)."""
    return jnp.dot(a.astype(MATMUL_DTYPE), b.astype(MATMUL_DTYPE),
                   preferred_element_type=jnp.float32)


def _mm_nt(a, b):
    """a @ b.T (contract last dim of both) without an explicit transpose."""
    return lax.dot_general(a.astype(MATMUL_DTYPE), b.astype(MATMUL_DTYPE),
                           (((1,), (1,)), ((), ())),
                           preferred_element_type=jnp.float32)


def _kuma_gram_kernel(
    q_ref, k_ref, v_ref, mq_ref, mk_ref,
    wqkv_ref, bqkv_ref,
    a_sw_ref, a_sb_ref, b_sw_ref, b_sb_ref,
    ln_a_g_ref, ln_a_b_ref, ln_b_g_ref, ln_b_b_ref,
    a_out_ref, b_out_ref,
):
    """One batch element: fused QKV projection (both Kuma branches), 8-head
    scaled-dot-product attention, score Linear + residual, LayerNorm, and the
    gram matrix c @ c^T.  Writes the raw gram matrices for branches a and b."""
    f32 = jnp.float32
    S = q_ref.shape[1]
    F = wqkv_ref.shape[1] // 2
    H = N_HEADS
    DK = F // H
    # ScaledDotProductAttention(d_k=n_heads) -> scale by 1/sqrt(n_heads).
    scale = 1.0 / math.sqrt(float(H))

    q = q_ref[0].astype(f32)                                   # [S, D]
    k = k_ref[0].astype(f32)
    v = v_ref[0].astype(f32)

    # --- one fused projection for {Q, K, V} x {branch a, branch b} ---------
    # (6 small matmuls -> one [3S, D] @ [D, 2F] matmul)
    x = jnp.concatenate([q, k, v], axis=0)                     # [3S, D]
    proj = _mm(x, wqkv_ref[...]) + bqkv_ref[...]               # [3S, 2F]

    # padding mask, hoisted out of the head loop: valid iff query AND key valid
    mq = mq_ref[0] > 0.5                                       # [S, 1]
    mk = mk_ref[0] > 0.5                                       # [1, S]
    valid = jnp.logical_and(mq, mk)                            # [S, S]

    def attend(col0):
        # fold the 1/sqrt(n_heads) scale into q once (not per [S,S] score tile)
        qs = proj[0:S, col0:col0 + F] * scale                  # [S, F]
        ks = proj[S:2 * S, col0:col0 + F]
        vs = proj[2 * S:3 * S, col0:col0 + F]
        ctxs = []
        # Static per-head loop: the d_k=64 contraction is inherent to the
        # module; per-head contexts stay in registers and are concatenated so
        # only one full-width (512-lane) value is materialised.
        for h in range(H):
            sl = slice(h * DK, (h + 1) * DK)
            s = _mm_nt(qs[:, sl], ks[:, sl])                   # [S, S]
            s = jnp.where(valid, s, 1e-9)                      # fill 1e-9 (as in ref)
            m = jnp.max(s, axis=-1, keepdims=True)
            e = jnp.exp(s - m)
            denom = jnp.sum(e, axis=-1, keepdims=True)
            p = e * pl.reciprocal(denom, approx=True)          # EUP, not VPU divide
            ctxs.append(_mm(p, vs[:, sl]))                     # [S, DK]
        return jnp.concatenate(ctxs, axis=-1)                  # [S, F]

    def post(ctx, sw, sb, g, beta):
        # score Linear + residual
        c = _mm(ctx, sw) + sb + ctx                            # [S, F]
        # LayerNorm (eps=1e-5, biased variance -- torch default)
        mu = jnp.mean(c, axis=-1, keepdims=True)
        var = jnp.mean(jnp.square(c - mu), axis=-1, keepdims=True)
        c = (c - mu) * lax.rsqrt(var + 1e-5) * g + beta
        # gram matrix c @ c^T -> [S, S]
        return _mm_nt(c, c)

    a_out_ref[0] = post(attend(0), a_sw_ref[...], a_sb_ref[...],
                        ln_a_g_ref[...], ln_a_b_ref[...])
    b_out_ref[0] = post(attend(F), b_sw_ref[...], b_sb_ref[...],
                        ln_b_g_ref[...], ln_b_b_ref[...])


def kuma_self_attention(Q, K, V, mask, params):
    """Eval-mode forward of KumaSelfAttention. Returns att of shape [B, S, S]."""
    B, S, D = Q.shape
    F = N_HEADS * D_K

    # fuse both branches' projection weights/biases: [D, 2F] / [1, 2F]
    wqkv = jnp.concatenate([params['a_wq'], params['b_wq']], axis=1)
    bqkv = jnp.concatenate([params['a_bq'], params['b_bq']], axis=1)

    mask_q = mask.reshape(B, S, 1).astype(jnp.float32)   # query-side mask
    mask_k = mask.reshape(B, 1, S).astype(jnp.float32)   # key-side mask

    def full_spec(shape):
        return pl.BlockSpec(shape, lambda b: (0,) * len(shape))

    def batched_spec(shape):
        return pl.BlockSpec((1,) + shape, lambda b: (b,) + (0,) * len(shape))

    a_gram, b_gram = pl.pallas_call(
        _kuma_gram_kernel,
        out_shape=(jax.ShapeDtypeStruct((B, S, S), jnp.float32),
                   jax.ShapeDtypeStruct((B, S, S), jnp.float32)),
        grid=(B,),
        in_specs=[
            batched_spec((S, D)),        # Q
            batched_spec((S, D)),        # K
            batched_spec((S, D)),        # V
            batched_spec((S, 1)),        # mask (query side)
            batched_spec((1, S)),        # mask (key side)
            full_spec((D, 2 * F)),       # a|b projection weight
            full_spec((1, 2 * F)),       # a|b projection bias
            full_spec((F, F)),           # a_score weight
            full_spec((1, F)),           # a_score bias
            full_spec((F, F)),           # b_score weight
            full_spec((1, F)),           # b_score bias
            full_spec((1, F)),           # layer_norm_a gamma
            full_spec((1, F)),           # layer_norm_a beta
            full_spec((1, F)),           # layer_norm_b gamma
            full_spec((1, F)),           # layer_norm_b beta
        ],
        out_specs=(batched_spec((S, S)), batched_spec((S, S))),
        compiler_params=pltpu.CompilerParams(
            # one batch element per grid step; megacore chips shard the batch
            dimension_semantics=("parallel",),
            # above the 16/32 MiB scoped defaults, headroom on v7x's 64 MiB
            vmem_limit_bytes=48 * 1024 * 1024,
        ),
    )(Q, K, V, mask_q, mask_k, wqkv, bqkv,
      params['a_sw'], params['a_sb'], params['b_sw'], params['b_sb'],
      params['ln_a_g'], params['ln_a_b'], params['ln_b_g'], params['ln_b_b'])

    # --- elementwise tail: one fused XLA pass over the kernel outputs --------
    # Global standardisation needs a reduction over the WHOLE [B,S,S] tensor
    # (across the batch grid), and the HardKuma mean needs lgamma (Beta
    # function) which Mosaic cannot lower, so this stays in plain JAX glue.
    def standardize(x):
        # torch .mean()/.std(): global mean, unbiased std. No epsilon --
        # faithful to the reference (NaN only if the gram is exactly constant).
        return (x - jnp.mean(x)) / jnp.std(x, ddof=1)

    def softplus(x):
        # torch softplus: linear above threshold=20, log1p(exp(x)) below.
        return jnp.where(x > 20.0, x, jnp.log1p(jnp.exp(jnp.minimum(x, 20.0))))

    a = jnp.clip(softplus(standardize(a_gram)), MIN_CLAMP, MAX_CLAMP)
    b = jnp.clip(softplus(standardize(b_gram)), MIN_CLAMP, MAX_CLAMP)

    # HardKuma point masses at 0 and 1 (stretched-rectified Kumaraswamy),
    # numerically stable expm1 forms:
    #   P(h==0) = CDF_kuma(t0) = 1 - (1 - t0^a)^b
    #   P(h==1) = 1 - CDF_kuma(t1) = (1 - t1^a)^b
    lo, hi = SUPPORT
    t0 = (0.0 - lo) / (hi - lo)
    t1 = (1.0 - lo) / (hi - lo)
    log_1m_t0a = jnp.log(-jnp.expm1(a * math.log(t0)))   # log(1 - t0^a)
    log_1m_t1a = jnp.log(-jnp.expm1(a * math.log(t1)))   # log(1 - t1^a)
    p0 = -jnp.expm1(b * log_1m_t0a)
    p1 = jnp.exp(b * log_1m_t1a)
    pc = 1.0 - p0 - p1
    zero_one = jnp.where(p0 > p1, 0.0, 1.0)

    # HardKuma mean = stretched Kuma mean: b * Beta(1 + 1/a, b) * (hi-lo) + lo
    arg1 = 1.0 + 1.0 / a
    kuma_mean = b * jnp.exp(gammaln(arg1) + gammaln(b) - gammaln(arg1 + b))
    stretched_mean = kuma_mean * (hi - lo) + lo

    # deterministic eval path: discrete 0/1 if continuous mass < 0.5, else mean
    return jnp.where(pc < 0.5, zero_one, stretched_mean)


def init_params(key, d_model):
    """Deterministic PyTorch-Linear-style init (uniform +-1/sqrt(fan_in))."""
    F = N_HEADS * D_K

    def linear(k, fan_in, fan_out):
        kw, kb = jax.random.split(k)
        bound = 1.0 / math.sqrt(fan_in)
        w = jax.random.uniform(kw, (fan_in, fan_out), jnp.float32, -bound, bound)
        b = jax.random.uniform(kb, (1, fan_out), jnp.float32, -bound, bound)
        return w, b

    keys = jax.random.split(key, 4)
    a_wq, a_bq = linear(keys[0], d_model, F)
    b_wq, b_bq = linear(keys[1], d_model, F)
    a_sw, a_sb = linear(keys[2], F, F)
    b_sw, b_sb = linear(keys[3], F, F)
    return dict(
        a_wq=a_wq, a_bq=a_bq, b_wq=b_wq, b_bq=b_bq,
        a_sw=a_sw, a_sb=a_sb, b_sw=b_sw, b_sb=b_sb,
        ln_a_g=jnp.ones((1, F), jnp.float32),
        ln_a_b=jnp.zeros((1, F), jnp.float32),
        ln_b_g=jnp.ones((1, F), jnp.float32),
        ln_b_b=jnp.zeros((1, F), jnp.float32),
    )


if __name__ == "__main__":
    B, S, D = 2, 8, 32   # batch, seq, in_features (d_model)
    key = jax.random.PRNGKey(0)
    kq, kk, kv, kp = jax.random.split(key, 4)
    Q = jax.random.normal(kq, (B, S, D), jnp.float32)
    K = jax.random.normal(kk, (B, S, D), jnp.float32)
    V = jax.random.normal(kv, (B, S, D), jnp.float32)
    # mask: 1 = valid, 0 = padding (last two positions of batch 1 are padding)
    mask = jnp.ones((B, S), jnp.float32).at[1, 6:].set(0.0)

    params = init_params(kp, D)
    att = jax.jit(kuma_self_attention)(Q, K, V, mask, params)
    att = jax.block_until_ready(att)
    assert att.shape == (B, S, S)
    assert bool(jnp.all(jnp.isfinite(att)))
    print("KERNEL_OK")
</pallas_src>

<mosaic_0001>
module attributes {stable_mosaic.version = 11 : i64} {
  func.func @_kuma_gram_kernel(%arg0: i32, %arg1: memref<1x8x32xf32, #tpu.memory_space<vmem>>, %arg2: memref<1x8x32xf32, #tpu.memory_space<vmem>>, %arg3: memref<1x8x32xf32, #tpu.memory_space<vmem>>, %arg4: memref<1x8x1xf32, #tpu.memory_space<vmem>>, %arg5: memref<1x1x8xf32, #tpu.memory_space<vmem>>, %arg6: memref<32x1024xf32, #tpu.memory_space<vmem>>, %arg7: memref<1x1024xf32, #tpu.memory_space<vmem>>, %arg8: memref<512x512xf32, #tpu.memory_space<vmem>>, %arg9: memref<1x512xf32, #tpu.memory_space<vmem>>, %arg10: memref<512x512xf32, #tpu.memory_space<vmem>>, %arg11: memref<1x512xf32, #tpu.memory_space<vmem>>, %arg12: memref<1x512xf32, #tpu.memory_space<vmem>>, %arg13: memref<1x512xf32, #tpu.memory_space<vmem>>, %arg14: memref<1x512xf32, #tpu.memory_space<vmem>>, %arg15: memref<1x512xf32, #tpu.memory_space<vmem>>, %arg16: memref<1x8x8xf32, #tpu.memory_space<vmem>>, %arg17: memref<1x8x8xf32, #tpu.memory_space<vmem>>) attributes {dimension_semantics = [#tpu.dimension_semantics<parallel>], iteration_bounds = array<i64: 2>, scalar_prefetch = 0 : i64, scratch_operands = 0 : i64, tpu.core_type = #tpu.core_type<tc>, window_params = [{transform_indices = @transform_0, window_bounds = array<i64: 1, 8, 32>}, {transform_indices = @transform_1, window_bounds = array<i64: 1, 8, 32>}, {transform_indices = @transform_2, window_bounds = array<i64: 1, 8, 32>}, {transform_indices = @transform_3, window_bounds = array<i64: 1, 8, 1>}, {transform_indices = @transform_4, window_bounds = array<i64: 1, 1, 8>}, {pipeline_mode = #tpu.pipeline_mode<synchronous>, transform_indices = @transform_5, window_bounds = array<i64: 32, 1024>}, {pipeline_mode = #tpu.pipeline_mode<synchronous>, transform_indices = @transform_6, window_bounds = array<i64: 1, 1024>}, {pipeline_mode = #tpu.pipeline_mode<synchronous>, transform_indices = @transform_7, window_bounds = array<i64: 512, 512>}, {pipeline_mode = #tpu.pipeline_mode<synchronous>, transform_indices = @transform_8, window_bounds = array<i64: 1, 512>}, {pipeline_mode = #tpu.pipeline_mode<synchronous>, transform_indices = @transform_9, window_bounds = array<i64: 512, 512>}, {pipeline_mode = #tpu.pipeline_mode<synchronous>, transform_indices = @transform_10, window_bounds = array<i64: 1, 512>}, {pipeline_mode = #tpu.pipeline_mode<synchronous>, transform_indices = @transform_11, window_bounds = array<i64: 1, 512>}, {pipeline_mode = #tpu.pipeline_mode<synchronous>, transform_indices = @transform_12, window_bounds = array<i64: 1, 512>}, {pipeline_mode = #tpu.pipeline_mode<synchronous>, transform_indices = @transform_13, window_bounds = array<i64: 1, 512>}, {pipeline_mode = #tpu.pipeline_mode<synchronous>, transform_indices = @transform_14, window_bounds = array<i64: 1, 512>}, {transform_indices = @transform_15, window_bounds = array<i64: 1, 8, 8>}, {transform_indices = @transform_16, window_bounds = array<i64: 1, 8, 8>}]} {
    %c0 = arith.constant 0 : index
    %c0_0 = arith.constant 0 : index
    %c0_1 = arith.constant 0 : index
    %0 = vector.load %arg1[%c0, %c0_0, %c0_1] : memref<1x8x32xf32, #tpu.memory_space<vmem>>, vector<1x8x32xf32>
    %1 = vector.shape_cast %0 : vector<1x8x32xf32> to vector<8x32xf32>
    %c0_2 = arith.constant 0 : index
    %c0_3 = arith.constant 0 : index
    %c0_4 = arith.constant 0 : index
    %2 = vector.load %arg2[%c0_2, %c0_3, %c0_4] : memref<1x8x32xf32, #tpu.memory_space<vmem>>, vector<1x8x32xf32>
    %3 = vector.shape_cast %2 : vector<1x8x32xf32> to vector<8x32xf32>
    %c0_5 = arith.constant 0 : index
    %c0_6 = arith.constant 0 : index
    %c0_7 = arith.constant 0 : index
    %4 = vector.load %arg3[%c0_5, %c0_6, %c0_7] : memref<1x8x32xf32, #tpu.memory_space<vmem>>, vector<1x8x32xf32>
    %5 = vector.shape_cast %4 : vector<1x8x32xf32> to vector<8x32xf32>
    %6 = tpu.concatenate %1, %3, %5 in 0 : vector<8x32xf32>, vector<8x32xf32>, vector<8x32xf32> -> vector<24x32xf32>
    %c0_8 = arith.constant 0 : index
    %c0_9 = arith.constant 0 : index
    %7 = vector.load %arg6[%c0_8, %c0_9] : memref<32x1024xf32, #tpu.memory_space<vmem>>, vector<32x1024xf32>
    %cst = arith.constant dense<0.000000e+00> : vector<24x1024xf32>
    %8 = tpu.matmul %6, %7, %cst {dimension_numbers = #tpu.dot_dimension_numbers<[1], [0], [0], [1], [0, 0, 1, 1], [], []>} : vector<24x32xf32>, vector<32x1024xf32>, vector<24x1024xf32> -> vector<24x1024xf32>
    %c0_10 = arith.constant 0 : index
    %c0_11 = arith.constant 0 : index
    %9 = vector.load %arg7[%c0_10, %c0_11] : memref<1x1024xf32, #tpu.memory_space<vmem>>, vector<1x1024xf32>
    %10 = vector.broadcast %9 : vector<1x1024xf32> to vector<24x1024xf32>
    %11 = arith.addf %8, %10 : vector<24x1024xf32>
    %c0_12 = arith.constant 0 : index
    %c0_13 = arith.constant 0 : index
    %c0_14 = arith.constant 0 : index
    %12 = vector.load %arg4[%c0_12, %c0_13, %c0_14] : memref<1x8x1xf32, #tpu.memory_space<vmem>>, vector<1x8x1xf32>
    %13 = vector.shape_cast %12 : vector<1x8x1xf32> to vector<8x1xf32>
    %cst_15 = arith.constant 5.000000e-01 : f32
    %14 = vector.broadcast %cst_15 : f32 to vector<8x1xf32>
    %15 = arith.cmpf ogt, %13, %14 : vector<8x1xf32>
    %c0_16 = arith.constant 0 : index
    %c0_17 = arith.constant 0 : index
    %c0_18 = arith.constant 0 : index
    %16 = vector.load %arg5[%c0_16, %c0_17, %c0_18] : memref<1x1x8xf32, #tpu.memory_space<vmem>>, vector<1x1x8xf32>
    %17 = vector.shape_cast %16 : vector<1x1x8xf32> to vector<1x8xf32>
    %cst_19 = arith.constant 5.000000e-01 : f32
    %18 = vector.broadcast %cst_19 : f32 to vector<1x8xf32>
    %19 = arith.cmpf ogt, %17, %18 : vector<1x8xf32>
    %20 = vector.broadcast %15 : vector<8x1xi1> to vector<8x8xi1>
    %21 = vector.broadcast %19 : vector<1x8xi1> to vector<8x8xi1>
    %22 = arith.andi %20, %21 : vector<8x8xi1>
    %23 = vector.extract_strided_slice %11 {offsets = [0, 0], sizes = [8, 512], strides = [1, 1]} : vector<24x1024xf32> to vector<8x512xf32>
    %cst_20 = arith.constant 0.353553385 : f32
    %24 = vector.broadcast %cst_20 : f32 to vector<8x512xf32>
    %25 = arith.mulf %23, %24 : vector<8x512xf32>
    %26 = vector.extract_strided_slice %11 {offsets = [8, 0], sizes = [8, 512], strides = [1, 1]} : vector<24x1024xf32> to vector<8x512xf32>
    %27 = vector.extract_strided_slice %11 {offsets = [16, 0], sizes = [8, 512], strides = [1, 1]} : vector<24x1024xf32> to vector<8x512xf32>
    %28 = vector.extract_strided_slice %25 {offsets = [0, 0], sizes = [8, 64], strides = [1, 1]} : vector<8x512xf32> to vector<8x64xf32>
    %29 = vector.extract_strided_slice %26 {offsets = [0, 0], sizes = [8, 64], strides = [1, 1]} : vector<8x512xf32> to vector<8x64xf32>
    %cst_21 = arith.constant dense<0.000000e+00> : vector<8x8xf32>
    %30 = tpu.matmul %28, %29, %cst_21 {dimension_numbers = #tpu.dot_dimension_numbers<[1], [1], [0], [0], [0, 0, 1, 0], [], []>} : vector<8x64xf32>, vector<8x64xf32>, vector<8x8xf32> -> vector<8x8xf32>
    %cst_22 = arith.constant 9.99999971E-10 : f32
    %31 = vector.broadcast %cst_22 : f32 to vector<8x8xf32>
    %32 = arith.select %22, %30, %31 : vector<8x8xi1>, vector<8x8xf32>
    %cst_23 = arith.constant dense<0xFF800000> : vector<8xf32>
    %33 = vector.multi_reduction <maximumf>, %32, %cst_23 [1] : vector<8x8xf32> to vector<8xf32>
    %34 = vector.shape_cast %33 : vector<8xf32> to vector<8x1xf32>
    %35 = vector.broadcast %34 : vector<8x1xf32> to vector<8x8xf32>
    %36 = arith.subf %32, %35 : vector<8x8xf32>
    %37 = math.exp %36 : vector<8x8xf32>
    %cst_24 = arith.constant dense<0.000000e+00> : vector<8xf32>
    %38 = vector.multi_reduction <add>, %37, %cst_24 [1] : vector<8x8xf32> to vector<8xf32>
    %39 = vector.shape_cast %38 : vector<8xf32> to vector<8x1xf32>
    %40 = tpu.reciprocal %39 {approx = true} : vector<8x1xf32> -> vector<8x1xf32>
    %41 = vector.broadcast %40 : vector<8x1xf32> to vector<8x8xf32>
    %42 = arith.mulf %37, %41 : vector<8x8xf32>
    %43 = vector.extract_strided_slice %27 {offsets = [0, 0], sizes = [8, 64], strides = [1, 1]} : vector<8x512xf32> to vector<8x64xf32>
    %cst_25 = arith.constant dense<0.000000e+00> : vector<8x64xf32>
    %44 = tpu.matmul %42, %43, %cst_25 {dimension_numbers = #tpu.dot_dimension_numbers<[1], [0], [0], [1], [0, 0, 1, 1], [], []>} : vector<8x8xf32>, vector<8x64xf32>, vector<8x64xf32> -> vector<8x64xf32>
    %45 = vector.extract_strided_slice %25 {offsets = [0, 64], sizes = [8, 64], strides = [1, 1]} : vector<8x512xf32> to vector<8x64xf32>
    %46 = vector.extract_strided_slice %26 {offsets = [0, 64], sizes = [8, 64], strides = [1, 1]} : vector<8x512xf32> to vector<8x64xf32>
    %cst_26 = arith.constant dense<0.000000e+00> : vector<8x8xf32>
    %47 = tpu.matmul %45, %46, %cst_26 {dimension_numbers = #tpu.dot_dimension_numbers<[1], [1], [0], [0], [0, 0, 1, 0], [], []>} : vector<8x64xf32>, vector<8x64xf32>, vector<8x8xf32> -> vector<8x8xf32>
    %cst_27 = arith.constant 9.99999971E-10 : f32
    %48 = vector.broadcast %cst_27 : f32 to vector<8x8xf32>
    %49 = arith.select %22, %47, %48 : vector<8x8xi1>, vector<8x8xf32>
    %cst_28 = arith.constant dense<0xFF800000> : vector<8xf32>
    %50 = vector.multi_reduction <maximumf>, %49, %cst_28 [1] : vector<8x8xf32> to vector<8xf32>
    %51 = vector.shape_cast %50 : vector<8xf32> to vector<8x1xf32>
    %52 = vector.broadcast %51 : vector<8x1xf32> to vector<8x8xf32>
    %53 = arith.subf %49, %52 : vector<8x8xf32>
    %54 = math.exp %53 : vector<8x8xf32>
    %cst_29 = arith.constant dense<0.000000e+00> : vector<8xf32>
    %55 = vector.multi_reduction <add>, %54, %cst_29 [1] : vector<8x8xf32> to vector<8xf32>
    %56 = vector.shape_cast %55 : vector<8xf32> to vector<8x1xf32>
    %57 = tpu.reciprocal %56 {approx = true} : vector<8x1xf32> -> vector<8x1xf32>
    %58 = vector.broadcast %57 : vector<8x1xf32> to vector<8x8xf32>
    %59 = arith.mulf %54, %58 : vector<8x8xf32>
    %60 = vector.extract_strided_slice %27 {offsets = [0, 64], sizes = [8, 64], strides = [1, 1]} : vector<8x512xf32> to vector<8x64xf32>
    %cst_30 = arith.constant dense<0.000000e+00> : vector<8x64xf32>
    %61 = tpu.matmul %59, %60, %cst_30 {dimension_numbers = #tpu.dot_dimension_numbers<[1], [0], [0], [1], [0, 0, 1, 1], [], []>} : vector<8x8xf32>, vector<8x64xf32>, vector<8x64xf32> -> vector<8x64xf32>
    %62 = vector.extract_strided_slice %25 {offsets = [0, 128], sizes = [8, 64], strides = [1, 1]} : vector<8x512xf32> to vector<8x64xf32>
    %63 = vector.extract_strided_slice %26 {offsets = [0, 128], sizes = [8, 64], strides = [1, 1]} : vector<8x512xf32> to vector<8x64xf32>
    %cst_31 = arith.constant dense<0.000000e+00> : vector<8x8xf32>
    %64 = tpu.matmul %62, %63, %cst_31 {dimension_numbers = #tpu.dot_dimension_numbers<[1], [1], [0], [0], [0, 0, 1, 0], [], []>} : vector<8x64xf32>, vector<8x64xf32>, vector<8x8xf32> -> vector<8x8xf32>
    %cst_32 = arith.constant 9.99999971E-10 : f32
    %65 = vector.broadcast %cst_32 : f32 to vector<8x8xf32>
    %66 = arith.select %22, %64, %65 : vector<8x8xi1>, vector<8x8xf32>
    %cst_33 = arith.constant dense<0xFF800000> : vector<8xf32>
    %67 = vector.multi_reduction <maximumf>, %66, %cst_33 [1] : vector<8x8xf32> to vector<8xf32>
    %68 = vector.shape_cast %67 : vector<8xf32> to vector<8x1xf32>
    %69 = vector.broadcast %68 : vector<8x1xf32> to vector<8x8xf32>
    %70 = arith.subf %66, %69 : vector<8x8xf32>
    %71 = math.exp %70 : vector<8x8xf32>
    %cst_34 = arith.constant dense<0.000000e+00> : vector<8xf32>
    %72 = vector.multi_reduction <add>, %71, %cst_34 [1] : vector<8x8xf32> to vector<8xf32>
    %73 = vector.shape_cast %72 : vector<8xf32> to vector<8x1xf32>
    %74 = tpu.reciprocal %73 {approx = true} : vector<8x1xf32> -> vector<8x1xf32>
    %75 = vector.broadcast %74 : vector<8x1xf32> to vector<8x8xf32>
    %76 = arith.mulf %71, %75 : vector<8x8xf32>
    %77 = vector.extract_strided_slice %27 {offsets = [0, 128], sizes = [8, 64], strides = [1, 1]} : vector<8x512xf32> to vector<8x64xf32>
    %cst_35 = arith.constant dense<0.000000e+00> : vector<8x64xf32>
    %78 = tpu.matmul %76, %77, %cst_35 {dimension_numbers = #tpu.dot_dimension_numbers<[1], [0], [0], [1], [0, 0, 1, 1], [], []>} : vector<8x8xf32>, vector<8x64xf32>, vector<8x64xf32> -> vector<8x64xf32>
    %79 = vector.extract_strided_slice %25 {offsets = [0, 192], sizes = [8, 64], strides = [1, 1]} : vector<8x512xf32> to vector<8x64xf32>
    %80 = vector.extract_strided_slice %26 {offsets = [0, 192], sizes = [8, 64], strides = [1, 1]} : vector<8x512xf32> to vector<8x64xf32>
    %cst_36 = arith.constant dense<0.000000e+00> : vector<8x8xf32>
    %81 = tpu.matmul %79, %80, %cst_36 {dimension_numbers = #tpu.dot_dimension_numbers<[1], [1], [0], [0], [0, 0, 1, 0], [], []>} : vector<8x64xf32>, vector<8x64xf32>, vector<8x8xf32> -> vector<8x8xf32>
    %cst_37 = arith.constant 9.99999971E-10 : f32
    %82 = vector.broadcast %cst_37 : f32 to vector<8x8xf32>
    %83 = arith.select %22, %81, %82 : vector<8x8xi1>, vector<8x8xf32>
    %cst_38 = arith.constant dense<0xFF800000> : vector<8xf32>
    %84 = vector.multi_reduction <maximumf>, %83, %cst_38 [1] : vector<8x8xf32> to vector<8xf32>
    %85 = vector.shape_cast %84 : vector<8xf32> to vector<8x1xf32>
    %86 = vector.broadcast %85 : vector<8x1xf32> to vector<8x8xf32>
    %87 = arith.subf %83, %86 : vector<8x8xf32>
    %88 = math.exp %87 : vector<8x8xf32>
    %cst_39 = arith.constant dense<0.000000e+00> : vector<8xf32>
    %89 = vector.multi_reduction <add>, %88, %cst_39 [1] : vector<8x8xf32> to vector<8xf32>
    %90 = vector.shape_cast %89 : vector<8xf32> to vector<8x1xf32>
    %91 = tpu.reciprocal %90 {approx = true} : vector<8x1xf32> -> vector<8x1xf32>
    %92 = vector.broadcast %91 : vector<8x1xf32> to vector<8x8xf32>
    %93 = arith.mulf %88, %92 : vector<8x8xf32>
    %94 = vector.extract_strided_slice %27 {offsets = [0, 192], sizes = [8, 64], strides = [1, 1]} : vector<8x512xf32> to vector<8x64xf32>
    %cst_40 = arith.constant dense<0.000000e+00> : vector<8x64xf32>
    %95 = tpu.matmul %93, %94, %cst_40 {dimension_numbers = #tpu.dot_dimension_numbers<[1], [0], [0], [1], [0, 0, 1, 1], [], []>} : vector<8x8xf32>, vector<8x64xf32>, vector<8x64xf32> -> vector<8x64xf32>
    %96 = vector.extract_strided_slice %25 {offsets = [0, 256], sizes = [8, 64], strides = [1, 1]} : vector<8x512xf32> to vector<8x64xf32>
    %97 = vector.extract_strided_slice %26 {offsets = [0, 256], sizes = [8, 64], strides = [1, 1]} : vector<8x512xf32> to vector<8x64xf32>
    %cst_41 = arith.constant dense<0.000000e+00> : vector<8x8xf32>
    %98 = tpu.matmul %96, %97, %cst_41 {dimension_numbers = #tpu.dot_dimension_numbers<[1], [1], [0], [0], [0, 0, 1, 0], [], []>} : vector<8x64xf32>, vector<8x64xf32>, vector<8x8xf32> -> vector<8x8xf32>
    %cst_42 = arith.constant 9.99999971E-10 : f32
    %99 = vector.broadcast %cst_42 : f32 to vector<8x8xf32>
    %100 = arith.select %22, %98, %99 : vector<8x8xi1>, vector<8x8xf32>
    %cst_43 = arith.constant dense<0xFF800000> : vector<8xf32>
    %101 = vector.multi_reduction <maximumf>, %100, %cst_43 [1] : vector<8x8xf32> to vector<8xf32>
    %102 = vector.shape_cast %101 : vector<8xf32> to vector<8x1xf32>
    %103 = vector.broadcast %102 : vector<8x1xf32> to vector<8x8xf32>
    %104 = arith.subf %100, %103 : vector<8x8xf32>
    %105 = math.exp %104 : vector<8x8xf32>
    %cst_44 = arith.constant dense<0.000000e+00> : vector<8xf32>
    %106 = vector.multi_reduction <add>, %105, %cst_44 [1] : vector<8x8xf32> to vector<8xf32>
    %107 = vector.shape_cast %106 : vector<8xf32> to vector<8x1xf32>
    %108 = tpu.reciprocal %107 {approx = true} : vector<8x1xf32> -> vector<8x1xf32>
    %109 = vector.broadcast %108 : vector<8x1xf32> to vector<8x8xf32>
    %110 = arith.mulf %105, %109 : vector<8x8xf32>
    %111 = vector.extract_strided_slice %27 {offsets = [0, 256], sizes = [8, 64], strides = [1, 1]} : vector<8x512xf32> to vector<8x64xf32>
    %cst_45 = arith.constant dense<0.000000e+00> : vector<8x64xf32>
    %112 = tpu.matmul %110, %111, %cst_45 {dimension_numbers = #tpu.dot_dimension_numbers<[1], [0], [0], [1], [0, 0, 1, 1], [], []>} : vector<8x8xf32>, vector<8x64xf32>, vector<8x64xf32> -> vector<8x64xf32>
    %113 = vector.extract_strided_slice %25 {offsets = [0, 320], sizes = [8, 64], strides = [1, 1]} : vector<8x512xf32> to vector<8x64xf32>
    %114 = vector.extract_strided_slice %26 {offsets = [0, 320], sizes = [8, 64], strides = [1, 1]} : vector<8x512xf32> to vector<8x64xf32>
    %cst_46 = arith.constant dense<0.000000e+00> : vector<8x8xf32>
    %115 = tpu.matmul %113, %114, %cst_46 {dimension_numbers = #tpu.dot_dimension_numbers<[1], [1], [0], [0], [0, 0, 1, 0], [], []>} : vector<8x64xf32>, vector<8x64xf32>, vector<8x8xf32> -> vector<8x8xf32>
    %cst_47 = arith.constant 9.99999971E-10 : f32
    %116 = vector.broadcast %cst_47 : f32 to vector<8x8xf32>
    %117 = arith.select %22, %115, %116 : vector<8x8xi1>, vector<8x8xf32>
    %cst_48 = arith.constant dense<0xFF800000> : vector<8xf32>
    %118 = vector.multi_reduction <maximumf>, %117, %cst_48 [1] : vector<8x8xf32> to vector<8xf32>
    %119 = vector.shape_cast %118 : vector<8xf32> to vector<8x1xf32>
    %120 = vector.broadcast %119 : vector<8x1xf32> to vector<8x8xf32>
    %121 = arith.subf %117, %120 : vector<8x8xf32>
    %122 = math.exp %121 : vector<8x8xf32>
    %cst_49 = arith.constant dense<0.000000e+00> : vector<8xf32>
    %123 = vector.multi_reduction <add>, %122, %cst_49 [1] : vector<8x8xf32> to vector<8xf32>
    %124 = vector.shape_cast %123 : vector<8xf32> to vector<8x1xf32>
    %125 = tpu.reciprocal %124 {approx = true} : vector<8x1xf32> -> vector<8x1xf32>
    %126 = vector.broadcast %125 : vector<8x1xf32> to vector<8x8xf32>
    %127 = arith.mulf %122, %126 : vector<8x8xf32>
    %128 = vector.extract_strided_slice %27 {offsets = [0, 320], sizes = [8, 64], strides = [1, 1]} : vector<8x512xf32> to vector<8x64xf32>
    %cst_50 = arith.constant dense<0.000000e+00> : vector<8x64xf32>
    %129 = tpu.matmul %127, %128, %cst_50 {dimension_numbers = #tpu.dot_dimension_numbers<[1], [0], [0], [1], [0, 0, 1, 1], [], []>} : vector<8x8xf32>, vector<8x64xf32>, vector<8x64xf32> -> vector<8x64xf32>
    %130 = vector.extract_strided_slice %25 {offsets = [0, 384], sizes = [8, 64], strides = [1, 1]} : vector<8x512xf32> to vector<8x64xf32>
    %131 = vector.extract_strided_slice %26 {offsets = [0, 384], sizes = [8, 64], strides = [1, 1]} : vector<8x512xf32> to vector<8x64xf32>
    %cst_51 = arith.constant dense<0.000000e+00> : vector<8x8xf32>
    %132 = tpu.matmul %130, %131, %cst_51 {dimension_numbers = #tpu.dot_dimension_numbers<[1], [1], [0], [0], [0, 0, 1, 0], [], []>} : vector<8x64xf32>, vector<8x64xf32>, vector<8x8xf32> -> vector<8x8xf32>
    %cst_52 = arith.constant 9.99999971E-10 : f32
    %133 = vector.broadcast %cst_52 : f32 to vector<8x8xf32>
    %134 = arith.select %22, %132, %133 : vector<8x8xi1>, vector<8x8xf32>
    %cst_53 = arith.constant dense<0xFF800000> : vector<8xf32>
    %135 = vector.multi_reduction <maximumf>, %134, %cst_53 [1] : vector<8x8xf32> to vector<8xf32>
    %136 = vector.shape_cast %135 : vector<8xf32> to vector<8x1xf32>
    %137 = vector.broadcast %136 : vector<8x1xf32> to vector<8x8xf32>
    %138 = arith.subf %134, %137 : vector<8x8xf32>
    %139 = math.exp %138 : vector<8x8xf32>
    %cst_54 = arith.constant dense<0.000000e+00> : vector<8xf32>
    %140 = vector.multi_reduction <add>, %139, %cst_54 [1] : vector<8x8xf32> to vector<8xf32>
    %141 = vector.shape_cast %140 : vector<8xf32> to vector<8x1xf32>
    %142 = tpu.reciprocal %141 {approx = true} : vector<8x1xf32> -> vector<8x1xf32>
    %143 = vector.broadcast %142 : vector<8x1xf32> to vector<8x8xf32>
    %144 = arith.mulf %139, %143 : vector<8x8xf32>
    %145 = vector.extract_strided_slice %27 {offsets = [0, 384], sizes = [8, 64], strides = [1, 1]} : vector<8x512xf32> to vector<8x64xf32>
    %cst_55 = arith.constant dense<0.000000e+00> : vector<8x64xf32>
    %146 = tpu.matmul %144, %145, %cst_55 {dimension_numbers = #tpu.dot_dimension_numbers<[1], [0], [0], [1], [0, 0, 1, 1], [], []>} : vector<8x8xf32>, vector<8x64xf32>, vector<8x64xf32> -> vector<8x64xf32>
    %147 = vector.extract_strided_slice %25 {offsets = [0, 448], sizes = [8, 64], strides = [1, 1]} : vector<8x512xf32> to vector<8x64xf32>
    %148 = vector.extract_strided_slice %26 {offsets = [0, 448], sizes = [8, 64], strides = [1, 1]} : vector<8x512xf32> to vector<8x64xf32>
    %cst_56 = arith.constant dense<0.000000e+00> : vector<8x8xf32>
    %149 = tpu.matmul %147, %148, %cst_56 {dimension_numbers = #tpu.dot_dimension_numbers<[1], [1], [0], [0], [0, 0, 1, 0], [], []>} : vector<8x64xf32>, vector<8x64xf32>, vector<8x8xf32> -> vector<8x8xf32>
    %cst_57 = arith.constant 9.99999971E-10 : f32
    %150 = vector.broadcast %cst_57 : f32 to vector<8x8xf32>
    %151 = arith.select %22, %149, %150 : vector<8x8xi1>, vector<8x8xf32>
    %cst_58 = arith.constant dense<0xFF800000> : vector<8xf32>
    %152 = vector.multi_reduction <maximumf>, %151, %cst_58 [1] : vector<8x8xf32> to vector<8xf32>
    %153 = vector.shape_cast %152 : vector<8xf32> to vector<8x1xf32>
    %154 = vector.broadcast %153 : vector<8x1xf32> to vector<8x8xf32>
    %155 = arith.subf %151, %154 : vector<8x8xf32>
    %156 = math.exp %155 : vector<8x8xf32>
    %cst_59 = arith.constant dense<0.000000e+00> : vector<8xf32>
    %157 = vector.multi_reduction <add>, %156, %cst_59 [1] : vector<8x8xf32> to vector<8xf32>
    %158 = vector.shape_cast %157 : vector<8xf32> to vector<8x1xf32>
    %159 = tpu.reciprocal %158 {approx = true} : vector<8x1xf32> -> vector<8x1xf32>
    %160 = vector.broadcast %159 : vector<8x1xf32> to vector<8x8xf32>
    %161 = arith.mulf %156, %160 : vector<8x8xf32>
    %162 = vector.extract_strided_slice %27 {offsets = [0, 448], sizes = [8, 64], strides = [1, 1]} : vector<8x512xf32> to vector<8x64xf32>
    %cst_60 = arith.constant dense<0.000000e+00> : vector<8x64xf32>
    %163 = tpu.matmul %161, %162, %cst_60 {dimension_numbers = #tpu.dot_dimension_numbers<[1], [0], [0], [1], [0, 0, 1, 1], [], []>} : vector<8x8xf32>, vector<8x64xf32>, vector<8x64xf32> -> vector<8x64xf32>
    %164 = tpu.concatenate %44, %61, %78, %95, %112, %129, %146, %163 in 1 : vector<8x64xf32>, vector<8x64xf32>, vector<8x64xf32>, vector<8x64xf32>, vector<8x64xf32>, vector<8x64xf32>, vector<8x64xf32>, vector<8x64xf32> -> vector<8x512xf32>
    %c0_61 = arith.constant 0 : index
    %c0_62 = arith.constant 0 : index
    %165 = vector.load %arg8[%c0_61, %c0_62] : memref<512x512xf32, #tpu.memory_space<vmem>>, vector<512x512xf32>
    %c0_63 = arith.constant 0 : index
    %c0_64 = arith.constant 0 : index
    %166 = vector.load %arg9[%c0_63, %c0_64] : memref<1x512xf32, #tpu.memory_space<vmem>>, vector<1x512xf32>
    %c0_65 = arith.constant 0 : index
    %c0_66 = arith.constant 0 : index
    %167 = vector.load %arg12[%c0_65, %c0_66] : memref<1x512xf32, #tpu.memory_space<vmem>>, vector<1x512xf32>
    %c0_67 = arith.constant 0 : index
    %c0_68 = arith.constant 0 : index
    %168 = vector.load %arg13[%c0_67, %c0_68] : memref<1x512xf32, #tpu.memory_space<vmem>>, vector<1x512xf32>
    %cst_69 = arith.constant dense<0.000000e+00> : vector<8x512xf32>
    %169 = tpu.matmul %164, %165, %cst_69 {dimension_numbers = #tpu.dot_dimension_numbers<[1], [0], [0], [1], [0, 0, 1, 1], [], []>} : vector<8x512xf32>, vector<512x512xf32>, vector<8x512xf32> -> vector<8x512xf32>
    %170 = vector.broadcast %166 : vector<1x512xf32> to vector<8x512xf32>
    %171 = arith.addf %169, %170 : vector<8x512xf32>
    %172 = arith.addf %171, %164 : vector<8x512xf32>
    %cst_70 = arith.constant dense<0.000000e+00> : vector<8xf32>
    %173 = vector.multi_reduction <add>, %172, %cst_70 [1] : vector<8x512xf32> to vector<8xf32>
    %174 = vector.shape_cast %173 : vector<8xf32> to vector<8x1xf32>
    %cst_71 = arith.constant 5.120000e+02 : f32
    %175 = vector.broadcast %cst_71 : f32 to vector<8x1xf32>
    %176 = arith.divf %174, %175 : vector<8x1xf32>
    %177 = vector.broadcast %176 : vector<8x1xf32> to vector<8x512xf32>
    %178 = arith.subf %172, %177 : vector<8x512xf32>
    %179 = arith.mulf %178, %178 : vector<8x512xf32>
    %cst_72 = arith.constant dense<0.000000e+00> : vector<8xf32>
    %180 = vector.multi_reduction <add>, %179, %cst_72 [1] : vector<8x512xf32> to vector<8xf32>
    %181 = vector.shape_cast %180 : vector<8xf32> to vector<8x1xf32>
    %cst_73 = arith.constant 5.120000e+02 : f32
    %182 = vector.broadcast %cst_73 : f32 to vector<8x1xf32>
    %183 = arith.divf %181, %182 : vector<8x1xf32>
    %184 = vector.broadcast %176 : vector<8x1xf32> to vector<8x512xf32>
    %185 = arith.subf %172, %184 : vector<8x512xf32>
    %cst_74 = arith.constant 9.99999974E-6 : f32
    %186 = vector.broadcast %cst_74 : f32 to vector<8x1xf32>
    %187 = arith.addf %183, %186 : vector<8x1xf32>
    %188 = math.rsqrt %187 : vector<8x1xf32>
    %189 = vector.broadcast %188 : vector<8x1xf32> to vector<8x512xf32>
    %190 = arith.mulf %185, %189 : vector<8x512xf32>
    %191 = vector.broadcast %167 : vector<1x512xf32> to vector<8x512xf32>
    %192 = arith.mulf %190, %191 : vector<8x512xf32>
    %193 = vector.broadcast %168 : vector<1x512xf32> to vector<8x512xf32>
    %194 = arith.addf %192, %193 : vector<8x512xf32>
    %cst_75 = arith.constant dense<0.000000e+00> : vector<8x8xf32>
    %195 = tpu.matmul %194, %194, %cst_75 {dimension_numbers = #tpu.dot_dimension_numbers<[1], [1], [0], [0], [0, 0, 1, 0], [], []>} : vector<8x512xf32>, vector<8x512xf32>, vector<8x8xf32> -> vector<8x8xf32>
    %c0_76 = arith.constant 0 : index
    %c0_77 = arith.constant 0 : index
    %c0_78 = arith.constant 0 : index
    %196 = vector.load %arg16[%c0_76, %c0_77, %c0_78] : memref<1x8x8xf32, #tpu.memory_space<vmem>>, vector<1x8x8xf32>
    %197 = vector.shape_cast %196 : vector<1x8x8xf32> to vector<8x8xf32>
    %198 = vector.shape_cast %195 : vector<8x8xf32> to vector<1x8x8xf32>
    tpu.vector_store %arg16[%c0_76, %c0_77, %c0_78], %198 {strides = array<i32>} : memref<1x8x8xf32, #tpu.memory_space<vmem>>, vector<1x8x8xf32>,
    %199 = vector.extract_strided_slice %11 {offsets = [0, 512], sizes = [8, 512], strides = [1, 1]} : vector<24x1024xf32> to vector<8x512xf32>
    %cst_79 = arith.constant 0.353553385 : f32
    %200 = vector.broadcast %cst_79 : f32 to vector<8x512xf32>
    %201 = arith.mulf %199, %200 : vector<8x512xf32>
    %202 = vector.extract_strided_slice %11 {offsets = [8, 512], sizes = [8, 512], strides = [1, 1]} : vector<24x1024xf32> to vector<8x512xf32>
    %203 = vector.extract_strided_slice %11 {offsets = [16, 512], sizes = [8, 512], strides = [1, 1]} : vector<24x1024xf32> to vector<8x512xf32>
    %204 = vector.extract_strided_slice %201 {offsets = [0, 0], sizes = [8, 64], strides = [1, 1]} : vector<8x512xf32> to vector<8x64xf32>
    %205 = vector.extract_strided_slice %202 {offsets = [0, 0], sizes = [8, 64], strides = [1, 1]} : vector<8x512xf32> to vector<8x64xf32>
    %cst_80 = arith.constant dense<0.000000e+00> : vector<8x8xf32>
    %206 = tpu.matmul %204, %205, %cst_80 {dimension_numbers = #tpu.dot_dimension_numbers<[1], [1], [0], [0], [0, 0, 1, 0], [], []>} : vector<8x64xf32>, vector<8x64xf32>, vector<8x8xf32> -> vector<8x8xf32>
    %cst_81 = arith.constant 9.99999971E-10 : f32
    %207 = vector.broadcast %cst_81 : f32 to vector<8x8xf32>
    %208 = arith.select %22, %206, %207 : vector<8x8xi1>, vector<8x8xf32>
    %cst_82 = arith.constant dense<0xFF800000> : vector<8xf32>
    %209 = vector.multi_reduction <maximumf>, %208, %cst_82 [1] : vector<8x8xf32> to vector<8xf32>
    %210 = vector.shape_cast %209 : vector<8xf32> to vector<8x1xf32>
    %211 = vector.broadcast %210 : vector<8x1xf32> to vector<8x8xf32>
    %212 = arith.subf %208, %211 : vector<8x8xf32>
    %213 = math.exp %212 : vector<8x8xf32>
    %cst_83 = arith.constant dense<0.000000e+00> : vector<8xf32>
    %214 = vector.multi_reduction <add>, %213, %cst_83 [1] : vector<8x8xf32> to vector<8xf32>
    %215 = vector.shape_cast %214 : vector<8xf32> to vector<8x1xf32>
    %216 = tpu.reciprocal %215 {approx = true} : vector<8x1xf32> -> vector<8x1xf32>
    %217 = vector.broadcast %216 : vector<8x1xf32> to vector<8x8xf32>
    %218 = arith.mulf %213, %217 : vector<8x8xf32>
    %219 = vector.extract_strided_slice %203 {offsets = [0, 0], sizes = [8, 64], strides = [1, 1]} : vector<8x512xf32> to vector<8x64xf32>
    %cst_84 = arith.constant dense<0.000000e+00> : vector<8x64xf32>
    %220 = tpu.matmul %218, %219, %cst_84 {dimension_numbers = #tpu.dot_dimension_numbers<[1], [0], [0], [1], [0, 0, 1, 1], [], []>} : vector<8x8xf32>, vector<8x64xf32>, vector<8x64xf32> -> vector<8x64xf32>
    %221 = vector.extract_strided_slice %201 {offsets = [0, 64], sizes = [8, 64], strides = [1, 1]} : vector<8x512xf32> to vector<8x64xf32>
    %222 = vector.extract_strided_slice %202 {offsets = [0, 64], sizes = [8, 64], strides = [1, 1]} : vector<8x512xf32> to vector<8x64xf32>
    %cst_85 = arith.constant dense<0.000000e+00> : vector<8x8xf32>
    %223 = tpu.matmul %221, %222, %cst_85 {dimension_numbers = #tpu.dot_dimension_numbers<[1], [1], [0], [0], [0, 0, 1, 0], [], []>} : vector<8x64xf32>, vector<8x64xf32>, vector<8x8xf32> -> vector<8x8xf32>
    %cst_86 = arith.constant 9.99999971E-10 : f32
    %224 = vector.broadcast %cst_86 : f32 to vector<8x8xf32>
    %225 = arith.select %22, %223, %224 : vector<8x8xi1>, vector<8x8xf32>
    %cst_87 = arith.constant dense<0xFF800000> : vector<8xf32>
    %226 = vector.multi_reduction <maximumf>, %225, %cst_87 [1] : vector<8x8xf32> to vector<8xf32>
    %227 = vector.shape_cast %226 : vector<8xf32> to vector<8x1xf32>
    %228 = vector.broadcast %227 : vector<8x1xf32> to vector<8x8xf32>
    %229 = arith.subf %225, %228 : vector<8x8xf32>
    %230 = math.exp %229 : vector<8x8xf32>
    %cst_88 = arith.constant dense<0.000000e+00> : vector<8xf32>
    %231 = vector.multi_reduction <add>, %230, %cst_88 [1] : vector<8x8xf32> to vector<8xf32>
    %232 = vector.shape_cast %231 : vector<8xf32> to vector<8x1xf32>
    %233 = tpu.reciprocal %232 {approx = true} : vector<8x1xf32> -> vector<8x1xf32>
    %234 = vector.broadcast %233 : vector<8x1xf32> to vector<8x8xf32>
    %235 = arith.mulf %230, %234 : vector<8x8xf32>
    %236 = vector.extract_strided_slice %203 {offsets = [0, 64], sizes = [8, 64], strides = [1, 1]} : vector<8x512xf32> to vector<8x64xf32>
    %cst_89 = arith.constant dense<0.000000e+00> : vector<8x64xf32>
    %237 = tpu.matmul %235, %236, %cst_89 {dimension_numbers = #tpu.dot_dimension_numbers<[1], [0], [0], [1], [0, 0, 1, 1], [], []>} : vector<8x8xf32>, vector<8x64xf32>, vector<8x64xf32> -> vector<8x64xf32>
    %238 = vector.extract_strided_slice %201 {offsets = [0, 128], sizes = [8, 64], strides = [1, 1]} : vector<8x512xf32> to vector<8x64xf32>
    %239 = vector.extract_strided_slice %202 {offsets = [0, 128], sizes = [8, 64], strides = [1, 1]} : vector<8x512xf32> to vector<8x64xf32>
    %cst_90 = arith.constant dense<0.000000e+00> : vector<8x8xf32>
    %240 = tpu.matmul %238, %239, %cst_90 {dimension_numbers = #tpu.dot_dimension_numbers<[1], [1], [0], [0], [0, 0, 1, 0], [], []>} : vector<8x64xf32>, vector<8x64xf32>, vector<8x8xf32> -> vector<8x8xf32>
    %cst_91 = arith.constant 9.99999971E-10 : f32
    %241 = vector.broadcast %cst_91 : f32 to vector<8x8xf32>
    %242 = arith.select %22, %240, %241 : vector<8x8xi1>, vector<8x8xf32>
    %cst_92 = arith.constant dense<0xFF800000> : vector<8xf32>
    %243 = vector.multi_reduction <maximumf>, %242, %cst_92 [1] : vector<8x8xf32> to vector<8xf32>
    %244 = vector.shape_cast %243 : vector<8xf32> to vector<8x1xf32>
    %245 = vector.broadcast %244 : vector<8x1xf32> to vector<8x8xf32>
    %246 = arith.subf %242, %245 : vector<8x8xf32>
    %247 = math.exp %246 : vector<8x8xf32>
    %cst_93 = arith.constant dense<0.000000e+00> : vector<8xf32>
    %248 = vector.multi_reduction <add>, %247, %cst_93 [1] : vector<8x8xf32> to vector<8xf32>
    %249 = vector.shape_cast %248 : vector<8xf32> to vector<8x1xf32>
    %250 = tpu.reciprocal %249 {approx = true} : vector<8x1xf32> -> vector<8x1xf32>
    %251 = vector.broadcast %250 : vector<8x1xf32> to vector<8x8xf32>
    %252 = arith.mulf %247, %251 : vector<8x8xf32>
    %253 = vector.extract_strided_slice %203 {offsets = [0, 128], sizes = [8, 64], strides = [1, 1]} : vector<8x512xf32> to vector<8x64xf32>
    %cst_94 = arith.constant dense<0.000000e+00> : vector<8x64xf32>
    %254 = tpu.matmul %252, %253, %cst_94 {dimension_numbers = #tpu.dot_dimension_numbers<[1], [0], [0], [1], [0, 0, 1, 1], [], []>} : vector<8x8xf32>, vector<8x64xf32>, vector<8x64xf32> -> vector<8x64xf32>
    %255 = vector.extract_strided_slice %201 {offsets = [0, 192], sizes = [8, 64], strides = [1, 1]} : vector<8x512xf32> to vector<8x64xf32>
    %256 = vector.extract_strided_slice %202 {offsets = [0, 192], sizes = [8, 64], strides = [1, 1]} : vector<8x512xf32> to vector<8x64xf32>
    %cst_95 = arith.constant dense<0.000000e+00> : vector<8x8xf32>
    %257 = tpu.matmul %255, %256, %cst_95 {dimension_numbers = #tpu.dot_dimension_numbers<[1], [1], [0], [0], [0, 0, 1, 0], [], []>} : vector<8x64xf32>, vector<8x64xf32>, vector<8x8xf32> -> vector<8x8xf32>
    %cst_96 = arith.constant 9.99999971E-10 : f32
    %258 = vector.broadcast %cst_96 : f32 to vector<8x8xf32>
    %259 = arith.select %22, %257, %258 : vector<8x8xi1>, vector<8x8xf32>
    %cst_97 = arith.constant dense<0xFF800000> : vector<8xf32>
    %260 = vector.multi_reduction <maximumf>, %259, %cst_97 [1] : vector<8x8xf32> to vector<8xf32>
    %261 = vector.shape_cast %260 : vector<8xf32> to vector<8x1xf32>
    %262 = vector.broadcast %261 : vector<8x1xf32> to vector<8x8xf32>
    %263 = arith.subf %259, %262 : vector<8x8xf32>
    %264 = math.exp %263 : vector<8x8xf32>
    %cst_98 = arith.constant dense<0.000000e+00> : vector<8xf32>
    %265 = vector.multi_reduction <add>, %264, %cst_98 [1] : vector<8x8xf32> to vector<8xf32>
    %266 = vector.shape_cast %265 : vector<8xf32> to vector<8x1xf32>
    %267 = tpu.reciprocal %266 {approx = true} : vector<8x1xf32> -> vector<8x1xf32>
    %268 = vector.broadcast %267 : vector<8x1xf32> to vector<8x8xf32>
    %269 = arith.mulf %264, %268 : vector<8x8xf32>
    %270 = vector.extract_strided_slice %203 {offsets = [0, 192], sizes = [8, 64], strides = [1, 1]} : vector<8x512xf32> to vector<8x64xf32>
    %cst_99 = arith.constant dense<0.000000e+00> : vector<8x64xf32>
    %271 = tpu.matmul %269, %270, %cst_99 {dimension_numbers = #tpu.dot_dimension_numbers<[1], [0], [0], [1], [0, 0, 1, 1], [], []>} : vector<8x8xf32>, vector<8x64xf32>, vector<8x64xf32> -> vector<8x64xf32>
    %272 = vector.extract_strided_slice %201 {offsets = [0, 256], sizes = [8, 64], strides = [1, 1]} : vector<8x512xf32> to vector<8x64xf32>
    %273 = vector.extract_strided_slice %202 {offsets = [0, 256], sizes = [8, 64], strides = [1, 1]} : vector<8x512xf32> to vector<8x64xf32>
    %cst_100 = arith.constant dense<0.000000e+00> : vector<8x8xf32>
    %274 = tpu.matmul %272, %273, %cst_100 {dimension_numbers = #tpu.dot_dimension_numbers<[1], [1], [0], [0], [0, 0, 1, 0], [], []>} : vector<8x64xf32>, vector<8x64xf32>, vector<8x8xf32> -> vector<8x8xf32>
    %cst_101 = arith.constant 9.99999971E-10 : f32
    %275 = vector.broadcast %cst_101 : f32 to vector<8x8xf32>
    %276 = arith.select %22, %274, %275 : vector<8x8xi1>, vector<8x8xf32>
    %cst_102 = arith.constant dense<0xFF800000> : vector<8xf32>
    %277 = vector.multi_reduction <maximumf>, %276, %cst_102 [1] : vector<8x8xf32> to vector<8xf32>
    %278 = vector.shape_cast %277 : vector<8xf32> to vector<8x1xf32>
    %279 = vector.broadcast %278 : vector<8x1xf32> to vector<8x8xf32>
    %280 = arith.subf %276, %279 : vector<8x8xf32>
    %281 = math.exp %280 : vector<8x8xf32>
    %cst_103 = arith.constant dense<0.000000e+00> : vector<8xf32>
    %282 = vector.multi_reduction <add>, %281, %cst_103 [1] : vector<8x8xf32> to vector<8xf32>
    %283 = vector.shape_cast %282 : vector<8xf32> to vector<8x1xf32>
    %284 = tpu.reciprocal %283 {approx = true} : vector<8x1xf32> -> vector<8x1xf32>
    %285 = vector.broadcast %284 : vector<8x1xf32> to vector<8x8xf32>
    %286 = arith.mulf %281, %285 : vector<8x8xf32>
    %287 = vector.extract_strided_slice %203 {offsets = [0, 256], sizes = [8, 64], strides = [1, 1]} : vector<8x512xf32> to vector<8x64xf32>
    %cst_104 = arith.constant dense<0.000000e+00> : vector<8x64xf32>
    %288 = tpu.matmul %286, %287, %cst_104 {dimension_numbers = #tpu.dot_dimension_numbers<[1], [0], [0], [1], [0, 0, 1, 1], [], []>} : vector<8x8xf32>, vector<8x64xf32>, vector<8x64xf32> -> vector<8x64xf32>
    %289 = vector.extract_strided_slice %201 {offsets = [0, 320], sizes = [8, 64], strides = [1, 1]} : vector<8x512xf32> to vector<8x64xf32>
    %290 = vector.extract_strided_slice %202 {offsets = [0, 320], sizes = [8, 64], strides = [1, 1]} : vector<8x512xf32> to vector<8x64xf32>
    %cst_105 = arith.constant dense<0.000000e+00> : vector<8x8xf32>
    %291 = tpu.matmul %289, %290, %cst_105 {dimension_numbers = #tpu.dot_dimension_numbers<[1], [1], [0], [0], [0, 0, 1, 0], [], []>} : vector<8x64xf32>, vector<8x64xf32>, vector<8x8xf32> -> vector<8x8xf32>
    %cst_106 = arith.constant 9.99999971E-10 : f32
    %292 = vector.broadcast %cst_106 : f32 to vector<8x8xf32>
    %293 = arith.select %22, %291, %292 : vector<8x8xi1>, vector<8x8xf32>
    %cst_107 = arith.constant dense<0xFF800000> : vector<8xf32>
    %294 = vector.multi_reduction <maximumf>, %293, %cst_107 [1] : vector<8x8xf32> to vector<8xf32>
    %295 = vector.shape_cast %294 : vector<8xf32> to vector<8x1xf32>
    %296 = vector.broadcast %295 : vector<8x1xf32> to vector<8x8xf32>
    %297 = arith.subf %293, %296 : vector<8x8xf32>
    %298 = math.exp %297 : vector<8x8xf32>
    %cst_108 = arith.constant dense<0.000000e+00> : vector<8xf32>
    %299 = vector.multi_reduction <add>, %298, %cst_108 [1] : vector<8x8xf32> to vector<8xf32>
    %300 = vector.shape_cast %299 : vector<8xf32> to vector<8x1xf32>
    %301 = tpu.reciprocal %300 {approx = true} : vector<8x1xf32> -> vector<8x1xf32>
    %302 = vector.broadcast %301 : vector<8x1xf32> to vector<8x8xf32>
    %303 = arith.mulf %298, %302 : vector<8x8xf32>
    %304 = vector.extract_strided_slice %203 {offsets = [0, 320], sizes = [8, 64], strides = [1, 1]} : vector<8x512xf32> to vector<8x64xf32>
    %cst_109 = arith.constant dense<0.000000e+00> : vector<8x64xf32>
    %305 = tpu.matmul %303, %304, %cst_109 {dimension_numbers = #tpu.dot_dimension_numbers<[1], [0], [0], [1], [0, 0, 1, 1], [], []>} : vector<8x8xf32>, vector<8x64xf32>, vector<8x64xf32> -> vector<8x64xf32>
    %306 = vector.extract_strided_slice %201 {offsets = [0, 384], sizes = [8, 64], strides = [1, 1]} : vector<8x512xf32> to vector<8x64xf32>
    %307 = vector.extract_strided_slice %202 {offsets = [0, 384], sizes = [8, 64], strides = [1, 1]} : vector<8x512xf32> to vector<8x64xf32>
    %cst_110 = arith.constant dense<0.000000e+00> : vector<8x8xf32>
    %308 = tpu.matmul %306, %307, %cst_110 {dimension_numbers = #tpu.dot_dimension_numbers<[1], [1], [0], [0], [0, 0, 1, 0], [], []>} : vector<8x64xf32>, vector<8x64xf32>, vector<8x8xf32> -> vector<8x8xf32>
    %cst_111 = arith.constant 9.99999971E-10 : f32
    %309 = vector.broadcast %cst_111 : f32 to vector<8x8xf32>
    %310 = arith.select %22, %308, %309 : vector<8x8xi1>, vector<8x8xf32>
    %cst_112 = arith.constant dense<0xFF800000> : vector<8xf32>
    %311 = vector.multi_reduction <maximumf>, %310, %cst_112 [1] : vector<8x8xf32> to vector<8xf32>
    %312 = vector.shape_cast %311 : vector<8xf32> to vector<8x1xf32>
    %313 = vector.broadcast %312 : vector<8x1xf32> to vector<8x8xf32>
    %314 = arith.subf %310, %313 : vector<8x8xf32>
    %315 = math.exp %314 : vector<8x8xf32>
    %cst_113 = arith.constant dense<0.000000e+00> : vector<8xf32>
    %316 = vector.multi_reduction <add>, %315, %cst_113 [1] : vector<8x8xf32> to vector<8xf32>
    %317 = vector.shape_cast %316 : vector<8xf32> to vector<8x1xf32>
    %318 = tpu.reciprocal %317 {approx = true} : vector<8x1xf32> -> vector<8x1xf32>
    %319 = vector.broadcast %318 : vector<8x1xf32> to vector<8x8xf32>
    %320 = arith.mulf %315, %319 : vector<8x8xf32>
    %321 = vector.extract_strided_slice %203 {offsets = [0, 384], sizes = [8, 64], strides = [1, 1]} : vector<8x512xf32> to vector<8x64xf32>
    %cst_114 = arith.constant dense<0.000000e+00> : vector<8x64xf32>
    %322 = tpu.matmul %320, %321, %cst_114 {dimension_numbers = #tpu.dot_dimension_numbers<[1], [0], [0], [1], [0, 0, 1, 1], [], []>} : vector<8x8xf32>, vector<8x64xf32>, vector<8x64xf32> -> vector<8x64xf32>
    %323 = vector.extract_strided_slice %201 {offsets = [0, 448], sizes = [8, 64], strides = [1, 1]} : vector<8x512xf32> to vector<8x64xf32>
    %324 = vector.extract_strided_slice %202 {offsets = [0, 448], sizes = [8, 64], strides = [1, 1]} : vector<8x512xf32> to vector<8x64xf32>
    %cst_115 = arith.constant dense<0.000000e+00> : vector<8x8xf32>
    %325 = tpu.matmul %323, %324, %cst_115 {dimension_numbers = #tpu.dot_dimension_numbers<[1], [1], [0], [0], [0, 0, 1, 0], [], []>} : vector<8x64xf32>, vector<8x64xf32>, vector<8x8xf32> -> vector<8x8xf32>
    %cst_116 = arith.constant 9.99999971E-10 : f32
    %326 = vector.broadcast %cst_116 : f32 to vector<8x8xf32>
    %327 = arith.select %22, %325, %326 : vector<8x8xi1>, vector<8x8xf32>
    %cst_117 = arith.constant dense<0xFF800000> : vector<8xf32>
    %328 = vector.multi_reduction <maximumf>, %327, %cst_117 [1] : vector<8x8xf32> to vector<8xf32>
    %329 = vector.shape_cast %328 : vector<8xf32> to vector<8x1xf32>
    %330 = vector.broadcast %329 : vector<8x1xf32> to vector<8x8xf32>
    %331 = arith.subf %327, %330 : vector<8x8xf32>
    %332 = math.exp %331 : vector<8x8xf32>
    %cst_118 = arith.constant dense<0.000000e+00> : vector<8xf32>
    %333 = vector.multi_reduction <add>, %332, %cst_118 [1] : vector<8x8xf32> to vector<8xf32>
    %334 = vector.shape_cast %333 : vector<8xf32> to vector<8x1xf32>
    %335 = tpu.reciprocal %334 {approx = true} : vector<8x1xf32> -> vector<8x1xf32>
    %336 = vector.broadcast %335 : vector<8x1xf32> to vector<8x8xf32>
    %337 = arith.mulf %332, %336 : vector<8x8xf32>
    %338 = vector.extract_strided_slice %203 {offsets = [0, 448], sizes = [8, 64], strides = [1, 1]} : vector<8x512xf32> to vector<8x64xf32>
    %cst_119 = arith.constant dense<0.000000e+00> : vector<8x64xf32>
    %339 = tpu.matmul %337, %338, %cst_119 {dimension_numbers = #tpu.dot_dimension_numbers<[1], [0], [0], [1], [0, 0, 1, 1], [], []>} : vector<8x8xf32>, vector<8x64xf32>, vector<8x64xf32> -> vector<8x64xf32>
    %340 = tpu.concatenate %220, %237, %254, %271, %288, %305, %322, %339 in 1 : vector<8x64xf32>, vector<8x64xf32>, vector<8x64xf32>, vector<8x64xf32>, vector<8x64xf32>, vector<8x64xf32>, vector<8x64xf32>, vector<8x64xf32> -> vector<8x512xf32>
    %c0_120 = arith.constant 0 : index
    %c0_121 = arith.constant 0 : index
    %341 = vector.load %arg10[%c0_120, %c0_121] : memref<512x512xf32, #tpu.memory_space<vmem>>, vector<512x512xf32>
    %c0_122 = arith.constant 0 : index
    %c0_123 = arith.constant 0 : index
    %342 = vector.load %arg11[%c0_122, %c0_123] : memref<1x512xf32, #tpu.memory_space<vmem>>, vector<1x512xf32>
    %c0_124 = arith.constant 0 : index
    %c0_125 = arith.constant 0 : index
    %343 = vector.load %arg14[%c0_124, %c0_125] : memref<1x512xf32, #tpu.memory_space<vmem>>, vector<1x512xf32>
    %c0_126 = arith.constant 0 : index
    %c0_127 = arith.constant 0 : index
    %344 = vector.load %arg15[%c0_126, %c0_127] : memref<1x512xf32, #tpu.memory_space<vmem>>, vector<1x512xf32>
    %cst_128 = arith.constant dense<0.000000e+00> : vector<8x512xf32>
    %345 = tpu.matmul %340, %341, %cst_128 {dimension_numbers = #tpu.dot_dimension_numbers<[1], [0], [0], [1], [0, 0, 1, 1], [], []>} : vector<8x512xf32>, vector<512x512xf32>, vector<8x512xf32> -> vector<8x512xf32>
    %346 = vector.broadcast %342 : vector<1x512xf32> to vector<8x512xf32>
    %347 = arith.addf %345, %346 : vector<8x512xf32>
    %348 = arith.addf %347, %340 : vector<8x512xf32>
    %cst_129 = arith.constant dense<0.000000e+00> : vector<8xf32>
    %349 = vector.multi_reduction <add>, %348, %cst_129 [1] : vector<8x512xf32> to vector<8xf32>
    %350 = vector.shape_cast %349 : vector<8xf32> to vector<8x1xf32>
    %cst_130 = arith.constant 5.120000e+02 : f32
    %351 = vector.broadcast %cst_130 : f32 to vector<8x1xf32>
    %352 = arith.divf %350, %351 : vector<8x1xf32>
    %353 = vector.broadcast %352 : vector<8x1xf32> to vector<8x512xf32>
    %354 = arith.subf %348, %353 : vector<8x512xf32>
    %355 = arith.mulf %354, %354 : vector<8x512xf32>
    %cst_131 = arith.constant dense<0.000000e+00> : vector<8xf32>
    %356 = vector.multi_reduction <add>, %355, %cst_131 [1] : vector<8x512xf32> to vector<8xf32>
    %357 = vector.shape_cast %356 : vector<8xf32> to vector<8x1xf32>
    %cst_132 = arith.constant 5.120000e+02 : f32
    %358 = vector.broadcast %cst_132 : f32 to vector<8x1xf32>
    %359 = arith.divf %357, %358 : vector<8x1xf32>
    %360 = vector.broadcast %352 : vector<8x1xf32> to vector<8x512xf32>
    %361 = arith.subf %348, %360 : vector<8x512xf32>
    %cst_133 = arith.constant 9.99999974E-6 : f32
    %362 = vector.broadcast %cst_133 : f32 to vector<8x1xf32>
    %363 = arith.addf %359, %362 : vector<8x1xf32>
    %364 = math.rsqrt %363 : vector<8x1xf32>
    %365 = vector.broadcast %364 : vector<8x1xf32> to vector<8x512xf32>
    %366 = arith.mulf %361, %365 : vector<8x512xf32>
    %367 = vector.broadcast %343 : vector<1x512xf32> to vector<8x512xf32>
    %368 = arith.mulf %366, %367 : vector<8x512xf32>
    %369 = vector.broadcast %344 : vector<1x512xf32> to vector<8x512xf32>
    %370 = arith.addf %368, %369 : vector<8x512xf32>
    %cst_134 = arith.constant dense<0.000000e+00> : vector<8x8xf32>
    %371 = tpu.matmul %370, %370, %cst_134 {dimension_numbers = #tpu.dot_dimension_numbers<[1], [1], [0], [0], [0, 0, 1, 0], [], []>} : vector<8x512xf32>, vector<8x512xf32>, vector<8x8xf32> -> vector<8x8xf32>
    %c0_135 = arith.constant 0 : index
    %c0_136 = arith.constant 0 : index
    %c0_137 = arith.constant 0 : index
    %372 = vector.load %arg17[%c0_135, %c0_136, %c0_137] : memref<1x8x8xf32, #tpu.memory_space<vmem>>, vector<1x8x8xf32>
    %373 = vector.shape_cast %372 : vector<1x8x8xf32> to vector<8x8xf32>
    %374 = vector.shape_cast %371 : vector<8x8xf32> to vector<1x8x8xf32>
    tpu.vector_store %arg17[%c0_135, %c0_136, %c0_137], %374 {strides = array<i32>} : memref<1x8x8xf32, #tpu.memory_space<vmem>>, vector<1x8x8xf32>,
    return
  }
  func.func @transform_0(%arg0: i32) -> (i32, i32, i32) {
    %c0_i32 = arith.constant 0 : i32
    %c0_i32_0 = arith.constant 0 : i32
    %c0_i32_1 = arith.constant 0 : i32
    return %arg0, %c0_i32, %c0_i32_0 : i32, i32, i32
  }
  func.func @transform_1(%arg0: i32) -> (i32, i32, i32) {
    %c0_i32 = arith.constant 0 : i32
    %c0_i32_0 = arith.constant 0 : i32
    %c0_i32_1 = arith.constant 0 : i32
    return %arg0, %c0_i32, %c0_i32_0 : i32, i32, i32
  }
  func.func @transform_2(%arg0: i32) -> (i32, i32, i32) {
    %c0_i32 = arith.constant 0 : i32
    %c0_i32_0 = arith.constant 0 : i32
    %c0_i32_1 = arith.constant 0 : i32
    return %arg0, %c0_i32, %c0_i32_0 : i32, i32, i32
  }
  func.func @transform_3(%arg0: i32) -> (i32, i32, i32) {
    %c0_i32 = arith.constant 0 : i32
    %c0_i32_0 = arith.constant 0 : i32
    %c0_i32_1 = arith.constant 0 : i32
    return %arg0, %c0_i32, %c0_i32_0 : i32, i32, i32
  }
  func.func @transform_4(%arg0: i32) -> (i32, i32, i32) {
    %c0_i32 = arith.constant 0 : i32
    %c0_i32_0 = arith.constant 0 : i32
    %c0_i32_1 = arith.constant 0 : i32
    return %arg0, %c0_i32, %c0_i32_0 : i32, i32, i32
  }
  func.func @transform_5(%arg0: i32) -> (i32, i32) {
    %c0_i32 = arith.constant 0 : i32
    %c0_i32_0 = arith.constant 0 : i32
    %c0_i32_1 = arith.constant 0 : i32
    return %c0_i32, %c0_i32_0 : i32, i32
  }
  func.func @transform_6(%arg0: i32) -> (i32, i32) {
    %c0_i32 = arith.constant 0 : i32
    %c0_i32_0 = arith.constant 0 : i32
    %c0_i32_1 = arith.constant 0 : i32
    return %c0_i32, %c0_i32_0 : i32, i32
  }
  func.func @transform_7(%arg0: i32) -> (i32, i32) {
    %c0_i32 = arith.constant 0 : i32
    %c0_i32_0 = arith.constant 0 : i32
    %c0_i32_1 = arith.constant 0 : i32
    return %c0_i32, %c0_i32_0 : i32, i32
  }
  func.func @transform_8(%arg0: i32) -> (i32, i32) {
    %c0_i32 = arith.constant 0 : i32
    %c0_i32_0 = arith.constant 0 : i32
    %c0_i32_1 = arith.constant 0 : i32
    return %c0_i32, %c0_i32_0 : i32, i32
  }
  func.func @transform_9(%arg0: i32) -> (i32, i32) {
    %c0_i32 = arith.constant 0 : i32
    %c0_i32_0 = arith.constant 0 : i32
    %c0_i32_1 = arith.constant 0 : i32
    return %c0_i32, %c0_i32_0 : i32, i32
  }
  func.func @transform_10(%arg0: i32) -> (i32, i32) {
    %c0_i32 = arith.constant 0 : i32
    %c0_i32_0 = arith.constant 0 : i32
    %c0_i32_1 = arith.constant 0 : i32
    return %c0_i32, %c0_i32_0 : i32, i32
  }
  func.func @transform_11(%arg0: i32) -> (i32, i32) {
    %c0_i32 = arith.constant 0 : i32
    %c0_i32_0 = arith.constant 0 : i32
    %c0_i32_1 = arith.constant 0 : i32
    return %c0_i32, %c0_i32_0 : i32, i32
  }
  func.func @transform_12(%arg0: i32) -> (i32, i32) {
    %c0_i32 = arith.constant 0 : i32
    %c0_i32_0 = arith.constant 0 : i32
    %c0_i32_1 = arith.constant 0 : i32
    return %c0_i32, %c0_i32_0 : i32, i32
  }
  func.func @transform_13(%arg0: i32) -> (i32, i32) {
    %c0_i32 = arith.constant 0 : i32
    %c0_i32_0 = arith.constant 0 : i32
    %c0_i32_1 = arith.constant 0 : i32
    return %c0_i32, %c0_i32_0 : i32, i32
  }
  func.func @transform_14(%arg0: i32) -> (i32, i32) {
    %c0_i32 = arith.constant 0 : i32
    %c0_i32_0 = arith.constant 0 : i32
    %c0_i32_1 = arith.constant 0 : i32
    return %c0_i32, %c0_i32_0 : i32, i32
  }
  func.func @transform_15(%arg0: i32) -> (i32, i32, i32) {
    %c0_i32 = arith.constant 0 : i32
    %c0_i32_0 = arith.constant 0 : i32
    %c0_i32_1 = arith.constant 0 : i32
    return %arg0, %c0_i32, %c0_i32_0 : i32, i32, i32
  }
  func.func @transform_16(%arg0: i32) -> (i32, i32, i32) {
    %c0_i32 = arith.constant 0 : i32
    %c0_i32_0 = arith.constant 0 : i32
    %c0_i32_1 = arith.constant 0 : i32
    return %arg0, %c0_i32, %c0_i32_0 : i32, i32, i32
  }
}

</mosaic_0001>

<bundles_post_ra>
// kernel: kuma_self_attention.1
= control target key start
LH: loop header
LB: loop body
LE: loop exit
PB: predicated region body
PF: predicated region fallthrough
CT: control target
= control target key end

     0   :  { %s4617_s0 = inlined_call_operand.vmem [shape: f32[2,8,32], index: 0, kind: input, shape index: {}]   ;;  %s4618_s1 = inlined_call_operand.vmem [shape: f32[2,8,32], index: 1, kind: input, shape index: {}]   ;;  %s4619_s2 = inlined_call_operand.vmem [shape: f32[2,8,32], index: 2, kind: input, shape index: {}]   ;;  %s4620_s3 = inlined_call_operand.vmem [shape: f32[2,8,1], index: 3, kind: input, shape index: {}]   ;;  %s4621_s4 = inlined_call_operand.vmem [shape: f32[2,1,8], index: 4, kind: input, shape index: {}]   ;;  %s4622_s5 = inlined_call_operand.vmem [shape: f32[32,1024], index: 5, kind: input, shape index: {}]   ;;  %s4623_s6 = inlined_call_operand.vmem [shape: f32[1,1024], index: 6, kind: input, shape index: {}]   ;;  %s4624_s7 = inlined_call_operand.hbm [shape: f32[512,512], index: 7, kind: input, shape index: {}]   ;;  %s4625_s8 = inlined_call_operand.vmem [shape: f32[1,512], index: 8, kind: input, shape index: {}]   ;;  %s4626_s9 = inlined_call_operand.hbm [shape: f32[512,512], index: 9, kind: input, shape index: {}]   ;;  %s4627_s10 = inlined_call_operand.vmem [shape: f32[1,512], index: 10, kind: input, shape index: {}]   ;;  %s4628_s11 = inlined_call_operand.vmem [shape: f32[1,512], index: 11, kind: input, shape index: {}]   ;;  %s4629_s12 = inlined_call_operand.vmem [shape: f32[1,512], index: 12, kind: input, shape index: {}]   ;;  %s4630_s13 = inlined_call_operand.vmem [shape: f32[1,512], index: 13, kind: input, shape index: {}]   ;;  %s4631_s14 = inlined_call_operand.vmem [shape: f32[1,512], index: 14, kind: input, shape index: {}]   ;;  %s4632_s15 = inlined_call_operand.vmem [shape: f32[2,8,8], index: 15, kind: output, shape index: {0}]   ;;  %s4633_s16 = inlined_call_operand.vmem [shape: f32[2,8,8], index: 16, kind: output, shape index: {1}]  }
   0x1   :  { %4634 = sst [smem:[#allocation8_spill]] %s4617_s0 }
   0x2   :  { %22 = vsyncpa [#allocation3], 0 }
   0x3   :  { %23 = vsyncpa [#allocation5], 0  ;;  %s3984_s21 = smov 0  }
   0x4 LB: > { %s443_s24 = sshll.u32 %s4624_s7, 4  ;;  %s3611_s25 = sadd.s32 4294967295, %s3890_s21   ;;  %s3890_s21 = sphi %s3984_s21, %s29_s21   ;;  %s444_s24 = int_to_ptr.hbm [resolvable:$true] %s443_s24 }
   0x5   : > { %p3613_p0 = scmp.ge.s32.totalorder %s3890_s21, 1  ;;  %p426_p1 = scmp.lt.s32.totalorder %s3890_s21, 3 }
   0x6   : > { %p3715_p2 = scmp.eq.s32.totalorder %s3611_s25, 0  ;;  %s3892_s27 = smov [#allocation2]  }
   0x7   : > { %p3995_p3 = pnand %p3613_p0, %p426_p1  ;;  %s445_s28 = sshll.u32 %s3892_s27, 4  ;;  %s446_s28 = int_to_ptr.vmem [resolvable:$true] %s445_s28 }
   0x8   : > { %s460_s0 = sshll.u32 %s4626_s9, 4  ;;  %s3893_s17 = smov [#allocation4]   ;;  %s461_s0 = int_to_ptr.hbm [resolvable:$true] %s460_s0 }
   0x9   : > { %p3708_p4 = pneg %p3995_p3  ;;  %s462_s18 = sshll.u32 %s3893_s17, 4  ;;  %s463_s18 = int_to_ptr.vmem [resolvable:$true] %s462_s18 }
   0xa   : > { %s3894_s19 = smov 512   ;;  %s3895_s20 = smov 32  }
   0xb   : > { %p3709_p5 = pnand %p3715_p2, %p3708_p4  ;;  %527 = sbr.rel (%p3995_p3) target bundleno = 2736 (0xab0), region = 80 }
   0xd   : > { %3711 = dma.hbm_to_vmem [thread:$0]  (!%p3709_p5), %s444_s24, 32768, %s446_s28, [#allocation3], %s3894_s19, %s3894_s19, %s3895_s20  }
   0xe   : > { %3714 = dma.hbm_to_vmem [thread:$0]  (!%p3709_p5), %s461_s0, 32768, %s463_s18, [#allocation5], %s3894_s19, %s3894_s19, %s3895_s20  }
  0x10   : > { %3881 = dma.done.wait (%p3715_p2), [#allocation3], 32768  }
  0x11   : > { %3883 = vsyncadd (%p3715_p2), [#allocation3], 4294934528 }
  0x12   : > { %3885 = dma.done.wait (%p3715_p2), [#allocation5], 32768  }
  0x13   : > { %3887 = vsyncadd (%p3715_p2), [#allocation5], 4294934528  ;;  %p600_p6 = scmp.lt.s32.totalorder %s3611_s25, 1  ;;  %v654_v0 = vld [vmem:[%s4622_s5 + $0xc0] sm:$0xff]  ;;  %v655_v2 = vld [vmem:[%s4622_s5 + $0xc8] sm:$0xff]  ;;  %s4636_s19 = sld [smem:[#allocation8_spill]] }
  0x14   : > { %v646_v1 = vld [vmem:[%s4622_s5 + $0x80] sm:$0xff]  ;;  %702 = vmatpush.msra.mxu0 %v654_v0  ;;  %728 = vmatpush.msra.mxu1 %v655_v2  ;;  %v647_v4 = vld [vmem:[%s4622_s5 + $0x88] sm:$0xff]  ;;  %v656_v6 = vld [vmem:[%s4622_s5 + $0xd0] sm:$0xff]  ;;  %vm680_vm0 = vcmask 261120   ;;  %v3896_v24 = vmov 0   ;;  %vm915_vm2 = vcmask 523264  }
  0x15   : > { %s4640_s25 = smov (!%p600_p6, %s3611_s25), 1  ;;  %v638_v3 = vld [vmem:[%s4622_s5 + $0x40] sm:$0xff]  ;;  %v639_v5 = vld [vmem:[%s4622_s5 + $0x48] sm:$0xff]  ;;  %v648_v7 = vld [vmem:[%s4622_s5 + $0x90] sm:$0xff]  ;;  %754 = vmatpush.msra.mxu2 %v656_v6  ;;  %3734 = vset.pattern.permute.xlu2 %v3896_v24  ;;  %s3897_s24 = smov 64   ;;  %vm943_vm7 = vcmask 64512  }
  0x16   : > { %s4014_s22 = sshll.u32 %s4640_s25, 3  ;;  %703 = vmatpush.msra.mxu0 %v646_v1  ;;  %v630_v8 = vld [vmem:[%s4622_s5] sm:$0xff]  ;;  %729 = vmatpush.msra.mxu1 %v647_v4  ;;  %v657_v9 = vld [vmem:[%s4622_s5 + $0xd8] sm:$0xff]  ;;  %v631_v11 = vld [vmem:[%s4622_s5 + $0x8] sm:$0xff] }
  0x17   : > { %780 = vmatpush.msra.mxu3 %v657_v9  ;;  %v649_v12 = vld [vmem:[%s4622_s5 + $0x98] sm:$0xff]  ;;  %755 = vmatpush.msra.mxu2 %v648_v7  ;;  %v640_v13 = vld [vmem:[%s4622_s5 + $0x50] sm:$0xff]  ;;  %v658_v15 = vld [vmem:[%s4622_s5 + $0xe0] sm:$0xff]  ;;  %s607_s29 = scalar_lea.vmem %s4618_s1, %s4014_s22  ;;  %s611_s26 = scalar_lea.vmem %s4619_s2, %s4014_s22 }
  0x18   : > { %704 = vmatpush.msra.mxu0 %v638_v3  ;;  %730 = vmatpush.msra.mxu1 %v639_v5  ;;  %v641_v14 = vld [vmem:[%s4622_s5 + $0x58] sm:$0xff]  ;;  %v632_v16 = vld [vmem:[%s4622_s5 + $0x10] sm:$0xff]  ;;  %v650_v18 = vld [vmem:[%s4622_s5 + $0xa0] sm:$0xff]  ;;  %s615_s30 = scalar_lea.vmem %s4620_s3, %s4014_s22  ;;  %s626_s27 = scalar_lea.vmem %s4633_s16, %s4014_s22 }
  0x19   : > { %s603_s20 = scalar_lea.vmem %s4636_s19, %s4014_s22  ;;  %781 = vmatpush.msra.mxu3 %v649_v12  ;;  %756 = vmatpush.msra.mxu2 %v640_v13  ;;  %v633_v17 = vld [vmem:[%s4622_s5 + $0x18] sm:$0xff]  ;;  %v642_v19 = vld [vmem:[%s4622_s5 + $0x60] sm:$0xff]  ;;  %v660_v31 = vld [vmem:[%s4622_s5 + $0xf0] sm:$0xff] }
  0x1a   : > { %v4050_v10 = vld [vmem:[%s603_s20] sm:$0xff]  ;;  %705 = vmatpush.msra.mxu0 %v630_v8  ;;  %731 = vmatpush.msra.mxu1 %v631_v11  ;;  %v652_v32 = vld [vmem:[%s4622_s5 + $0xb0] sm:$0xff]  ;;  %v659_v57 = vld [vmem:[%s4622_s5 + $0xe8] sm:$0xff]  ;;  %s622_s20 = scalar_lea.vmem %s4632_s15, %s4014_s22 }
  0x1b   : > { %3626 = vmatmul.msk.f32.vlgmr.msra.gmra.mxu0 %vm680_vm0, %v4050_v10  ;;  %3629 = vmatmul.msk.f32.vlgmr.msra.gmra.mxu1 %vm680_vm0, %v4050_v10  ;;  %v4089_v20 = vld [vmem:[%s607_s29] sm:$0xff]  ;;  %s618_s29 = scalar_lea.vmem %s4621_s4, %s4640_s25  ;;  %v644_v39 = vld [vmem:[%s4622_s5 + $0x70] sm:$0xff]  ;;  %v651_v58 = vld [vmem:[%s4622_s5 + $0xa8] sm:$0xff] }
  0x1c   : > { %782 = vmatpush.msra.mxu3 %v641_v14  ;;  %806 = vmatpush.msrb.mxu0 %v658_v15  ;;  %v634_v21 = vld [vmem:[%s4622_s5 + $0x20] sm:$0xff]  ;;  %v636_v42 = vld [vmem:[%s4622_s5 + $0x30] sm:$0xff]  ;;  %v643_v59 = vld [vmem:[%s4622_s5 + $0x68] sm:$0xff] }
  0x1d   : > { %757 = vmatpush.msra.mxu2 %v632_v16  ;;  %v4108_v22 = vld [vmem:[%s611_s26] sm:$0xff]  ;;  %3745 = vset.pattern.permute.xlu0 %v3896_v24  ;;  %v635_v61 = vld [vmem:[%s4622_s5 + $0x28] sm:$0xff] }
  0x1e   : > { %3632 = vmatmul.msk.f32.vlgmr.msra.gmra.mxu2 %vm680_vm0, %v4050_v10  ;;  %783 = vmatpush.msra.mxu3 %v633_v17  ;;  %v900_v23 = vld [vmem:[%s618_s29] sm:$0x1] }
  0x1f   : > { %3635 = vmatmul.msk.f32.vlgmr.msra.gmra.mxu3 %vm680_vm0, %v4050_v10  ;;  %807 = vmatpush.msrb.mxu0 %v650_v18  ;;  %vm901_vm1 = vcmp.gt.f32.partialorder %v900_v23, 0.5  ;;  %v4133_v27 = vld [vmem:[%s4623_s6] sm:$0xff] }
  0x20   : > { %v4128_v25 = vsel %vm901_vm1, 1, %v3896_v24  ;;  %v4136_v29 = vperm.slane %v4133_v27, 0  ;;  %v4139_v30 = vperm.slane %v4133_v27, 1  ;;  %858 = vmatpush.msrb.mxu2 %v660_v31  ;;  %v4163_v44 = vperm.slane %v4133_v27, 2  ;;  %v898_v55 = vld [vmem:[%s615_s30] sm:$0xff]  ;;  %832 = vmatpush.msrb.mxu1 %v659_v57 }
  0x21   : > { %808 = vmatpush.msrb.mxu0 %v642_v19  ;;  %v4166_v45 = vperm.slane %v4133_v27, 3  ;;  %vm899_vm3 = vcmp.gt.f32.partialorder %v898_v55, 0.5  ;;  %v908_v14 = vperm.slane %v4128_v25, 0  ;;  %v4235_v17 = vperm.slane %v4133_v27, 6 }
  0x22   : > { %859 = vmatpush.msrb.mxu2 %v652_v32  ;;  %v902_v56 = vsel %vm899_vm3, 1, %v3896_v24  ;;  %833 = vmatpush.msrb.mxu1 %v651_v58 }
  0x23   : > { %3627 = vmatmul.msk.f32.gmra.mxu0 %vm680_vm0, %v4089_v20  ;;  %3630 = vmatmul.msk.f32.gmra.mxu1 %vm680_vm0, %v4089_v20  ;;  %vm909_vm4 = vcmp.eq.s32.totalorder %v908_v14, 1 }
  0x24   : > { %809 = vmatpush.msrb.mxu0 %v634_v21  ;;  %860 = vmatpush.msrb.mxu2 %v644_v39 }
  0x25   : > { %834 = vmatpush.msrb.mxu1 %v643_v59 }
  0x26   : > { %3633 = vmatmul.msk.f32.gmra.mxu2 %vm680_vm0, %v4089_v20 }
  0x27   : > { %3636 = vmatmul.msk.f32.gmra.mxu3 %vm680_vm0, %v4089_v20  ;;  %861 = vmatpush.msrb.mxu2 %v636_v42 }
  0x28   : > { %835 = vmatpush.msrb.mxu1 %v635_v61 }
  0x2b   : > { %3628 = vmatmul.msk.f32.gmra.mxu0 %vm680_vm0, %v4108_v22  ;;  %3631 = vmatmul.msk.f32.gmra.mxu1 %vm680_vm0, %v4108_v22 }
  0x2e   : > { %3634 = vmatmul.msk.f32.gmra.mxu2 %vm680_vm0, %v4108_v22 }
  0x2f   : > { %3637 = vmatmul.msk.f32.gmra.mxu3 %vm680_vm0, %v4108_v22 }
  0x33   : > { %3638 = vmatmul.msk.f32.vlgmr.msrb.gmra.mxu0 %vm680_vm0, %v4050_v10  ;;  %3641 = vmatmul.msk.f32.vlgmr.msrb.gmra.mxu1 %vm680_vm0, %v4050_v10 }
  0x36   : > { %3644 = vmatmul.msk.f32.vlgmr.msrb.gmra.mxu2 %vm680_vm0, %v4050_v10 }
  0x3b   : > { %3639 = vmatmul.msk.f32.gmra.mxu0 %vm680_vm0, %v4089_v20  ;;  %3642 = vmatmul.msk.f32.gmra.mxu1 %vm680_vm0, %v4089_v20 }
  0x3e   : > { %3645 = vmatmul.msk.f32.gmra.mxu2 %vm680_vm0, %v4089_v20 }
  0x43   : > { %3640 = vmatmul.msk.f32.gmra.mxu0 %vm680_vm0, %v4108_v22  ;;  %3643 = vmatmul.msk.f32.gmra.mxu1 %vm680_vm0, %v4108_v22 }
  0x46   : > { %3646 = vmatmul.msk.f32.gmra.mxu2 %vm680_vm0, %v4108_v22 }
  0x98   : > { %v707_v26 = vpop.f32.mrf.mxu0  ;;  %v733_v28 = vpop.f32.mrf.mxu1 }
  0x99   : > { %v708_v33 = vadd.f32 %v707_v26, %v4136_v29  ;;  %v734_v43 = vadd.f32 %v733_v28, %v4139_v30 }
  0x9b   : > { %v911_v41 = vmul.f32 0.35355338, %v708_v33  ;;  %v912_v46 = vmul.f32 0.35355338, %v734_v43 }
  0xa0   : > { %v710_v34 = vpop.f32.mrf.mxu0  ;;  %v736_v36 = vpop.f32.mrf.mxu1 }
  0xa1   : > { %v711_v35 = vadd.f32 %v710_v34, %v4136_v29  ;;  %v737_v37 = vadd.f32 %v736_v36, %v4139_v30  ;;  %v759_v38 = vpop.f32.mrf.mxu2 }
  0xa2   : > { %v785_v40 = vpop.f32.mrf.mxu3  ;;  %v760_v51 = vadd.f32 %v759_v38, %v4163_v44 }
  0xa3   : > { %980 = vrot.lane.b32.xlu0 %v711_v35, %s3897_s24  ;;  %3650 = vmatpush.xpose.msk.msra.mxu0 %vm915_vm2, %v711_v35  ;;  %v786_v50 = vadd.f32 %v785_v40, %v4166_v45 }
  0xa4   : > { %1108 = vrot.lane.b32.xlu1 %v737_v37, %s3897_s24  ;;  %v913_v54 = vmul.f32 0.35355338, %v760_v51 }
  0xa5   : > { %v914_v53 = vmul.f32 0.35355338, %v786_v50 }
  0xa6   : > { %3651 = vmatmul.msk.f32.vlgmr.msra.gmra.mxu0 %vm915_vm2, %v911_v41 }
  0xa7   : > { %3656 = vmatpush.xpose.msk.msrb.mxu0 %vm915_vm2, %v737_v37 }
  0xa8   : > { %v713_v60 = vpop.f32.mrf.mxu0  ;;  %v739_v6 = vpop.f32.mrf.mxu1 }
  0xa9   : > { %v762_v47 = vpop.f32.mrf.mxu2  ;;  %v4206_v62 = vadd.f32 %v713_v60, %v4136_v29  ;;  %v4224_v8 = vadd.f32 %v739_v6, %v4139_v30 }
  0xaa   : > { %v763_v48 = vadd.f32 %v762_v47, %v4163_v44  ;;  %v788_v49 = vpop.f32.mrf.mxu3 }
  0xab   : > { %978 = vrot.lane.b32.xlu0 %v911_v41, %s3897_s24  ;;  %v789_v52 = vadd.f32 %v788_v49, %v4166_v45  ;;  %973 = vmatpush.msra.mxu1 %v4206_v62  ;;  %v3735_v9 = vpack.i.bf16 %v4224_v8, %v4206_v62  ;;  %v661_v62 = vld [vmem:[%s4622_s5 + $0xf8] sm:$0xff] }
  0xac   : > { %1106 = vrot.lane.b32.xlu1 %v912_v46, %s3897_s24  ;;  %1236 = vrot.lane.b32.xlu2 %v763_v48, %s3897_s24 }
  0xad   : > { %3662 = vmatpush.xpose.msk.msra.mxu0 %vm915_vm2, %v763_v48  ;;  %1101 = vmatpush.msrb.mxu1 %v4224_v8  ;;  %v653_v8 = vld [vmem:[%s4622_s5 + $0xb8] sm:$0xff] }
  0xae   : > { %3657 = vmatmul.msk.f32.vlgmr.msrb.gmra.mxu0 %vm915_vm2, %v912_v46  ;;  %884 = vmatpush.msrb.mxu3 %v661_v62  ;;  %v1697_v62 = vld [vmem:[#allocation2 + $0x7c0] sm:$0xff] }
  0xb0   : > { %v4211_v63 = vpop.f32.mrf.mxu0  ;;  %885 = vmatpush.msrb.mxu3 %v653_v8 }
  0xb1   : > { %3668 = vmatpush.xpose.msk.msrb.mxu0 %vm915_vm2, %v789_v52  ;;  %v765_v11 = vpop.f32.mrf.mxu2 }
  0xb3   : > { %1364 = vrot.lane.b32.xlu0 %v789_v52, %s3897_s24  ;;  %v4281_v52 = vadd.f32 %v765_v11, %v4163_v44 }
  0xb4   : > { %1362 = vrot.lane.b32.xlu1 %v914_v53, %s3897_s24  ;;  %1234 = vrot.lane.b32.xlu2 %v913_v54, %s3897_s24 }
  0xb6   : > { %3663 = vmatmul.msk.f32.vlgmr.msra.gmra.mxu0 %vm915_vm2, %v913_v54 }
  0xb8   : > { %v4217_v0 = vpop.f32.mrf.mxu0 }
  0xb9   : > { %v863_v21 = vpop.f32.mrf.mxu2 }
  0xba   : > { %v4246_v24 = vadd.f32 %v863_v21, %v4235_v17 }
  0xbc   : > { %904 = vperm.xlu2 %3734, %v902_v56  }
  0xbe   : > { %3669 = vmatmul.msk.f32.vlgmr.msrb.gmra.mxu0 %vm915_vm2, %v914_v53 }
  0xc0   : > { %v4221_v4 = vpop.f32.mrf.mxu0 }
  0xc1   : > { %v4252_v28 = vpop.f32.mrf.mxu2 }
  0xc9   : > { %v4254_v29 = vpop.f32.mrf.mxu2 }
 0x106   : > { %v1237_v1 = vpop.permute.xlu2 %1236 }
 0x10e   : > { %v1235_v5 = vpop.permute.xlu2 %1234 }
 0x115   : > { %v981_v2 = vpop.permute.xlu0 %980 }
 0x116   : > { %3653 = vmatpush.xpose.msk.msra.mxu2 %vm915_vm2, %v981_v2  ;;  %v1109_v3 = vpop.permute.xlu1 %1108  ;;  %v905_v15 = vpop.permute.xlu2 %904 }
 0x117   : > { %vm906_vm5 = vcmp.eq.s32.totalorder %v905_v15, 1 }
 0x118   : > { %vm4237_vm6 = vmand %vm906_vm5, %vm909_vm4 }
 0x11a   : > { %3659 = vmatpush.xpose.msk.msrb.mxu2 %vm915_vm2, %v1109_v3 }
 0x11d   : > { %v979_v7 = vpop.permute.xlu0 %978 }
 0x11e   : > { %3654 = vmatmul.msk.f32.vlgmr.msra.gmra.mxu2 %vm915_vm2, %v979_v7  ;;  %v1107_v13 = vpop.permute.xlu1 %1106 }
 0x11f   : > { %3665 = vmatpush.xpose.msk.msra.mxu2 %vm915_vm2, %v1237_v1 }
 0x123   : > { %v939_v12 = vpop.f32.mrf.mxu0 }
 0x124   : > { %v4261_v33 = vsel %vm4237_vm6, %v939_v12, 1e-09 }
 0x125   : > { %v1365_v16 = vpop.permute.xlu0 %1364  ;;  %v944_v37 = vsel %vm943_vm7, %v4261_v33, -inf }
 0x126   : > { %3660 = vmatmul.msk.f32.vlgmr.msrb.gmra.mxu2 %vm915_vm2, %v1107_v13  ;;  %v1363_v26 = vpop.permute.xlu1 %1362 }
 0x127   : > { %3671 = vmatpush.xpose.msk.msrb.mxu2 %vm915_vm2, %v1365_v16 }
 0x12b   : > { %v1068_v19 = vpop.f32.mrf.mxu0 }
 0x12c   : > { %v4243_v23 = vsel %vm4237_vm6, %v1068_v19, 1e-09 }
 0x12d   : > { %v1072_v25 = vsel %vm943_vm7, %v4243_v23, -inf }
 0x12e   : > { %3666 = vmatmul.msk.f32.vlgmr.msra.gmra.mxu2 %vm915_vm2, %v1235_v5  ;;  %1073 = vmax.xlane.f32.xlu2 %v1072_v25 }
 0x133   : > { %v1196_v43 = vpop.f32.mrf.mxu0 }
 0x134   : > { %v1199_v47 = vsel %vm4237_vm6, %v1196_v43, 1e-09  ;;  %v645_v43 = vld [vmem:[%s4622_s5 + $0x78] sm:$0xff] }
 0x135   : > { %v1200_v48 = vsel %vm943_vm7, %v1199_v47, -inf  ;;  %886 = vmatpush.msrb.mxu3 %v645_v43  ;;  %v1681_v43 = vld [vmem:[#allocation2 + $0x740] sm:$0xff] }
 0x136   : > { %3672 = vmatmul.msk.f32.vlgmr.msrb.gmra.mxu2 %vm915_vm2, %v1363_v26 }
 0x13b   : > { %v1324_v49 = vpop.f32.mrf.mxu0 }
 0x13c   : > { %v1327_v50 = vsel %vm4237_vm6, %v1324_v49, 1e-09 }
 0x13d   : > { %v1328_v51 = vsel %vm943_vm7, %v1327_v50, -inf }
 0x1a1   : > { %v1003_v30 = vpop.f32.mrf.mxu2  ;;  %v1074_v56 = vpop.xlane.xlu2 %1073 }
 0x1a2   : > { %v1006_v31 = vsel %vm4237_vm6, %v1003_v30, 1e-09  ;;  %v791_v30 = vpop.f32.mrf.mxu3 }
 0x1a3   : > { %v1007_v32 = vsel %vm943_vm7, %v1006_v31, -inf }
 0x1a4   : > { %1008 = vmax.xlane.f32.xlu0 %v1007_v32 }
 0x1a9   : > { %v1131_v34 = vpop.f32.mrf.mxu2 }
 0x1aa   : > { %v1134_v35 = vsel %vm4237_vm6, %v1131_v34, 1e-09 }
 0x1ab   : > { %v1135_v36 = vsel %vm943_vm7, %v1134_v35, -inf }
 0x1ac   : > { %1136 = vmax.xlane.f32.xlu1 %v1135_v36  ;;  %945 = vmax.xlane.f32.xlu0 %v944_v37 }
 0x1b1   : > { %v1259_v38 = vpop.f32.mrf.mxu2 }
 0x1b2   : > { %v1262_v39 = vsel %vm4237_vm6, %v1259_v38, 1e-09 }
 0x1b3   : > { %v1263_v40 = vsel %vm943_vm7, %v1262_v39, -inf }
 0x1b4   : > { %1264 = vmax.xlane.f32.xlu2 %v1263_v40 }
 0x1b9   : > { %v1387_v41 = vpop.f32.mrf.mxu2 }
 0x1ba   : > { %v1390_v42 = vsel %vm4237_vm6, %v1387_v41, 1e-09 }
 0x1bb   : > { %v1391_v46 = vsel %vm943_vm7, %v1390_v42, -inf }
 0x1bc   : > { %1392 = vmax.xlane.f32.xlu2 %v1391_v46 }
 0x1c4   : > { %1201 = vmax.xlane.f32.xlu2 %v1200_v48 }
 0x1cc   : > { %1329 = vmax.xlane.f32.xlu2 %v1328_v51 }
 0x1e4   : > { %1275 = vrot.lane.b32.xlu2 %v4281_v52, %s3897_s24 }
 0x217   : > { %v1009_v53 = vpop.xlane.xlu0 %1008 }
 0x218   : > { %v1010_v54 = vsub.f32 %v1006_v31, %v1009_v53  ;;  %v4310_v31 = vadd.f32 %v791_v30, %v4166_v45 }
 0x21a   : > { %v1011_v55 = vmul.f32 1.442695, %v1010_v54 }
 0x21c   : > { %3746 = vpow2.f32 %v1011_v55 }
 0x21f   : > { %v1137_v57 = vpop.xlane.xlu1 %1136  ;;  %v946_v32 = vpop.xlane.xlu0 %945 }
 0x220   : > { %v1138_v58 = vsub.f32 %v1134_v35, %v1137_v57  ;;  %v947_v34 = vsub.f32 %v4261_v33, %v946_v32  ;;  %v1075_v33 = vsub.f32 %v4243_v23, %v1074_v56  ;;  %v637_v23 = vld [vmem:[%s4622_s5 + $0x38] sm:$0xff] }
 0x221   : > { %887 = vmatpush.msrb.mxu3 %v637_v23  ;;  %v1677_v23 = vld [vmem:[#allocation2 + $0x720] sm:$0xff] }
 0x222   : > { %v4285_v59 = vpop.eup %3746  ;;  %v1139_v60 = vmul.f32 1.442695, %v1138_v58  ;;  %v948_v35 = vmul.f32 1.442695, %v947_v34  ;;  %v1076_v40 = vmul.f32 1.442695, %v1075_v33  ;;  %3647 = vmatmul.msk.f32.vlgmr.msrb.gmra.mxu3 %vm680_vm0, %v4050_v10 }
 0x223   : > { %v1013_v61 = vsel %vm943_vm7, %v4285_v59, 0.0  ;;  %v1509_v34 = vld [vmem:[#allocation2 + $0x1e0] sm:$0xff]  ;;  %v4372_v33 = vperm.slane %v4133_v27, 4 }
 0x224   : > { %3748 = vpow2.f32 %v1139_v60  ;;  %1014 = vadd.xlane.f32.xlu1 %v1013_v61  ;;  %1717 = vmatpush.msra.mxu0 %v1509_v34  ;;  %v1510_v34 = vld [vmem:[#allocation2 + $0x1e8] sm:$0xff] }
 0x227   : > { %v1265_v44 = vpop.xlane.xlu2 %1264 }
 0x228   : > { %v1266_v1 = vsub.f32 %v1262_v39, %v1265_v44 }
 0x22a   : > { %v4289_v2 = vpop.eup %3748  ;;  %v1267_v3 = vmul.f32 1.442695, %v1266_v1  ;;  %3648 = vmatmul.msk.f32.gmra.mxu3 %vm680_vm0, %v4089_v20 }
 0x22b   : > { %v1141_v5 = vsel %vm943_vm7, %v4289_v2, 0.0 }
 0x22c   : > { %3750 = vpow2.f32 %v1267_v3  ;;  %1142 = vadd.xlane.f32.xlu0 %v1141_v5 }
 0x22f   : > { %v1393_v6 = vpop.xlane.xlu2 %1392 }
 0x230   : > { %v1394_v7 = vsub.f32 %v1390_v42, %v1393_v6 }
 0x232   : > { %v4293_v11 = vpop.eup %3750  ;;  %v1395_v12 = vmul.f32 1.442695, %v1394_v7  ;;  %3649 = vmatmul.msk.f32.gmra.mxu3 %vm680_vm0, %v4108_v22 }
 0x233   : > { %v1269_v13 = vsel %vm943_vm7, %v4293_v11, 0.0 }
 0x234   : > { %3752 = vpow2.f32 %v1395_v12  ;;  %1270 = vadd.xlane.f32.xlu0 %v1269_v13 }
 0x237   : > { %v1202_v14 = vpop.xlane.xlu2 %1201 }
 0x238   : > { %v1203_v15 = vsub.f32 %v1199_v47, %v1202_v14 }
 0x23a   : > { %v4297_v16 = vpop.eup %3752  ;;  %v1204_v19 = vmul.f32 1.442695, %v1203_v15 }
 0x23b   : > { %v1397_v21 = vsel %vm943_vm7, %v4297_v16, 0.0 }
 0x23c   : > { %3754 = vpow2.f32 %v1204_v19  ;;  %1398 = vadd.xlane.f32.xlu0 %v1397_v21 }
 0x23d   : > { %3736 = vrot.lane.b32.xlu1 %v3735_v9, %s3897_s24  ;;  %3756 = vpow2.f32 %v948_v35  ;;  %v1701_v35 = vld [vmem:[#allocation2 + $0x7e0] sm:$0xff] }
 0x23f   : > { %v1330_v36 = vpop.xlane.xlu2 %1329 }
 0x240   : > { %v1331_v45 = vsub.f32 %v1327_v50, %v1330_v36  ;;  %v1505_v36 = vld [vmem:[#allocation2 + $0x1c0] sm:$0xff] }
 0x241   : > { %1718 = vmatpush.msra.mxu0 %v1505_v36  ;;  %v1702_v36 = vld [vmem:[#allocation2 + $0x7e8] sm:$0xff] }
 0x242   : > { %v4305_v25 = vpop.eup %3754  ;;  %v1332_v9 = vmul.f32 1.442695, %v1331_v45  ;;  %v1501_v45 = vld [vmem:[#allocation2 + $0x1a0] sm:$0xff] }
 0x243   : > { %v1206_v26 = vsel %vm943_vm7, %v4305_v25, 0.0  ;;  %v3757_v37 = vpop.eup %3756  ;;  %1719 = vmatpush.msra.mxu0 %v1501_v45  ;;  %v1506_v45 = vld [vmem:[#allocation2 + $0x1c8] sm:$0xff] }
 0x244   : > { %1207 = vadd.xlane.f32.xlu2 %v1206_v26  ;;  %3758 = vpow2.f32 %v1332_v9  ;;  %v950_v38 = vsel %vm943_vm7, %v3757_v37, 0.0  ;;  %v1693_v9 = vld [vmem:[#allocation2 + $0x7a0] sm:$0xff] }
 0x245   : > { %3760 = vpow2.f32 %v1076_v40  ;;  %v1685_v40 = vld [vmem:[#allocation2 + $0x760] sm:$0xff] }
 0x247   : > { %v1276_v10 = vpop.permute.xlu2 %1275 }
 0x24a   : > { %v4323_v39 = vpop.eup %3758 }
 0x24b   : > { %v1334_v41 = vsel %vm943_vm7, %v4323_v39, 0.0  ;;  %v3761_v42 = vpop.eup %3760 }
 0x24c   : > { %v1078_v46 = vsel %vm943_vm7, %v3761_v42, 0.0 }
 0x250   : > { %1403 = vrot.lane.b32.xlu0 %v4310_v31, %s3897_s24 }
 0x267   : > { %951 = vadd.xlane.f32.xlu1 %v950_v38  ;;  %v1689_v38 = vld [vmem:[#allocation2 + $0x780] sm:$0xff] }
 0x26f   : > { %1335 = vadd.xlane.f32.xlu1 %v1334_v41  ;;  %v1489_v41 = vld [vmem:[#allocation2 + $0x140] sm:$0xff] }
 0x27a   : > { %1079 = vadd.xlane.f32.xlu0 %v1078_v46  ;;  %v1485_v46 = vld [vmem:[#allocation2 + $0x120] sm:$0xff] }
 0x297   : > { %v1015_v47 = vpop.xlane.xlu1 %1014 }
 0x298   : > { %3762 = vrcp.f32 %v1015_v47  ;;  %v837_v47 = vpop.f32.mrf.mxu1 }
 0x29e   : > { %v3763_v49 = vpop.eup %3762 }
 0x29f   : > { %v1143_v48 = vpop.xlane.xlu0 %1142  ;;  %v1017_v55 = vmul.f32 %v3763_v49, %v4285_v59  ;;  %v812_v49 = vadd.f32 %v4211_v63, %v4372_v33  ;;  %v1469_v63 = vld [vmem:[#allocation2 + $0xa0] sm:$0xff] }
 0x2a0   : > { %3764 = vrcp.f32 %v1143_v48  ;;  %v1481_v48 = vld [vmem:[#allocation2 + $0x100] sm:$0xff] }
 0x2a5   : > { %v4354_v14 = vpop.f32.mrf.mxu3 }
 0x2a6   : > { %v3765_v20 = vpop.eup %3764 }
 0x2a7   : > { %v1271_v51 = vpop.xlane.xlu0 %1270  ;;  %v1145_v22 = vmul.f32 %v3765_v20, %v4289_v2  ;;  %v1665_v20 = vld [vmem:[#allocation2 + $0x6c0] sm:$0xff] }
 0x2a8   : > { %3766 = vrcp.f32 %v1271_v51  ;;  %v1637_v51 = vld [vmem:[#allocation2 + $0x5e0] sm:$0xff] }
 0x2a9   : > { %1757 = vmatpush.msra.mxu2 %v1637_v51  ;;  %v4401_v51 = vadd.f32 %v4252_v28, %v4235_v17 }
 0x2ad   : > { %v892_v19 = vpop.f32.mrf.mxu3 }
 0x2ae   : > { %v3767_v57 = vpop.eup %3766 }
 0x2af   : > { %v3737_v50 = vpop.permute.xlu1 %3736  ;;  %v1399_v56 = vpop.xlane.xlu0 %1398  ;;  %v1273_v58 = vmul.f32 %v3767_v57, %v4293_v11  ;;  %v1465_v57 = vld [vmem:[#allocation2 + $0x80] sm:$0xff] }
 0x2b0   : > { %v3739_v53 = vunpack.i.h.bf16 %v3737_v50  ;;  %v3738_v54 = vunpack.i.l.bf16 %v3737_v50  ;;  %3768 = vrcp.f32 %v1399_v56  ;;  %v1673_v50 = vld [vmem:[#allocation2 + $0x700] sm:$0xff] }
 0x2b1   : > { %v1661_v56 = vld [vmem:[#allocation2 + $0x6a0] sm:$0xff] }
 0x2b2   : > { %1040 = vmatpush.msra.mxu3 %v3738_v54  ;;  %v4382_v54 = vmul.f32 0.35355338, %v812_v49  ;;  %v1494_v49 = vld [vmem:[#allocation2 + $0x168] sm:$0xff] }
 0x2b3   : > { %3655 = vmatmul.msk.f32.vlgmr.msra.gmra.mxu3 %vm943_vm7, %v1017_v55  ;;  %v1473_v55 = vld [vmem:[#allocation2 + $0xc0] sm:$0xff] }
 0x2b4   : > { %1168 = vmatpush.msrb.mxu3 %v3739_v53  ;;  %v1669_v53 = vld [vmem:[#allocation2 + $0x6e0] sm:$0xff] }
 0x2b5   : > { %v895_v26 = vpop.f32.mrf.mxu3 }
 0x2b6   : > { %1296 = vmatpush.msra.mxu3 %v1276_v10  ;;  %v3769_v59 = vpop.eup %3768  ;;  %v1633_v10 = vld [vmem:[#allocation2 + $0x5c0] sm:$0xff] }
 0x2b7   : > { %v1401_v61 = vmul.f32 %v3769_v59, %v4297_v16  ;;  %v1208_v5 = vpop.xlane.xlu2 %1207  ;;  %v4358_v16 = vperm.slane %v4133_v27, 7  ;;  %1758 = vmatpush.msra.mxu2 %v1633_v10  ;;  %v1657_v59 = vld [vmem:[#allocation2 + $0x680] sm:$0xff]  ;;  %v1682_v10 = vld [vmem:[#allocation2 + $0x748] sm:$0xff] }
 0x2b9   : > { %v4362_v21 = vadd.f32 %v892_v19, %v4358_v16  ;;  %v4365_v30 = vadd.f32 %v895_v26, %v4358_v16  ;;  %v1645_v19 = vld [vmem:[#allocation2 + $0x620] sm:$0xff]  ;;  %v890_v28 = vadd.f32 %v4354_v14, %v4358_v16  ;;  %v1670_v14 = vld [vmem:[#allocation2 + $0x6e8] sm:$0xff] }
 0x2ba   : > { %v1449_v26 = vld [vmem:[#allocation2] sm:$0xff] }
 0x2bb   : > { %3661 = vmatmul.msk.f32.vlgmr.msrb.gmra.mxu3 %vm943_vm7, %v1145_v22  ;;  %v1629_v22 = vld [vmem:[#allocation2 + $0x5a0] sm:$0xff] }
 0x2bc   : > { %1759 = vmatpush.msra.mxu2 %v1629_v22  ;;  %v1486_v22 = vld [vmem:[#allocation2 + $0x128] sm:$0xff]  ;;  %v1525_v16 = vld [vmem:[#allocation2 + $0x260] sm:$0xff] }
 0x2c2   : > { %v1404_v60 = vpop.permute.xlu0 %1403 }
 0x2c3   : > { %3667 = vmatmul.msk.f32.vlgmr.msra.gmra.mxu3 %vm943_vm7, %v1273_v58  ;;  %v4387_v58 = vperm.slane %v4133_v27, 5  ;;  %v1457_v27 = vld [vmem:[#allocation2 + $0x40] sm:$0xff] }
 0x2c4   : > { %1424 = vmatpush.msrb.mxu3 %v1404_v60  ;;  %v1625_v60 = vld [vmem:[#allocation2 + $0x580] sm:$0xff] }
 0x2c5   : > { %1760 = vmatpush.msra.mxu2 %v1625_v60  ;;  %v1581_v60 = vld [vmem:[#allocation2 + $0x420] sm:$0xff] }
 0x2c6   : > { %1777 = vmatpush.msra.mxu3 %v1701_v35 }
 0x2c8   : > { %1778 = vmatpush.msra.mxu3 %v1697_v62  ;;  %v1557_v62 = vld [vmem:[#allocation2 + $0x360] sm:$0xff] }
 0x2ca   : > { %1779 = vmatpush.msra.mxu3 %v1693_v9  ;;  %v1698_v9 = vld [vmem:[#allocation2 + $0x7c8] sm:$0xff] }
 0x2cb   : > { %3673 = vmatmul.msk.f32.vlgmr.msrb.gmra.mxu3 %vm943_vm7, %v1401_v61  ;;  %v840_v61 = vpop.f32.mrf.mxu1 }
 0x2cc   : > { %1780 = vmatpush.msra.mxu3 %v1689_v38  ;;  %v1601_v38 = vld [vmem:[#allocation2 + $0x4c0] sm:$0xff] }
 0x2ce   : > { %1781 = vmatpush.msra.mxu3 %v1685_v40  ;;  %v1694_v40 = vld [vmem:[#allocation2 + $0x7a8] sm:$0xff] }
 0x2d0   : > { %1782 = vmatpush.msra.mxu3 %v1681_v43  ;;  %v1597_v43 = vld [vmem:[#allocation2 + $0x4a0] sm:$0xff] }
 0x2d2   : > { %1783 = vmatpush.msra.mxu3 %v1677_v23  ;;  %v1690_v23 = vld [vmem:[#allocation2 + $0x788] sm:$0xff] }
 0x2d4   : > { %1784 = vmatpush.msra.mxu3 %v1673_v50  ;;  %v1686_v50 = vld [vmem:[#allocation2 + $0x768] sm:$0xff] }
 0x2d6   : > { %1785 = vmatpush.msra.mxu3 %v1669_v53  ;;  %v1589_v53 = vld [vmem:[#allocation2 + $0x460] sm:$0xff] }
 0x2d8   : > { %1786 = vmatpush.msra.mxu3 %v1665_v20  ;;  %v1537_v20 = vld [vmem:[#allocation2 + $0x2c0] sm:$0xff] }
 0x2da   : > { %v952_v44 = vpop.xlane.xlu1 %951  ;;  %1787 = vmatpush.msra.mxu3 %v1661_v56  ;;  %v1678_v56 = vld [vmem:[#allocation2 + $0x728] sm:$0xff] }
 0x2db   : > { %3770 = vrcp.f32 %v952_v44  ;;  %v4390_v44 = vadd.f32 %v840_v61, %v4387_v58  ;;  %v1674_v61 = vld [vmem:[#allocation2 + $0x708] sm:$0xff] }
 0x2dc   : > { %1788 = vmatpush.msra.mxu3 %v1657_v59  ;;  %v1482_v59 = vld [vmem:[#allocation2 + $0x108] sm:$0xff] }
 0x2e1   : > { %v3771_v1 = vpop.eup %3770 }
 0x2e2   : > { %v954_v2 = vmul.f32 %v3771_v1, %v3757_v37  ;;  %v1336_v11 = vpop.xlane.xlu1 %1335  ;;  %v1497_v37 = vld [vmem:[#allocation2 + $0x180] sm:$0xff] }
 0x2e3   : > { %1720 = vmatpush.msra.mxu0 %v1497_v37  ;;  %v1461_v1 = vld [vmem:[#allocation2 + $0x60] sm:$0xff] }
 0x2e4   : > { %3652 = vmatmul.msk.f32.vlgmr.msra.gmra.mxu1 %vm943_vm7, %v954_v2  ;;  %v1573_v2 = vld [vmem:[#allocation2 + $0x3e0] sm:$0xff] }
 0x2e5   : > { %1229 = vmatpush.msra.mxu1 %v4281_v52  ;;  %v1553_v37 = vld [vmem:[#allocation2 + $0x340] sm:$0xff] }
 0x2ed   : > { %v1080_v3 = vpop.xlane.xlu0 %1079 }
 0x2ee   : > { %3772 = vrcp.f32 %v1080_v3  ;;  %v1621_v3 = vld [vmem:[#allocation2 + $0x560] sm:$0xff] }
 0x2ef   : > { %3774 = vrcp.f32 %v1208_v5  ;;  %v1653_v5 = vld [vmem:[#allocation2 + $0x660] sm:$0xff]  ;;  %1761 = vmatpush.msra.mxu2 %v1621_v3  ;;  %v1478_v3 = vld [vmem:[#allocation2 + $0xe8] sm:$0xff] }
 0x2f0   : > { %3776 = vrcp.f32 %v1336_v11  ;;  %1789 = vmatpush.msra.mxu3 %v1653_v5  ;;  %v1649_v11 = vld [vmem:[#allocation2 + $0x640] sm:$0xff]  ;;  %v1638_v5 = vld [vmem:[#allocation2 + $0x5e8] sm:$0xff] }
 0x2f2   : > { %1790 = vmatpush.msra.mxu3 %v1649_v11  ;;  %v1666_v11 = vld [vmem:[#allocation2 + $0x6c8] sm:$0xff] }
 0x2f4   : > { %v3773_v6 = vpop.eup %3772  ;;  %1791 = vmatpush.msra.mxu3 %v1645_v19  ;;  %v1517_v19 = vld [vmem:[#allocation2 + $0x220] sm:$0xff] }
 0x2f5   : > { %v1082_v7 = vmul.f32 %v3773_v6, %v3761_v42  ;;  %v3775_v12 = vpop.eup %3774  ;;  %v4376_v42 = vadd.f32 %v4217_v0, %v4372_v33  ;;  %v1477_v0 = vld [vmem:[#allocation2 + $0xe0] sm:$0xff] }
 0x2f6   : > { %v1210_v13 = vmul.f32 %v3775_v12, %v4305_v25  ;;  %v3777_v52 = vpop.eup %3776  ;;  %v1569_v6 = vld [vmem:[#allocation2 + $0x3c0] sm:$0xff] }
 0x2f7   : > { %3658 = vmatmul.msk.f32.vlgmr.msrb.gmra.mxu1 %vm943_vm7, %v1082_v7  ;;  %v1338_v15 = vmul.f32 %v3777_v52, %v4323_v39  ;;  %v1493_v39 = vld [vmem:[#allocation2 + $0x160] sm:$0xff] }
 0x2f8   : > { %1357 = vmatpush.msrb.mxu1 %v4310_v31  ;;  %1721 = vmatpush.msra.mxu0 %v1493_v39  ;;  %v1617_v7 = vld [vmem:[#allocation2 + $0x540] sm:$0xff]  ;;  %v1502_v39 = vld [vmem:[#allocation2 + $0x1a8] sm:$0xff] }
 0x2f9   : > { %v1453_v12 = vld [vmem:[#allocation2 + $0x20] sm:$0xff]  ;;  %1762 = vmatpush.msra.mxu2 %v1617_v7  ;;  %v1634_v7 = vld [vmem:[#allocation2 + $0x5c8] sm:$0xff] }
 0x2fa   : > { %1722 = vmatpush.msra.mxu0 %v1489_v41  ;;  %v1565_v52 = vld [vmem:[#allocation2 + $0x3a0] sm:$0xff] }
 0x2fb   : > { %v1549_v41 = vld [vmem:[#allocation2 + $0x320] sm:$0xff] }
 0x2fc   : > { %1723 = vmatpush.msra.mxu0 %v1485_v46  ;;  %v1498_v46 = vld [vmem:[#allocation2 + $0x188] sm:$0xff] }
 0x2fe   : > { %1724 = vmatpush.msra.mxu0 %v1481_v48  ;;  %v1593_v48 = vld [vmem:[#allocation2 + $0x480] sm:$0xff] }
 0x2ff   : > { %3664 = vmatmul.msk.f32.vlgmr.msra.gmra.mxu1 %vm943_vm7, %v1210_v13  ;;  %v838_v13 = vadd.f32 %v837_v47, %v4387_v58  ;;  %v1545_v47 = vld [vmem:[#allocation2 + $0x300] sm:$0xff] }
 0x300   : > { %1725 = vmatpush.msra.mxu0 %v1477_v0  ;;  %1737 = vmatpush.msra.mxu1 %v1573_v2  ;;  %v1541_v0 = vld [vmem:[#allocation2 + $0x2e0] sm:$0xff] }
 0x301   : > { %v4395_v35 = vmul.f32 0.35355338, %v838_v13  ;;  %v1577_v2 = vld [vmem:[#allocation2 + $0x400] sm:$0xff]  ;;  %v1470_v13 = vld [vmem:[#allocation2 + $0xa8] sm:$0xff] }
 0x302   : > { %1726 = vmatpush.msra.mxu0 %v1473_v55  ;;  %1738 = vmatpush.msra.mxu1 %v1569_v6  ;;  %v1490_v55 = vld [vmem:[#allocation2 + $0x148] sm:$0xff] }
 0x303   : > { %v1474_v6 = vld [vmem:[#allocation2 + $0xc8] sm:$0xff] }
 0x304   : > { %1727 = vmatpush.msra.mxu0 %v1469_v63  ;;  %1739 = vmatpush.msra.mxu1 %v1565_v52  ;;  %v1585_v63 = vld [vmem:[#allocation2 + $0x440] sm:$0xff]  ;;  %v1630_v52 = vld [vmem:[#allocation2 + $0x5a8] sm:$0xff] }
 0x306   : > { %1728 = vmatpush.msra.mxu0 %v1465_v57  ;;  %v1533_v57 = vld [vmem:[#allocation2 + $0x2a0] sm:$0xff] }
 0x307   : > { %3670 = vmatmul.msk.f32.vlgmr.msrb.gmra.mxu1 %vm943_vm7, %v1338_v15  ;;  %v1613_v15 = vld [vmem:[#allocation2 + $0x520] sm:$0xff] }
 0x308   : > { %1729 = vmatpush.msra.mxu0 %v1461_v1  ;;  %1763 = vmatpush.msra.mxu2 %v1613_v15  ;;  %v1529_v1 = vld [vmem:[#allocation2 + $0x280] sm:$0xff]  ;;  %v1662_v15 = vld [vmem:[#allocation2 + $0x6a8] sm:$0xff] }
 0x30a   : > { %1730 = vmatpush.msra.mxu0 %v1457_v27  ;;  %v4407_v27 = vmul.f32 0.35355338, %v890_v28  ;;  %v1542_v28 = vld [vmem:[#allocation2 + $0x2e8] sm:$0xff] }
 0x30c   : > { %1731 = vmatpush.msra.mxu0 %v1453_v12  ;;  %v1521_v12 = vld [vmem:[#allocation2 + $0x240] sm:$0xff] }
 0x30e   : > { %1732 = vmatpush.msra.mxu0 %v1449_v26  ;;  %v1466_v26 = vld [vmem:[#allocation2 + $0x88] sm:$0xff] }
 0x310   : > { %1797 = vmatpush.msrb.mxu0 %v1510_v34  ;;  %v4411_v34 = vpop.f32.mrf.mxu1 }
 0x312   : > { %1798 = vmatpush.msrb.mxu0 %v1506_v45  ;;  %v1654_v45 = vld [vmem:[#allocation2 + $0x668] sm:$0xff] }
 0x314   : > { %1799 = vmatpush.msrb.mxu0 %v1502_v39  ;;  %v1650_v39 = vld [vmem:[#allocation2 + $0x648] sm:$0xff] }
 0x316   : > { %1800 = vmatpush.msrb.mxu0 %v1498_v46  ;;  %v1646_v46 = vld [vmem:[#allocation2 + $0x628] sm:$0xff] }
 0x318   : > { %1801 = vmatpush.msrb.mxu0 %v1494_v49  ;;  %v1642_v49 = vld [vmem:[#allocation2 + $0x608] sm:$0xff] }
 0x31a   : > { %1802 = vmatpush.msrb.mxu0 %v1490_v55  ;;  %v1554_v55 = vld [vmem:[#allocation2 + $0x348] sm:$0xff] }
 0x31c   : > { %1803 = vmatpush.msrb.mxu0 %v1486_v22  ;;  %v1546_v22 = vld [vmem:[#allocation2 + $0x308] sm:$0xff] }
 0x31e   : > { %1804 = vmatpush.msrb.mxu0 %v1482_v59  ;;  %v1538_v59 = vld [vmem:[#allocation2 + $0x2c8] sm:$0xff] }
 0x320   : > { %1805 = vmatpush.msrb.mxu0 %v1478_v3  ;;  %v1530_v3 = vld [vmem:[#allocation2 + $0x288] sm:$0xff] }
 0x322   : > { %1806 = vmatpush.msrb.mxu0 %v1474_v6  ;;  %v1522_v6 = vld [vmem:[#allocation2 + $0x248] sm:$0xff] }
 0x324   : > { %1807 = vmatpush.msrb.mxu0 %v1470_v13 }
 0x326   : > { %1808 = vmatpush.msrb.mxu0 %v1466_v26 }
 0x336   : > { %v1042_v25 = vpop.f32.mrf.mxu3 }
 0x337   : > { %1430 = vrot.lane.b32.xlu0 %v1042_v25, %s3897_s24  ;;  %v1561_v25 = vld [vmem:[#allocation2 + $0x380] sm:$0xff] }
 0x338   : > { %1740 = vmatpush.msra.mxu1 %v1561_v25  ;;  %v1626_v25 = vld [vmem:[#allocation2 + $0x588] sm:$0xff] }
 0x33a   : > { %1741 = vmatpush.msra.mxu1 %v1557_v62  ;;  %v1574_v62 = vld [vmem:[#allocation2 + $0x3e8] sm:$0xff] }
 0x33c   : > { %1742 = vmatpush.msra.mxu1 %v1553_v37  ;;  %v1570_v37 = vld [vmem:[#allocation2 + $0x3c8] sm:$0xff] }
 0x33e   : > { %v1170_v31 = vpop.f32.mrf.mxu3  ;;  %1743 = vmatpush.msra.mxu1 %v1549_v41  ;;  %v1566_v41 = vld [vmem:[#allocation2 + $0x3a8] sm:$0xff] }
 0x340   : > { %1744 = vmatpush.msra.mxu1 %v1545_v47  ;;  %v1562_v47 = vld [vmem:[#allocation2 + $0x388] sm:$0xff] }
 0x342   : > { %1745 = vmatpush.msra.mxu1 %v1541_v0  ;;  %v1558_v0 = vld [vmem:[#allocation2 + $0x368] sm:$0xff] }
 0x344   : > { %1746 = vmatpush.msra.mxu1 %v1537_v20  ;;  %v1550_v20 = vld [vmem:[#allocation2 + $0x328] sm:$0xff] }
 0x346   : > { %v1298_v32 = vpop.f32.mrf.mxu3  ;;  %1747 = vmatpush.msra.mxu1 %v1533_v57 }
 0x347   : > { %1438 = vrot.lane.b32.xlu1 %v1298_v32, %s3897_s24  ;;  %v1641_v32 = vld [vmem:[#allocation2 + $0x600] sm:$0xff] }
 0x348   : > { %1792 = vmatpush.msra.mxu3 %v1641_v32  ;;  %1748 = vmatpush.msra.mxu1 %v1529_v1  ;;  %v1513_v32 = vld [vmem:[#allocation2 + $0x200] sm:$0xff]  ;;  %v1534_v1 = vld [vmem:[#allocation2 + $0x2a8] sm:$0xff] }
 0x34a   : > { %1857 = vmatpush.msrb.mxu3 %v1702_v36  ;;  %1749 = vmatpush.msra.mxu1 %v1525_v16  ;;  %v1462_v36 = vld [vmem:[#allocation2 + $0x68] sm:$0xff] }
 0x34b   : > { %1809 = vmatpush.msrb.mxu0 %v1462_v36  ;;  %v1503_v36 = vld [vmem:[#allocation2 + $0x1b0] sm:$0xff] }
 0x34c   : > { %1858 = vmatpush.msrb.mxu3 %v1698_v9  ;;  %1750 = vmatpush.msra.mxu1 %v1521_v12  ;;  %v1458_v9 = vld [vmem:[#allocation2 + $0x48] sm:$0xff] }
 0x34d   : > { %1810 = vmatpush.msrb.mxu0 %v1458_v9  ;;  %v1495_v9 = vld [vmem:[#allocation2 + $0x170] sm:$0xff] }
 0x34e   : > { %v1426_v8 = vpop.f32.mrf.mxu3  ;;  %1859 = vmatpush.msrb.mxu3 %v1694_v40  ;;  %1751 = vmatpush.msra.mxu1 %v1517_v19  ;;  %v1454_v40 = vld [vmem:[#allocation2 + $0x28] sm:$0xff]  ;;  %v1703_v19 = vld [vmem:[#allocation2 + $0x7f0] sm:$0xff] }
 0x34f   : > { %1434 = vrot.lane.b32.xlu1 %v1170_v31, %s3897_s24  ;;  %1442 = vrot.lane.b32.xlu2 %v1426_v8, %s3897_s24  ;;  %v1609_v31 = vld [vmem:[#allocation2 + $0x500] sm:$0xff] }
 0x350   : > { %1764 = vmatpush.msra.mxu2 %v1609_v31  ;;  %v1605_v8 = vld [vmem:[#allocation2 + $0x4e0] sm:$0xff]  ;;  %1860 = vmatpush.msrb.mxu3 %v1690_v23  ;;  %v1658_v31 = vld [vmem:[#allocation2 + $0x688] sm:$0xff] }
 0x351   : > { %1752 = vmatpush.msra.mxu1 %v1513_v32  ;;  %v1450_v23 = vld [vmem:[#allocation2 + $0x8] sm:$0xff]  ;;  %1811 = vmatpush.msrb.mxu0 %v1454_v40  ;;  %v1699_v32 = vld [vmem:[#allocation2 + $0x7d0] sm:$0xff] }
 0x352   : > { %1765 = vmatpush.msra.mxu2 %v1605_v8  ;;  %1861 = vmatpush.msrb.mxu3 %v1686_v50  ;;  %v1622_v8 = vld [vmem:[#allocation2 + $0x568] sm:$0xff]  ;;  %v1487_v40 = vld [vmem:[#allocation2 + $0x130] sm:$0xff] }
 0x353   : > { %1817 = vmatpush.msrb.mxu1 %v1574_v62  ;;  %1812 = vmatpush.msrb.mxu0 %v1450_v23  ;;  %v1695_v62 = vld [vmem:[#allocation2 + $0x7b0] sm:$0xff] }
 0x354   : > { %1766 = vmatpush.msra.mxu2 %v1601_v38  ;;  %1862 = vmatpush.msrb.mxu3 %v1682_v10  ;;  %v1618_v38 = vld [vmem:[#allocation2 + $0x548] sm:$0xff] }
 0x355   : > { %1818 = vmatpush.msrb.mxu1 %v1570_v37  ;;  %v1602_v10 = vld [vmem:[#allocation2 + $0x4c8] sm:$0xff]  ;;  %v1687_v37 = vld [vmem:[#allocation2 + $0x770] sm:$0xff] }
 0x356   : > { %1767 = vmatpush.msra.mxu2 %v1597_v43  ;;  %1863 = vmatpush.msrb.mxu3 %v1678_v56  ;;  %v1614_v43 = vld [vmem:[#allocation2 + $0x528] sm:$0xff] }
 0x357   : > { %2257 = vrot.lane.b32.xlu2 %v4376_v42, %s3897_s24  ;;  %1819 = vmatpush.msrb.mxu1 %v1566_v41  ;;  %v1594_v56 = vld [vmem:[#allocation2 + $0x488] sm:$0xff]  ;;  %v1679_v41 = vld [vmem:[#allocation2 + $0x730] sm:$0xff] }
 0x358   : > { %1768 = vmatpush.msra.mxu2 %v1593_v48  ;;  %1864 = vmatpush.msrb.mxu3 %v1674_v61  ;;  %v1610_v48 = vld [vmem:[#allocation2 + $0x508] sm:$0xff] }
 0x359   : > { %1820 = vmatpush.msrb.mxu1 %v1562_v47  ;;  %v1586_v61 = vld [vmem:[#allocation2 + $0x448] sm:$0xff]  ;;  %v1479_v47 = vld [vmem:[#allocation2 + $0xf0] sm:$0xff] }
 0x35a   : > { %1769 = vmatpush.msra.mxu2 %v1589_v53  ;;  %1865 = vmatpush.msrb.mxu3 %v1670_v14  ;;  %v1606_v53 = vld [vmem:[#allocation2 + $0x4e8] sm:$0xff] }
 0x35b   : > { %1821 = vmatpush.msrb.mxu1 %v1558_v0  ;;  %v1526_v14 = vld [vmem:[#allocation2 + $0x268] sm:$0xff]  ;;  %v1475_v0 = vld [vmem:[#allocation2 + $0xd0] sm:$0xff] }
 0x35c   : > { %1770 = vmatpush.msra.mxu2 %v1585_v63  ;;  %1866 = vmatpush.msrb.mxu3 %v1666_v11  ;;  %v1598_v63 = vld [vmem:[#allocation2 + $0x4a8] sm:$0xff] }
 0x35d   : > { %1822 = vmatpush.msrb.mxu1 %v1554_v55  ;;  %v1514_v11 = vld [vmem:[#allocation2 + $0x208] sm:$0xff]  ;;  %v1667_v55 = vld [vmem:[#allocation2 + $0x6d0] sm:$0xff] }
 0x35e   : > { %1771 = vmatpush.msra.mxu2 %v1581_v60  ;;  %1867 = vmatpush.msrb.mxu3 %v1662_v15  ;;  %v1590_v60 = vld [vmem:[#allocation2 + $0x468] sm:$0xff]  ;;  %v1511_v15 = vld [vmem:[#allocation2 + $0x1f0] sm:$0xff] }
 0x35f   : > { %2255 = vrot.lane.b32.xlu2 %v4382_v54, %s3897_s24  ;;  %1823 = vmatpush.msrb.mxu1 %v1550_v20  ;;  %v1631_v20 = vld [vmem:[#allocation2 + $0x5b0] sm:$0xff] }
 0x360   : > { %1772 = vmatpush.msra.mxu2 %v1577_v2  ;;  %1868 = vmatpush.msrb.mxu3 %v1658_v31  ;;  %v1582_v2 = vld [vmem:[#allocation2 + $0x428] sm:$0xff]  ;;  %v1507_v31 = vld [vmem:[#allocation2 + $0x1d0] sm:$0xff] }
 0x361   : > { %v975_v50 = vpop.f32.mrf.mxu1  ;;  %1824 = vmatpush.msrb.mxu1 %v1546_v22  ;;  %v1467_v22 = vld [vmem:[#allocation2 + $0x90] sm:$0xff] }
 0x362   : > { %1837 = vmatpush.msrb.mxu2 %v1638_v5  ;;  %1869 = vmatpush.msrb.mxu3 %v1654_v45  ;;  %v1578_v5 = vld [vmem:[#allocation2 + $0x408] sm:$0xff]  ;;  %v1691_v45 = vld [vmem:[#allocation2 + $0x790] sm:$0xff] }
 0x363   : > { %1825 = vmatpush.msrb.mxu1 %v1542_v28  ;;  %v1659_v28 = vld [vmem:[#allocation2 + $0x690] sm:$0xff] }
 0x364   : > { %1838 = vmatpush.msrb.mxu2 %v1634_v7  ;;  %1870 = vmatpush.msrb.mxu3 %v1650_v39  ;;  %v1518_v7 = vld [vmem:[#allocation2 + $0x228] sm:$0xff]  ;;  %v1683_v39 = vld [vmem:[#allocation2 + $0x750] sm:$0xff] }
 0x365   : > { %1826 = vmatpush.msrb.mxu1 %v1538_v59  ;;  %v1463_v59 = vld [vmem:[#allocation2 + $0x70] sm:$0xff] }
 0x366   : > { %1839 = vmatpush.msrb.mxu2 %v1630_v52  ;;  %1871 = vmatpush.msrb.mxu3 %v1646_v46  ;;  %v1675_v46 = vld [vmem:[#allocation2 + $0x710] sm:$0xff] }
 0x367   : > { %2385 = vrot.lane.b32.xlu2 %v4390_v44, %s3897_s24  ;;  %1827 = vmatpush.msrb.mxu1 %v1534_v1  ;;  %v1575_v1 = vld [vmem:[#allocation2 + $0x3f0] sm:$0xff] }
 0x368   : > { %1840 = vmatpush.msrb.mxu2 %v1626_v25  ;;  %1872 = vmatpush.msrb.mxu3 %v1642_v49 }
 0x369   : > { %1828 = vmatpush.msrb.mxu1 %v1530_v3  ;;  %v1655_v3 = vld [vmem:[#allocation2 + $0x670] sm:$0xff] }
 0x36a   : > { %1841 = vmatpush.msrb.mxu2 %v1622_v8  ;;  %v1499_v8 = vld [vmem:[#allocation2 + $0x190] sm:$0xff] }
 0x36b   : > { %1829 = vmatpush.msrb.mxu1 %v1526_v14  ;;  %v1571_v14 = vld [vmem:[#allocation2 + $0x3d0] sm:$0xff] }
 0x36c   : > { %1842 = vmatpush.msrb.mxu2 %v1618_v38  ;;  %v1491_v38 = vld [vmem:[#allocation2 + $0x150] sm:$0xff] }
 0x36d   : > { %1830 = vmatpush.msrb.mxu1 %v1522_v6  ;;  %v1651_v6 = vld [vmem:[#allocation2 + $0x650] sm:$0xff] }
 0x36e   : > { %1843 = vmatpush.msrb.mxu2 %v1614_v43  ;;  %v1483_v43 = vld [vmem:[#allocation2 + $0x110] sm:$0xff] }
 0x36f   : > { %2383 = vrot.lane.b32.xlu2 %v4395_v35, %s3897_s24  ;;  %1831 = vmatpush.msrb.mxu1 %v1518_v7  ;;  %v1455_v7 = vld [vmem:[#allocation2 + $0x30] sm:$0xff] }
 0x370   : > { %1844 = vmatpush.msrb.mxu2 %v1610_v48  ;;  %v1639_v48 = vld [vmem:[#allocation2 + $0x5f0] sm:$0xff] }
 0x371   : > { %1832 = vmatpush.msrb.mxu1 %v1514_v11  ;;  %v1615_v11 = vld [vmem:[#allocation2 + $0x530] sm:$0xff] }
 0x372   : > { %1845 = vmatpush.msrb.mxu2 %v1606_v53  ;;  %v1635_v53 = vld [vmem:[#allocation2 + $0x5d0] sm:$0xff] }
 0x374   : > { %1846 = vmatpush.msrb.mxu2 %v1602_v10  ;;  %v4413_v57 = vpop.f32.mrf.mxu1  ;;  %v1471_v10 = vld [vmem:[#allocation2 + $0xb0] sm:$0xff] }
 0x376   : > { %1847 = vmatpush.msrb.mxu2 %v1598_v63  ;;  %v1663_v63 = vld [vmem:[#allocation2 + $0x6b0] sm:$0xff] }
 0x377   : > { %2513 = vrot.lane.b32.xlu2 %v4401_v51, %s3897_s24 }
 0x378   : > { %1848 = vmatpush.msrb.mxu2 %v1594_v56  ;;  %v1627_v56 = vld [vmem:[#allocation2 + $0x590] sm:$0xff] }
 0x37a   : > { %1849 = vmatpush.msrb.mxu2 %v1590_v60 }
 0x37c   : > { %1850 = vmatpush.msrb.mxu2 %v1586_v61  ;;  %v1231_v16 = vpop.f32.mrf.mxu1 }
 0x37e   : > { %1851 = vmatpush.msrb.mxu2 %v1582_v2  ;;  %v1623_v2 = vld [vmem:[#allocation2 + $0x570] sm:$0xff] }
 0x37f   : > { %2639 = vrot.lane.b32.xlu2 %v4407_v27, %s3897_s24 }
 0x380   : > { %1852 = vmatpush.msrb.mxu2 %v1578_v5  ;;  %v1459_v5 = vld [vmem:[#allocation2 + $0x50] sm:$0xff] }
 0x384   : > { %v1359_v12 = vpop.f32.mrf.mxu1 }
 0x3a9   : > { %v1443_v13 = vpop.permute.xlu2 %1442  ;;  %v1431_v52 = vpop.permute.xlu0 %1430 }
 0x3aa   : > { %v4416_v26 = vsel %vm915_vm2, %v1359_v12, %v1443_v13  ;;  %v4419_v25 = vsel %vm915_vm2, %v975_v50, %v1431_v52  ;;  %v1671_v50 = vld [vmem:[#allocation2 + $0x6f0] sm:$0xff] }
 0x3ab   : > { %1733 = vmatmul.f32.vlgmr.msra.gmra.mxu0 %v4419_v25  ;;  %1793 = vmatmul.f32.vlgmr.msra.gmra.mxu3 %v4416_v26  ;;  %v1647_v12 = vld [vmem:[#allocation2 + $0x630] sm:$0xff] }
 0x3ac   : > { %1877 = vmatpush.msra.mxu0 %v1511_v15  ;;  %1937 = vmatpush.msra.mxu3 %v1703_v19  ;;  %v1451_v13 = vld [vmem:[#allocation2 + $0x10] sm:$0xff] }
 0x3ad   : > { %v1563_v52 = vld [vmem:[#allocation2 + $0x390] sm:$0xff] }
 0x3ae   : > { %1878 = vmatpush.msra.mxu0 %v1507_v31  ;;  %1938 = vmatpush.msra.mxu3 %v1699_v32  ;;  %v1611_v15 = vld [vmem:[#allocation2 + $0x510] sm:$0xff]  ;;  %v1512_v31 = vld [vmem:[#allocation2 + $0x1f8] sm:$0xff] }
 0x3af   : > { %v1643_v19 = vld [vmem:[#allocation2 + $0x610] sm:$0xff]  ;;  %v1704_v32 = vld [vmem:[#allocation2 + $0x7f8] sm:$0xff] }
 0x3b0   : > { %1879 = vmatpush.msra.mxu0 %v1503_v36  ;;  %1939 = vmatpush.msra.mxu3 %v1695_v62  ;;  %v1559_v36 = vld [vmem:[#allocation2 + $0x370] sm:$0xff] }
 0x3b1   : > { %v1607_v62 = vld [vmem:[#allocation2 + $0x4f0] sm:$0xff] }
 0x3b2   : > { %1880 = vmatpush.msra.mxu0 %v1499_v8  ;;  %1940 = vmatpush.msra.mxu3 %v1691_v45  ;;  %v1508_v8 = vld [vmem:[#allocation2 + $0x1d8] sm:$0xff] }
 0x3b3   : > { %1813 = vmatmul.f32.vlgmr.msrb.gmra.mxu0 %v4419_v25  ;;  %1873 = vmatmul.f32.vlgmr.msrb.gmra.mxu3 %v4416_v26  ;;  %v1700_v45 = vld [vmem:[#allocation2 + $0x7d8] sm:$0xff] }
 0x3b4   : > { %1881 = vmatpush.msra.mxu0 %v1495_v9  ;;  %1941 = vmatpush.msra.mxu3 %v1687_v37  ;;  %v1555_v9 = vld [vmem:[#allocation2 + $0x350] sm:$0xff] }
 0x3b5   : > { %v1603_v37 = vld [vmem:[#allocation2 + $0x4d0] sm:$0xff] }
 0x3b6   : > { %1882 = vmatpush.msra.mxu0 %v1491_v38  ;;  %1942 = vmatpush.msra.mxu3 %v1683_v39  ;;  %v1504_v38 = vld [vmem:[#allocation2 + $0x1b8] sm:$0xff] }
 0x3b7   : > { %v1696_v39 = vld [vmem:[#allocation2 + $0x7b8] sm:$0xff] }
 0x3b8   : > { %1883 = vmatpush.msra.mxu0 %v1487_v40  ;;  %1943 = vmatpush.msra.mxu3 %v1679_v41  ;;  %v1551_v40 = vld [vmem:[#allocation2 + $0x330] sm:$0xff] }
 0x3b9   : > { %v1439_v23 = vpop.permute.xlu1 %1438  ;;  %v1599_v41 = vld [vmem:[#allocation2 + $0x4b0] sm:$0xff] }
 0x3ba   : > { %v4426_v49 = vsel %vm915_vm2, %v1231_v16, %v1439_v23  ;;  %1884 = vmatpush.msra.mxu0 %v1483_v43  ;;  %1944 = vmatpush.msra.mxu3 %v1675_v46  ;;  %v1619_v16 = vld [vmem:[#allocation2 + $0x550] sm:$0xff]  ;;  %v1500_v43 = vld [vmem:[#allocation2 + $0x198] sm:$0xff] }
 0x3bb   : > { %1773 = vmatmul.f32.vlgmr.msra.gmra.mxu2 %v4426_v49  ;;  %v1692_v46 = vld [vmem:[#allocation2 + $0x798] sm:$0xff]  ;;  %v1547_v23 = vld [vmem:[#allocation2 + $0x310] sm:$0xff] }
 0x3bc   : > { %1885 = vmatpush.msra.mxu0 %v1479_v47  ;;  %1917 = vmatpush.msra.mxu2 %v1639_v48  ;;  %v1595_v47 = vld [vmem:[#allocation2 + $0x490] sm:$0xff]  ;;  %v1496_v48 = vld [vmem:[#allocation2 + $0x178] sm:$0xff] }
 0x3bd   : > { %1945 = vmatpush.msra.mxu3 %v1671_v50  ;;  %v1688_v50 = vld [vmem:[#allocation2 + $0x778] sm:$0xff] }
 0x3be   : > { %1886 = vmatpush.msra.mxu0 %v1475_v0  ;;  %1918 = vmatpush.msra.mxu2 %v1635_v53  ;;  %v1543_v0 = vld [vmem:[#allocation2 + $0x2f0] sm:$0xff] }
 0x3bf   : > { %1946 = vmatpush.msra.mxu3 %v1667_v55  ;;  %v1591_v53 = vld [vmem:[#allocation2 + $0x470] sm:$0xff]  ;;  %v1492_v55 = vld [vmem:[#allocation2 + $0x158] sm:$0xff] }
 0x3c0   : > { %1887 = vmatpush.msra.mxu0 %v1471_v10  ;;  %1919 = vmatpush.msra.mxu2 %v1631_v20  ;;  %v1684_v10 = vld [vmem:[#allocation2 + $0x758] sm:$0xff]  ;;  %v1539_v20 = vld [vmem:[#allocation2 + $0x2d0] sm:$0xff] }
 0x3c1   : > { %1947 = vmatpush.msra.mxu3 %v1663_v63  ;;  %v1435_v60 = vpop.permute.xlu1 %1434  ;;  %v1587_v63 = vld [vmem:[#allocation2 + $0x450] sm:$0xff] }
 0x3c2   : > { %v4431_v61 = vsel %vm915_vm2, %v4413_v57, %v1435_v60  ;;  %1888 = vmatpush.msra.mxu0 %v1467_v22  ;;  %1920 = vmatpush.msra.mxu2 %v1627_v56  ;;  %v1567_v57 = vld [vmem:[#allocation2 + $0x3b0] sm:$0xff]  ;;  %v1488_v22 = vld [vmem:[#allocation2 + $0x138] sm:$0xff] }
 0x3c3   : > { %1948 = vmatpush.msra.mxu3 %v1659_v28  ;;  %1753 = vmatmul.f32.vlgmr.msra.gmra.mxu1 %v4431_v61  ;;  %v1680_v56 = vld [vmem:[#allocation2 + $0x738] sm:$0xff]  ;;  %v1535_v28 = vld [vmem:[#allocation2 + $0x2b0] sm:$0xff] }
 0x3c4   : > { %1853 = vmatmul.f32.vlgmr.msrb.gmra.mxu2 %v4426_v49  ;;  %1889 = vmatpush.msra.mxu0 %v1463_v59  ;;  %v1583_v60 = vld [vmem:[#allocation2 + $0x430] sm:$0xff]  ;;  %v1484_v59 = vld [vmem:[#allocation2 + $0x118] sm:$0xff] }
 0x3c5   : > { %1897 = vmatpush.msra.mxu1 %v1575_v1  ;;  %1921 = vmatpush.msra.mxu2 %v1623_v2  ;;  %v1676_v1 = vld [vmem:[#allocation2 + $0x718] sm:$0xff]  ;;  %v1531_v2 = vld [vmem:[#allocation2 + $0x290] sm:$0xff] }
 0x3c6   : > { %1949 = vmatpush.msra.mxu3 %v1655_v3  ;;  %1890 = vmatpush.msra.mxu0 %v1459_v5  ;;  %v1579_v3 = vld [vmem:[#allocation2 + $0x410] sm:$0xff]  ;;  %v1480_v5 = vld [vmem:[#allocation2 + $0xf8] sm:$0xff] }
 0x3c7   : > { %1898 = vmatpush.msra.mxu1 %v1571_v14  ;;  %1922 = vmatpush.msra.mxu2 %v1619_v16  ;;  %v1640_v14 = vld [vmem:[#allocation2 + $0x5f8] sm:$0xff] }
 0x3c8   : > { %1950 = vmatpush.msra.mxu3 %v1651_v6  ;;  %1891 = vmatpush.msra.mxu0 %v1455_v7  ;;  %v1672_v16 = vld [vmem:[#allocation2 + $0x6f8] sm:$0xff]  ;;  %v1527_v6 = vld [vmem:[#allocation2 + $0x270] sm:$0xff] }
 0x3c9   : > { %1899 = vmatpush.msra.mxu1 %v1567_v57  ;;  %1923 = vmatpush.msra.mxu2 %v1615_v11  ;;  %v1476_v7 = vld [vmem:[#allocation2 + $0xd8] sm:$0xff] }
 0x3ca   : > { %1951 = vmatpush.msra.mxu3 %v1647_v12  ;;  %1892 = vmatpush.msra.mxu0 %v1451_v13  ;;  %v1636_v57 = vld [vmem:[#allocation2 + $0x5d8] sm:$0xff]  ;;  %v1523_v12 = vld [vmem:[#allocation2 + $0x250] sm:$0xff] }
 0x3cb   : > { %1900 = vmatpush.msra.mxu1 %v1563_v52  ;;  %1924 = vmatpush.msra.mxu2 %v1611_v15  ;;  %v1668_v11 = vld [vmem:[#allocation2 + $0x6d8] sm:$0xff] }
 0x3cc   : > { %1952 = vmatpush.msra.mxu3 %v1643_v19  ;;  %1893 = vmatmul.f32.vlgmr.msra.gmra.mxu0 %v4419_v25  ;;  %v1472_v13 = vld [vmem:[#allocation2 + $0xb8] sm:$0xff]  ;;  %v1519_v19 = vld [vmem:[#allocation2 + $0x230] sm:$0xff] }
 0x3cd   : > { %1953 = vmatmul.f32.vlgmr.msra.gmra.mxu3 %v4416_v26  ;;  %1957 = vmatpush.msrb.mxu0 %v1512_v31  ;;  %v1632_v52 = vld [vmem:[#allocation2 + $0x5b8] sm:$0xff] }
 0x3ce   : > { %2017 = vmatpush.msrb.mxu3 %v1704_v32  ;;  %1833 = vmatmul.f32.vlgmr.msrb.gmra.mxu1 %v4431_v61  ;;  %v1664_v15 = vld [vmem:[#allocation2 + $0x6b8] sm:$0xff] }
 0x3cf   : > { %1901 = vmatpush.msra.mxu1 %v1559_v36  ;;  %1925 = vmatpush.msra.mxu2 %v1607_v62  ;;  %v1468_v31 = vld [vmem:[#allocation2 + $0x98] sm:$0xff]  ;;  %v1515_v62 = vld [vmem:[#allocation2 + $0x210] sm:$0xff] }
 0x3d0   : > { %1958 = vmatpush.msrb.mxu0 %v1508_v8  ;;  %2018 = vmatpush.msrb.mxu3 %v1700_v45  ;;  %v1628_v32 = vld [vmem:[#allocation2 + $0x598] sm:$0xff] }
 0x3d1   : > { %1902 = vmatpush.msra.mxu1 %v1555_v9  ;;  %1926 = vmatpush.msra.mxu2 %v1603_v37  ;;  %v1660_v36 = vld [vmem:[#allocation2 + $0x698] sm:$0xff] }
 0x3d2   : > { %1959 = vmatpush.msrb.mxu0 %v1504_v38  ;;  %2019 = vmatpush.msrb.mxu3 %v1696_v39  ;;  %v1464_v8 = vld [vmem:[#allocation2 + $0x78] sm:$0xff] }
 0x3d3   : > { %1903 = vmatpush.msra.mxu1 %v1551_v40  ;;  %1927 = vmatpush.msra.mxu2 %v1599_v41  ;;  %v1624_v45 = vld [vmem:[#allocation2 + $0x578] sm:$0xff] }
 0x3d4   : > { %1960 = vmatpush.msrb.mxu0 %v1500_v43  ;;  %2020 = vmatpush.msrb.mxu3 %v1692_v46  ;;  %v1576_v9 = vld [vmem:[#allocation2 + $0x3f8] sm:$0xff] }
 0x3d5   : > { %1904 = vmatpush.msra.mxu1 %v1547_v23  ;;  %1928 = vmatpush.msra.mxu2 %v1595_v47  ;;  %v1656_v37 = vld [vmem:[#allocation2 + $0x678] sm:$0xff] }
 0x3d6   : > { %1961 = vmatpush.msrb.mxu0 %v1496_v48  ;;  %2021 = vmatpush.msrb.mxu3 %v1688_v50  ;;  %v1460_v38 = vld [vmem:[#allocation2 + $0x58] sm:$0xff] }
 0x3d7   : > { %1905 = vmatpush.msra.mxu1 %v1543_v0  ;;  %1929 = vmatpush.msra.mxu2 %v1591_v53  ;;  %v1620_v39 = vld [vmem:[#allocation2 + $0x558] sm:$0xff] }
 0x3d8   : > { %1962 = vmatpush.msrb.mxu0 %v1492_v55  ;;  %2022 = vmatpush.msrb.mxu3 %v1684_v10  ;;  %v1572_v40 = vld [vmem:[#allocation2 + $0x3d8] sm:$0xff] }
 0x3d9   : > { %1906 = vmatpush.msra.mxu1 %v1539_v20  ;;  %1930 = vmatpush.msra.mxu2 %v1587_v63  ;;  %v1652_v41 = vld [vmem:[#allocation2 + $0x658] sm:$0xff] }
 0x3da   : > { %1963 = vmatpush.msrb.mxu0 %v1488_v22  ;;  %2023 = vmatpush.msrb.mxu3 %v1680_v56  ;;  %v1456_v43 = vld [vmem:[#allocation2 + $0x38] sm:$0xff] }
 0x3db   : > { %1907 = vmatpush.msra.mxu1 %v1535_v28  ;;  %1931 = vmatpush.msra.mxu2 %v1583_v60  ;;  %v1616_v46 = vld [vmem:[#allocation2 + $0x538] sm:$0xff] }
 0x3dc   : > { %1964 = vmatpush.msrb.mxu0 %v1484_v59  ;;  %2024 = vmatpush.msrb.mxu3 %v1676_v1  ;;  %v1568_v23 = vld [vmem:[#allocation2 + $0x3b8] sm:$0xff] }
 0x3dd   : > { %1908 = vmatpush.msra.mxu1 %v1531_v2  ;;  %1932 = vmatpush.msra.mxu2 %v1579_v3  ;;  %v1648_v47 = vld [vmem:[#allocation2 + $0x638] sm:$0xff] }
 0x3de   : > { %1933 = vmatmul.f32.vlgmr.msra.gmra.mxu2 %v4426_v49  ;;  %1965 = vmatpush.msrb.mxu0 %v1480_v5  ;;  %v1452_v48 = vld [vmem:[#allocation2 + $0x18] sm:$0xff] }
 0x3df   : > { %1997 = vmatpush.msrb.mxu2 %v1640_v14  ;;  %2025 = vmatpush.msrb.mxu3 %v1672_v16  ;;  %v1612_v50 = vld [vmem:[#allocation2 + $0x518] sm:$0xff] }
 0x3e0   : > { %1909 = vmatpush.msra.mxu1 %v1527_v6  ;;  %1966 = vmatpush.msrb.mxu0 %v1476_v7  ;;  %v1564_v0 = vld [vmem:[#allocation2 + $0x398] sm:$0xff] }
 0x3e1   : > { %1998 = vmatpush.msrb.mxu2 %v1636_v57  ;;  %2026 = vmatpush.msrb.mxu3 %v1668_v11  ;;  %v1644_v53 = vld [vmem:[#allocation2 + $0x618] sm:$0xff] }
 0x3e2   : > { %1910 = vmatpush.msra.mxu1 %v1523_v12  ;;  %1967 = vmatpush.msrb.mxu0 %v1472_v13  ;;  %v1560_v55 = vld [vmem:[#allocation2 + $0x378] sm:$0xff] }
 0x3e3   : > { %1999 = vmatpush.msrb.mxu2 %v1632_v52  ;;  %2027 = vmatpush.msrb.mxu3 %v1664_v15  ;;  %v1608_v10 = vld [vmem:[#allocation2 + $0x4f8] sm:$0xff] }
 0x3e4   : > { %1911 = vmatpush.msra.mxu1 %v1519_v19  ;;  %1968 = vmatpush.msrb.mxu0 %v1468_v31  ;;  %v1556_v20 = vld [vmem:[#allocation2 + $0x358] sm:$0xff] }
 0x3e5   : > { %2000 = vmatpush.msrb.mxu2 %v1628_v32  ;;  %2028 = vmatpush.msrb.mxu3 %v1660_v36  ;;  %v1604_v63 = vld [vmem:[#allocation2 + $0x4d8] sm:$0xff]  ;;  %v1705_v36 = vld [vmem:[%s4625_s8] sm:$0xf] }
 0x3e6   : > { %1912 = vmatpush.msra.mxu1 %v1515_v62  ;;  %1969 = vmatpush.msrb.mxu0 %v1464_v8  ;;  %v1552_v22 = vld [vmem:[#allocation2 + $0x338] sm:$0xff]  ;;  %v1710_v62 = vperm.slane %v1705_v36, 1  ;;  %v1709_v8 = vperm.slane %v1705_v36, 0 }
 0x3e7   : > { %1913 = vmatmul.f32.vlgmr.msra.gmra.mxu1 %v4431_v61  ;;  %2001 = vmatpush.msrb.mxu2 %v1624_v45  ;;  %v1600_v56 = vld [vmem:[#allocation2 + $0x4b8] sm:$0xff]  ;;  %v1711_v45 = vperm.slane %v1705_v36, 2 }
 0x3e8   : > { %1977 = vmatpush.msrb.mxu1 %v1576_v9  ;;  %2029 = vmatpush.msrb.mxu3 %v1656_v37  ;;  %v1548_v28 = vld [vmem:[#allocation2 + $0x318] sm:$0xff] }
 0x3e9   : > { %1970 = vmatpush.msrb.mxu0 %v1460_v38  ;;  %2002 = vmatpush.msrb.mxu2 %v1620_v39  ;;  %v1596_v60 = vld [vmem:[#allocation2 + $0x498] sm:$0xff] }
 0x3ea   : > { %1978 = vmatpush.msrb.mxu1 %v1572_v40  ;;  %2030 = vmatpush.msrb.mxu3 %v1652_v41  ;;  %v1544_v59 = vld [vmem:[#allocation2 + $0x2f8] sm:$0xff] }
 0x3eb   : > { %1971 = vmatpush.msrb.mxu0 %v1456_v43  ;;  %2003 = vmatpush.msrb.mxu2 %v1616_v46  ;;  %v1592_v1 = vld [vmem:[#allocation2 + $0x478] sm:$0xff] }
 0x3ec   : > { %1979 = vmatpush.msrb.mxu1 %v1568_v23  ;;  %2031 = vmatpush.msrb.mxu3 %v1648_v47  ;;  %v1540_v2 = vld [vmem:[#allocation2 + $0x2d8] sm:$0xff] }
 0x3ed   : > { %1972 = vmatpush.msrb.mxu0 %v1452_v48  ;;  %2004 = vmatpush.msrb.mxu2 %v1612_v50  ;;  %v1588_v3 = vld [vmem:[#allocation2 + $0x458] sm:$0xff] }
 0x3ee   : > { %1980 = vmatpush.msrb.mxu1 %v1564_v0  ;;  %2032 = vmatpush.msrb.mxu3 %v1644_v53  ;;  %v1536_v5 = vld [vmem:[#allocation2 + $0x2b8] sm:$0xff] }
 0x3ef   : > { %1973 = vmatmul.f32.vlgmr.msrb.gmra.mxu0 %v4419_v25  ;;  %2033 = vmatmul.f32.vlgmr.msrb.gmra.mxu3 %v4416_v26  ;;  %v1584_v14 = vld [vmem:[#allocation2 + $0x438] sm:$0xff] }
 0x3f0   : > { %1981 = vmatpush.msrb.mxu1 %v1560_v55  ;;  %2005 = vmatpush.msrb.mxu2 %v1608_v10  ;;  %v1532_v16 = vld [vmem:[#allocation2 + $0x298] sm:$0xff]  ;;  %v1712_v55 = vperm.slane %v1705_v36, 3 }
 0x3f1   : > { %v1580_v6 = vld [vmem:[#allocation2 + $0x418] sm:$0xff] }
 0x3f2   : > { %1982 = vmatpush.msrb.mxu1 %v1556_v20  ;;  %2006 = vmatpush.msrb.mxu2 %v1604_v63  ;;  %v1528_v7 = vld [vmem:[#allocation2 + $0x278] sm:$0xff] }
 0x3f3   : > { %v1524_v57 = vld [vmem:[#allocation2 + $0x258] sm:$0xff] }
 0x3f4   : > { %1983 = vmatpush.msrb.mxu1 %v1552_v22  ;;  %2007 = vmatpush.msrb.mxu2 %v1600_v56  ;;  %v1520_v11 = vld [vmem:[#allocation2 + $0x238] sm:$0xff] }
 0x3f5   : > { %v1516_v12 = vld [vmem:[#allocation2 + $0x218] sm:$0xff] }
 0x3f6   : > { %1984 = vmatpush.msrb.mxu1 %v1548_v28  ;;  %2008 = vmatpush.msrb.mxu2 %v1596_v60 }
 0x3f8   : > { %1985 = vmatpush.msrb.mxu1 %v1544_v59  ;;  %2009 = vmatpush.msrb.mxu2 %v1592_v1 }
 0x3fa   : > { %1986 = vmatpush.msrb.mxu1 %v1540_v2  ;;  %2010 = vmatpush.msrb.mxu2 %v1588_v3 }
 0x3fc   : > { %1987 = vmatpush.msrb.mxu1 %v1536_v5  ;;  %2011 = vmatpush.msrb.mxu2 %v1584_v14 }
 0x3fe   : > { %1988 = vmatpush.msrb.mxu1 %v1532_v16  ;;  %2012 = vmatpush.msrb.mxu2 %v1580_v6 }
 0x3ff   : > { %2013 = vmatmul.f32.vlgmr.msrb.gmra.mxu2 %v4426_v49 }
 0x400   : > { %1989 = vmatpush.msrb.mxu1 %v1528_v7 }
 0x402   : > { %1990 = vmatpush.msrb.mxu1 %v1524_v57 }
 0x404   : > { %1991 = vmatpush.msrb.mxu1 %v1520_v11 }
 0x406   : > { %1992 = vmatpush.msrb.mxu1 %v1516_v12 }
 0x407   : > { %1993 = vmatmul.f32.vlgmr.msrb.gmra.mxu1 %v4431_v61 }
 0x428   : > { %v1734_v13 = vpop.f32.mrf.mxu0 }
 0x429   : > { %v1735_v41 = vadd.f32 %v1734_v13, %v1709_v8  ;;  %v4452_v13 = vmul.f32 0.35355338, %v4246_v24 }
 0x42e   : > { %v1794_v19 = vpop.f32.mrf.mxu3 }
 0x430   : > { %v1814_v31 = vpop.f32.mrf.mxu0 }
 0x431   : > { %v1815_v38 = vadd.f32 %v1814_v31, %v1710_v62 }
 0x436   : > { %v1874_v39 = vpop.f32.mrf.mxu3 }
 0x43e   : > { %v1774_v15 = vpop.f32.mrf.mxu2 }
 0x440   : > { %v1754_v52 = vpop.f32.mrf.mxu1 }
 0x441   : > { %v1755_v23 = vadd.f32 %v1754_v52, %v1735_v41 }
 0x443   : > { %v1775_v0 = vadd.f32 %v1774_v15, %v1755_v23 }
 0x445   : > { %v1795_v22 = vadd.f32 %v1794_v19, %v1775_v0 }
 0x447   : > { %v1854_v9 = vpop.f32.mrf.mxu2  ;;  %v2037_v3 = vadd.f32 %v1795_v22, %v4419_v25 }
 0x449   : > { %v1894_v37 = vpop.f32.mrf.mxu0 }
 0x44a   : > { %v1895_v43 = vadd.f32 %v1894_v37, %v1711_v45 }
 0x44b   : > { %v1834_v32 = vpop.f32.mrf.mxu1 }
 0x44c   : > { %v1835_v46 = vadd.f32 %v1834_v32, %v1815_v38 }
 0x44e   : > { %v1855_v48 = vadd.f32 %v1854_v9, %v1835_v46  ;;  %v2258_v46 = vpop.permute.xlu2 %2257 }
 0x450   : > { %v1954_v10 = vpop.f32.mrf.mxu3  ;;  %v1875_v63 = vadd.f32 %v1874_v39, %v1855_v48 }
 0x452   : > { %v2038_v59 = vadd.f32 %v1875_v63, %v4431_v61  ;;  %v3898_v61 = vmov 512.0   ;;  %v1707_v63 = vld [vmem:[%s4629_s12] sm:$0xf] }
 0x453   : > { %3778 = vrcp.f32 %v3898_v61 }
 0x454   : > { %v2041_v7 = vadd.f32 %v2038_v59, %v2037_v3 }
 0x459   : > { %v3779_v25 = vpop.eup %3778 }
 0x45a   : > { %v2047_v52 = vmul.f32 512.0, %v3779_v25  ;;  %vm2051_vm8 = vweird.f32 %v3779_v25 }
 0x45c   : > { %v2048_v15 = vsub.f32 1.0, %v2047_v52 }
 0x461   : > { %v1934_v50 = vpop.f32.mrf.mxu2 }
 0x464   : > { %v1914_v40 = vpop.f32.mrf.mxu1 }
 0x465   : > { %v1915_v47 = vadd.f32 %v1914_v40, %v1895_v43 }
 0x467   : > { %v1935_v53 = vadd.f32 %v1934_v50, %v1915_v47  ;;  %v2256_v50 = vpop.permute.xlu2 %2255 }
 0x469   : > { %v1955_v56 = vadd.f32 %v1954_v10, %v1935_v53  ;;  %v1706_v10 = vld [vmem:[%s4628_s11] sm:$0xf] }
 0x46b   : > { %v2039_v14 = vadd.f32 %v1955_v56, %v4426_v49  ;;  %v2049_v49 = vmul.f32 %v3779_v25, %v2048_v15  ;;  %v2084_v56 = vperm.slane %v1706_v10, 0 }
 0x46c   : > { %v1974_v20 = vpop.f32.mrf.mxu0 }
 0x46d   : > { %v1975_v28 = vadd.f32 %v1974_v20, %v1712_v55  ;;  %v2042_v11 = vadd.f32 %v2041_v7, %v2039_v14  ;;  %v2050_v19 = vadd.f32 %v3779_v25, %v2049_v49 }
 0x46f   : > { %v4456_v31 = vsel %vm2051_vm8, %v3779_v25, %v2050_v19 }
 0x472   : > { %v2034_v16 = vpop.f32.mrf.mxu3 }
 0x482   : > { %v2014_v2 = vpop.f32.mrf.mxu2 }
 0x484   : > { %v1994_v60 = vpop.f32.mrf.mxu1 }
 0x485   : > { %v1995_v1 = vadd.f32 %v1994_v60, %v1975_v28  ;;  %v2386_v28 = vpop.permute.xlu2 %2385  ;;  %v2097_v60 = vperm.slane %v1707_v63, 0 }
 0x487   : > { %v2015_v5 = vadd.f32 %v2014_v2, %v1995_v1  ;;  %v2086_v1 = vperm.slane %v1706_v10, 2  ;;  %v2087_v2 = vperm.slane %v1706_v10, 3 }
 0x489   : > { %v2035_v6 = vadd.f32 %v2034_v16, %v2015_v5  ;;  %v2098_v5 = vperm.slane %v1707_v63, 1  ;;  %v2100_v16 = vperm.slane %v1707_v63, 3 }
 0x48b   : > { %v2040_v57 = vadd.f32 %v2035_v6, %v4416_v26 }
 0x48d   : > { %v2043_v12 = vadd.f32 %v2042_v11, %v2040_v57 }
 0x48f   : > { %2044 = vadd.xlane.f32.xlu0 %v2043_v12 }
 0x4a3   : > { %2511 = vrot.lane.b32.xlu0 %v4452_v13, %s3897_s24 }
 0x502   : > { %v2045_v26 = vpop.xlane.xlu0 %2044 }
 0x503   : > { %v2053_v32 = vmul.f32 %v4456_v31, %v2045_v26 }
 0x505   : > { %v2054_v36 = vsub.f32 %v2037_v3, %v2053_v32  ;;  %v2055_v62 = vsub.f32 %v2038_v59, %v2053_v32  ;;  %v2056_v24 = vsub.f32 %v2039_v14, %v2053_v32  ;;  %v2057_v8 = vsub.f32 %v2040_v57, %v2053_v32 }
 0x506   : > { %v2085_v59 = vperm.slane %v1706_v10, 1  ;;  %v2099_v14 = vperm.slane %v1707_v63, 2  ;;  %v4470_v32 = vadd.f32 %v4221_v4, %v4372_v33 }
 0x507   : > { %v2058_v45 = vmul.f32 %v2054_v36, %v2054_v36  ;;  %v2059_v9 = vmul.f32 %v2055_v62, %v2055_v62  ;;  %v2060_v37 = vmul.f32 %v2056_v24, %v2056_v24  ;;  %v2061_v39 = vmul.f32 %v2057_v8, %v2057_v8 }
 0x509   : > { %v2062_v38 = vadd.f32 %v2059_v9, %v2058_v45 }
 0x50b   : > { %v2063_v40 = vadd.f32 %v2062_v38, %v2060_v37 }
 0x50d   : > { %v2064_v41 = vadd.f32 %v2063_v40, %v2061_v39 }
 0x50f   : > { %2065 = vadd.xlane.f32.xlu1 %v2064_v41 }
 0x528   : > { %2641 = vrot.lane.b32.xlu1 %v4362_v21, %s3897_s24 }
 0x582   : > { %v2066_v43 = vpop.xlane.xlu1 %2065 }
 0x583   : > { %v2067_v23 = vmul.f32 %v2066_v43, %v4456_v31 }
 0x585   : > { %v2068_v47 = vadd.f32 1e-05, %v2067_v23 }
 0x587   : > { %3780 = vrsqrt.f32 %v2068_v47  ;;  %vm2075_vm10 = vweird.f32 %v2068_v47 }
 0x58d   : > { %v3781_v48 = vpop.eup %3780 }
 0x58e   : > { %v2070_v0 = vmul.f32 %v3781_v48, %v2068_v47  ;;  %vm2076_vm9 = vweird.f32 %v3781_v48 }
 0x58f   : > { %vm2077_vm11 = vmor %vm2075_vm10, %vm2076_vm9 }
 0x590   : > { %v2071_v53 = vmul.f32 %v3781_v48, %v2070_v0 }
 0x592   : > { %v2072_v55 = vmul.f32 0.5, %v2071_v53 }
 0x594   : > { %v2073_v20 = vsub.f32 1.5, %v2072_v55 }
 0x596   : > { %v2074_v22 = vmul.f32 %v3781_v48, %v2073_v20 }
 0x598   : > { %v2078_v3 = vsel %vm2077_vm11, %v3781_v48, %v2074_v22 }
 0x599   : > { %v2079_v6 = vmul.f32 %v2078_v3, %v2054_v36  ;;  %v2080_v7 = vmul.f32 %v2078_v3, %v2055_v62  ;;  %v2081_v57 = vmul.f32 %v2078_v3, %v2056_v24  ;;  %v2082_v11 = vmul.f32 %v2078_v3, %v2057_v8  ;;  %v2384_v36 = vpop.permute.xlu2 %2383 }
 0x59a   : > { %v844_v62 = vadd.f32 %v4411_v34, %v4387_v58  ;;  %v2642_v33 = vpop.permute.xlu1 %2641 }
 0x59b   : > { %v2092_v12 = vmul.f32 %v2084_v56, %v2079_v6  ;;  %v2093_v61 = vmul.f32 %v2085_v59, %v2080_v7  ;;  %v2094_v25 = vmul.f32 %v2086_v1, %v2081_v57  ;;  %v2095_v52 = vmul.f32 %v2087_v2, %v2082_v11 }
 0x59c   : > { %v3740_v53 = vpack.i.bf16 %v844_v62, %v4470_v32 }
 0x59d   : > { %v2105_v15 = vadd.f32 %v2097_v60, %v2092_v12  ;;  %v2106_v49 = vadd.f32 %v2098_v5, %v2093_v61  ;;  %v2107_v19 = vadd.f32 %v2099_v14, %v2094_v25  ;;  %v2108_v26 = vadd.f32 %v2100_v16, %v2095_v52 }
 0x59f   : > { %2124 = vmatpush.xpose.msra.mxu0 %v2105_v15  ;;  %2144 = vmatpush.xpose.msra.mxu1 %v2106_v49 }
 0x5a0   : > { %2164 = vmatpush.xpose.msra.mxu2 %v2107_v19  ;;  %2184 = vmatpush.xpose.msra.mxu3 %v2108_v26 }
 0x5a1   : > { %v2514_v4 = vpop.permute.xlu2 %2513 }
 0x5a2   : > { %2125 = vmatmul.f32.vlgmr.msra.gmra.mxu0 %v2105_v15  ;;  %2145 = vmatmul.f32.vlgmr.msra.gmra.mxu1 %v2106_v49 }
 0x5a3   : > { %3674 = vmatpush.xpose.msk.msrb.mxu0 %vm915_vm2, %v4376_v42  ;;  %2250 = vmatpush.msrb.mxu1 %v4470_v32  ;;  %v2512_v42 = vpop.permute.xlu0 %2511 }
 0x5a4   : > { %3677 = vmatpush.xpose.msk.msrb.mxu2 %vm915_vm2, %v2258_v46  ;;  %2185 = vmatmul.f32.vlgmr.msra.gmra.mxu3 %v2108_v26 }
 0x5a5   : > { %2165 = vmatmul.f32.vlgmr.msra.gmra.mxu2 %v2107_v19  ;;  %2378 = vmatpush.msra.mxu1 %v844_v62 }
 0x5a7   : > { %3680 = vmatpush.xpose.msk.msra.mxu0 %vm915_vm2, %v4390_v44 }
 0x5a8   : > { %3683 = vmatpush.xpose.msk.msra.mxu2 %vm915_vm2, %v2386_v28 }
 0x5aa   : > { %3675 = vmatmul.msk.f32.vlgmr.msrb.gmra.mxu0 %vm915_vm2, %v4382_v54  ;;  %v2640_v54 = vpop.permute.xlu2 %2639 }
 0x5ab   : > { %3686 = vmatpush.xpose.msk.msrb.mxu0 %vm915_vm2, %v4401_v51 }
 0x5ad   : > { %3678 = vmatmul.msk.f32.vlgmr.msrb.gmra.mxu2 %vm915_vm2, %v2256_v50 }
 0x5ae   : > { %3689 = vmatpush.xpose.msk.msrb.mxu2 %vm915_vm2, %v2514_v4 }
 0x5b2   : > { %3681 = vmatmul.msk.f32.vlgmr.msra.gmra.mxu0 %vm915_vm2, %v4395_v35 }
 0x5b3   : > { %3692 = vmatpush.xpose.msk.msra.mxu0 %vm915_vm2, %v4362_v21 }
 0x5b5   : > { %3684 = vmatmul.msk.f32.vlgmr.msra.gmra.mxu2 %vm915_vm2, %v2384_v36  ;;  %v870_v36 = vadd.f32 %v4254_v29, %v4235_v17 }
 0x5b6   : > { %3695 = vmatpush.xpose.msk.msra.mxu2 %vm915_vm2, %v2642_v33 }
 0x5ba   : > { %3687 = vmatmul.msk.f32.vlgmr.msrb.gmra.mxu0 %vm915_vm2, %v4452_v13 }
 0x5bd   : > { %3690 = vmatmul.msk.f32.vlgmr.msrb.gmra.mxu2 %vm915_vm2, %v2512_v42 }
 0x5c2   : > { %3693 = vmatmul.msk.f32.vlgmr.msra.gmra.mxu0 %vm915_vm2, %v4407_v27 }
 0x5c5   : > { %3696 = vmatmul.msk.f32.vlgmr.msra.gmra.mxu2 %vm915_vm2, %v2640_v54 }
 0x61f   : > { %v2126_v58 = vpop.f32.mrf.mxu0  ;;  %v2146_v44 = vpop.f32.mrf.mxu1 }
 0x620   : > { %v2147_v35 = vadd.f32 %v2146_v44, %v2126_v58 }
 0x627   : > { %v2186_v21 = vpop.f32.mrf.mxu3  ;;  %v2217_v45 = vpop.f32.mrf.mxu0 }
 0x628   : > { %v2166_v51 = vpop.f32.mrf.mxu2  ;;  %v2220_v55 = vsel %vm4237_vm6, %v2217_v45, 1e-09 }
 0x629   : > { %v2167_v34 = vadd.f32 %v2166_v51, %v2147_v35  ;;  %v2221_v20 = vsel %vm943_vm7, %v2220_v55, -inf }
 0x62b   : > { %v2187_v24 = vadd.f32 %v2186_v21, %v2167_v34 }
 0x62d   : > { %2189 = vst.msk [vmem:[%s622_s20] sm:$0xff] %vm943_vm7, %v2187_v24 }
 0x62f   : > { %v2345_v39 = vpop.f32.mrf.mxu0 }
 0x630   : > { %v2280_v13 = vpop.f32.mrf.mxu2  ;;  %v4515_v46 = vsel %vm4237_vm6, %v2345_v39, 1e-09 }
 0x631   : > { %v2283_v8 = vsel %vm4237_vm6, %v2280_v13, 1e-09  ;;  %v2349_v0 = vsel %vm943_vm7, %v4515_v46, -inf }
 0x632   : > { %v2284_v27 = vsel %vm943_vm7, %v2283_v8, -inf }
 0x633   : > { %2285 = vmax.xlane.f32.xlu2 %v2284_v27 }
 0x637   : > { %v2473_v48 = vpop.f32.mrf.mxu0 }
 0x638   : > { %v2408_v9 = vpop.f32.mrf.mxu2  ;;  %v2476_v10 = vsel %vm4237_vm6, %v2473_v48, 1e-09 }
 0x639   : > { %v2411_v37 = vsel %vm4237_vm6, %v2408_v9, 1e-09  ;;  %v2477_v63 = vsel %vm943_vm7, %v2476_v10, -inf }
 0x63a   : > { %v2412_v38 = vsel %vm943_vm7, %v2411_v37, -inf }
 0x63b   : > { %2413 = vmax.xlane.f32.xlu0 %v2412_v38 }
 0x63f   : > { %v2601_v22 = vpop.f32.mrf.mxu0 }
 0x640   : > { %v2536_v40 = vpop.f32.mrf.mxu2  ;;  %v2604_v56 = vsel %vm4237_vm6, %v2601_v22, 1e-09 }
 0x641   : > { %v2539_v41 = vsel %vm4237_vm6, %v2536_v40, 1e-09  ;;  %v2605_v28 = vsel %vm943_vm7, %v2604_v56, -inf }
 0x642   : > { %v2540_v43 = vsel %vm943_vm7, %v2539_v41, -inf }
 0x643   : > { %2541 = vmax.xlane.f32.xlu1 %v2540_v43 }
 0x648   : > { %v2664_v23 = vpop.f32.mrf.mxu2 }
 0x649   : > { %v2667_v47 = vsel %vm4237_vm6, %v2664_v23, 1e-09 }
 0x64a   : > { %v2668_v50 = vsel %vm943_vm7, %v2667_v47, -inf }
 0x64b   : > { %2669 = vmax.xlane.f32.xlu2 %v2668_v50  ;;  %2350 = vmax.xlane.f32.xlu1 %v2349_v0 }
 0x64f   : > { %3741 = vrot.lane.b32.xlu0 %v3740_v53, %s3897_s24 }
 0x653   : > { %2222 = vmax.xlane.f32.xlu2 %v2221_v20  ;;  %2478 = vmax.xlane.f32.xlu1 %v2477_v63 }
 0x65b   : > { %2606 = vmax.xlane.f32.xlu1 %v2605_v28 }
 0x674   : > { %2680 = vrot.lane.b32.xlu1 %v4365_v30, %s3897_s24 }
 0x6a6   : > { %v2286_v60 = vpop.xlane.xlu2 %2285 }
 0x6a7   : > { %v2287_v59 = vsub.f32 %v2283_v8, %v2286_v60 }
 0x6a9   : > { %v2288_v1 = vmul.f32 1.442695, %v2287_v59 }
 0x6ab   : > { %3782 = vpow2.f32 %v2288_v1 }
 0x6ae   : > { %v2414_v2 = vpop.xlane.xlu0 %2413 }
 0x6af   : > { %v2415_v3 = vsub.f32 %v2411_v37, %v2414_v2 }
 0x6b1   : > { %v3783_v5 = vpop.eup %3782  ;;  %v2416_v14 = vmul.f32 1.442695, %v2415_v3 }
 0x6b2   : > { %v2290_v16 = vsel %vm943_vm7, %v3783_v5, 0.0 }
 0x6b3   : > { %3784 = vpow2.f32 %v2416_v14  ;;  %2291 = vadd.xlane.f32.xlu0 %v2290_v16 }
 0x6b6   : > { %v2542_v18 = vpop.xlane.xlu1 %2541 }
 0x6b7   : > { %v2543_v6 = vsub.f32 %v2539_v41, %v2542_v18 }
 0x6b9   : > { %v3785_v7 = vpop.eup %3784  ;;  %v2544_v57 = vmul.f32 1.442695, %v2543_v6  ;;  %v2914_v6 = vld [vmem:[#allocation4 + $0x5e0] sm:$0xff] }
 0x6ba   : > { %v2418_v11 = vsel %vm943_vm7, %v3785_v7, 0.0  ;;  %3034 = vmatpush.msrb.mxu2 %v2914_v6  ;;  %v2771_v6 = vld [vmem:[#allocation4 + $0x168] sm:$0xff] }
 0x6bb   : > { %3786 = vpow2.f32 %v2544_v57  ;;  %2419 = vadd.xlane.f32.xlu2 %v2418_v11  ;;  %v2786_v57 = vld [vmem:[#allocation4 + $0x1e0] sm:$0xff] }
 0x6bc   : > { %v2906_v11 = vld [vmem:[#allocation4 + $0x5a0] sm:$0xff]  ;;  %2994 = vmatpush.msrb.mxu0 %v2786_v57  ;;  %v2883_v57 = vld [vmem:[#allocation4 + $0x4e8] sm:$0xff] }
 0x6be   : > { %v2670_v12 = vpop.xlane.xlu2 %2669  ;;  %v2351_v61 = vpop.xlane.xlu1 %2350 }
 0x6bf   : > { %v2671_v25 = vsub.f32 %v2667_v47, %v2670_v12  ;;  %v2352_v27 = vsub.f32 %v4515_v46, %v2351_v61  ;;  %v2898_v12 = vld [vmem:[#allocation4 + $0x560] sm:$0xff] }
 0x6c1   : > { %v3787_v52 = vpop.eup %3786  ;;  %v2672_v15 = vmul.f32 1.442695, %v2671_v25  ;;  %v3742_v49 = vpop.permute.xlu0 %3741  ;;  %v2353_v9 = vmul.f32 1.442695, %v2352_v27  ;;  %v2854_v27 = vld [vmem:[#allocation4 + $0x400] sm:$0xff] }
 0x6c2   : > { %v3744_v19 = vunpack.i.h.bf16 %v3742_v49  ;;  %v3743_v26 = vunpack.i.l.bf16 %v3742_v49  ;;  %v2546_v32 = vsel %vm943_vm7, %v3787_v52, 0.0  ;;  %v2894_v49 = vld [vmem:[#allocation4 + $0x540] sm:$0xff] }
 0x6c3   : > { %3788 = vpow2.f32 %v2672_v15  ;;  %2547 = vadd.xlane.f32.xlu2 %v2546_v32  ;;  %v2782_v15 = vld [vmem:[#allocation4 + $0x1c0] sm:$0xff] }
 0x6c4   : > { %2317 = vmatpush.msrb.mxu3 %v3743_v26  ;;  %2995 = vmatpush.msrb.mxu0 %v2782_v15  ;;  %v2890_v26 = vld [vmem:[#allocation4 + $0x520] sm:$0xff] }
 0x6c5   : > { %v2774_v32 = vld [vmem:[#allocation4 + $0x180] sm:$0xff] }
 0x6c6   : > { %2445 = vmatpush.msra.mxu3 %v3744_v19  ;;  %v2223_v62 = vpop.xlane.xlu2 %2222  ;;  %v2479_v4 = vpop.xlane.xlu1 %2478  ;;  %v2778_v19 = vld [vmem:[#allocation4 + $0x1a0] sm:$0xff] }
 0x6c7   : > { %v2224_v33 = vsub.f32 %v2220_v55, %v2223_v62  ;;  %2552 = vrot.lane.b32.xlu0 %v870_v36, %s3897_s24  ;;  %v2480_v58 = vsub.f32 %v2476_v10, %v2479_v4  ;;  %2996 = vmatpush.msrb.mxu0 %v2778_v19  ;;  %v2770_v62 = vld [vmem:[#allocation4 + $0x160] sm:$0xff] }
 0x6c8   : > { %v2882_v4 = vld [vmem:[#allocation4 + $0x4e0] sm:$0xff] }
 0x6c9   : > { %v3789_v42 = vpop.eup %3788  ;;  %v2225_v54 = vmul.f32 1.442695, %v2224_v33  ;;  %v2481_v35 = vmul.f32 1.442695, %v2480_v58  ;;  %2997 = vmatpush.msrb.mxu0 %v2774_v32  ;;  %v2766_v33 = vld [vmem:[#allocation4 + $0x140] sm:$0xff] }
 0x6ca   : > { %v2674_v44 = vsel %vm943_vm7, %v3789_v42, 0.0  ;;  %v2874_v58 = vld [vmem:[#allocation4 + $0x4a0] sm:$0xff] }
 0x6cb   : > { %3790 = vpow2.f32 %v2225_v54  ;;  %2675 = vadd.xlane.f32.xlu2 %v2674_v44  ;;  %2998 = vmatpush.msrb.mxu0 %v2770_v62  ;;  %v2762_v54 = vld [vmem:[#allocation4 + $0x120] sm:$0xff] }
 0x6cc   : > { %3792 = vpow2.f32 %v2481_v35  ;;  %v2758_v44 = vld [vmem:[#allocation4 + $0x100] sm:$0xff] }
 0x6cd   : > { %2999 = vmatpush.msrb.mxu0 %v2766_v33  ;;  %v2870_v35 = vld [vmem:[#allocation4 + $0x480] sm:$0xff] }
 0x6ce   : > { %v2607_v51 = vpop.xlane.xlu1 %2606  ;;  %v2934_v15 = vld [vmem:[#allocation4 + $0x680] sm:$0xff] }
 0x6cf   : > { %v2608_v21 = vsub.f32 %v2604_v56, %v2607_v51  ;;  %3000 = vmatpush.msrb.mxu0 %v2762_v54  ;;  %v2754_v51 = vld [vmem:[#allocation4 + $0xe0] sm:$0xff]  ;;  %v2751_v54 = vld [vmem:[#allocation4 + $0xc8] sm:$0xff] }
 0x6d0   : > { %v2814_v19 = vld [vmem:[#allocation4 + $0x2c0] sm:$0xff] }
 0x6d1   : > { %v3791_v34 = vpop.eup %3790  ;;  %v2609_v29 = vmul.f32 1.442695, %v2608_v21  ;;  %3001 = vmatpush.msrb.mxu0 %v2758_v44  ;;  %v2750_v21 = vld [vmem:[#allocation4 + $0xc0] sm:$0xff]  ;;  %v2863_v44 = vld [vmem:[#allocation4 + $0x448] sm:$0xff] }
 0x6d2   : > { %v2227_v17 = vsel %vm943_vm7, %v3791_v34, 0.0  ;;  %v3793_v24 = vpop.eup %3792  ;;  %v2930_v32 = vld [vmem:[#allocation4 + $0x660] sm:$0xff] }
 0x6d3   : > { %2228 = vadd.xlane.f32.xlu2 %v2227_v17  ;;  %3794 = vpow2.f32 %v2609_v29  ;;  %v2483_v13 = vsel %vm943_vm7, %v3793_v24, 0.0  ;;  %3002 = vmatpush.msrb.mxu0 %v2754_v51  ;;  %v2862_v17 = vld [vmem:[#allocation4 + $0x440] sm:$0xff]  ;;  %v2859_v51 = vld [vmem:[#allocation4 + $0x428] sm:$0xff] }
 0x6d4   : > { %3796 = vpow2.f32 %v2353_v9  ;;  %v2746_v29 = vld [vmem:[#allocation4 + $0xa0] sm:$0xff]  ;;  %v2915_v9 = vld [vmem:[#allocation4 + $0x5e8] sm:$0xff] }
 0x6d5   : > { %3003 = vmatpush.msrb.mxu0 %v2750_v21  ;;  %v2810_v62 = vld [vmem:[#allocation4 + $0x2a0] sm:$0xff]  ;;  %v2855_v21 = vld [vmem:[#allocation4 + $0x408] sm:$0xff] }
 0x6d6   : > { %v2926_v33 = vld [vmem:[#allocation4 + $0x640] sm:$0xff] }
 0x6d7   : > { %3004 = vmatpush.msrb.mxu0 %v2746_v29  ;;  %v2918_v29 = vld [vmem:[#allocation4 + $0x600] sm:$0xff] }
 0x6d9   : > { %v3795_v8 = vpop.eup %3794 }
 0x6da   : > { %v2611_v45 = vsel %vm943_vm7, %v3795_v8, 0.0  ;;  %v3797_v37 = vpop.eup %3796 }
 0x6db   : > { %2484 = vadd.xlane.f32.xlu2 %v2483_v13  ;;  %v2355_v38 = vsel %vm943_vm7, %v3797_v37, 0.0  ;;  %v2742_v13 = vld [vmem:[#allocation4 + $0x80] sm:$0xff] }
 0x6dc   : > { %3005 = vmatpush.msrb.mxu0 %v2742_v13  ;;  %v2979_v13 = vld [vmem:[#allocation4 + $0x7e8] sm:$0xff] }
 0x6e3   : > { %2612 = vadd.xlane.f32.xlu2 %v2611_v45  ;;  %v2974_v45 = vld [vmem:[#allocation4 + $0x7c0] sm:$0xff] }
 0x6e6   : > { %v2681_v50 = vpop.permute.xlu1 %2680 }
 0x6f1   : > { %2356 = vadd.xlane.f32.xlu0 %v2355_v38  ;;  %v2970_v38 = vld [vmem:[#allocation4 + $0x7a0] sm:$0xff] }
 0x726   : > { %v2292_v39 = vpop.xlane.xlu0 %2291 }
 0x727   : > { %3798 = vrcp.f32 %v2292_v39  ;;  %v2911_v39 = vld [vmem:[#allocation4 + $0x5c8] sm:$0xff] }
 0x72d   : > { %v3799_v40 = vpop.eup %3798 }
 0x72e   : > { %v2294_v41 = vmul.f32 %v3799_v40, %v3783_v5  ;;  %v2420_v43 = vpop.xlane.xlu2 %2419  ;;  %v2734_v40 = vld [vmem:[#allocation4 + $0x40] sm:$0xff] }
 0x72f   : > { %3800 = vrcp.f32 %v2420_v43  ;;  %v2966_v43 = vld [vmem:[#allocation4 + $0x780] sm:$0xff] }
 0x730   : > { %3679 = vmatmul.msk.f32.vlgmr.msrb.gmra.mxu3 %vm943_vm7, %v2294_v41  ;;  %v2850_v41 = vld [vmem:[#allocation4 + $0x3e0] sm:$0xff] }
 0x735   : > { %v3801_v23 = vpop.eup %3800 }
 0x736   : > { %v2422_v47 = vmul.f32 %v3801_v23, %v3785_v7  ;;  %v2548_v46 = vpop.xlane.xlu2 %2547  ;;  %v2910_v7 = vld [vmem:[#allocation4 + $0x5c0] sm:$0xff]  ;;  %v2907_v23 = vld [vmem:[#allocation4 + $0x5a8] sm:$0xff] }
 0x737   : > { %3802 = vrcp.f32 %v2548_v46  ;;  %3035 = vmatpush.msrb.mxu2 %v2910_v7  ;;  %v2846_v46 = vld [vmem:[#allocation4 + $0x3c0] sm:$0xff] }
 0x738   : > { %3685 = vmatmul.msk.f32.vlgmr.msra.gmra.mxu3 %vm943_vm7, %v2422_v47  ;;  %v2730_v47 = vld [vmem:[#allocation4 + $0x20] sm:$0xff] }
 0x739   : > { %v2553_v48 = vpop.permute.xlu0 %2552  ;;  %3036 = vmatpush.msrb.mxu2 %v2906_v11  ;;  %v2942_v7 = vld [vmem:[#allocation4 + $0x6c0] sm:$0xff] }
 0x73a   : > { %2573 = vmatpush.msrb.mxu3 %v2553_v48  ;;  %v2962_v48 = vld [vmem:[#allocation4 + $0x760] sm:$0xff] }
 0x73b   : > { %v2822_v11 = vld [vmem:[#allocation4 + $0x300] sm:$0xff] }
 0x73c   : > { %2701 = vmatpush.msra.mxu3 %v2681_v50  ;;  %v2842_v50 = vld [vmem:[#allocation4 + $0x3a0] sm:$0xff] }
 0x73d   : > { %v3803_v0 = vpop.eup %3802 }
 0x73e   : > { %v2550_v53 = vmul.f32 %v3803_v0, %v3787_v52  ;;  %v2676_v55 = vpop.xlane.xlu2 %2675  ;;  %v2903_v0 = vld [vmem:[#allocation4 + $0x588] sm:$0xff] }
 0x73f   : > { %3804 = vrcp.f32 %v2676_v55  ;;  %v2787_v55 = vld [vmem:[#allocation4 + $0x1e8] sm:$0xff] }
 0x740   : > { %3691 = vmatmul.msk.f32.vlgmr.msrb.gmra.mxu3 %vm943_vm7, %v2550_v53  ;;  %v2726_v53 = vld [vmem:[#allocation4] sm:$0xff] }
 0x745   : > { %v3805_v10 = vpop.eup %3804 }
 0x746   : > { %v2678_v20 = vmul.f32 %v3805_v10, %v3789_v42  ;;  %v2229_v63 = vpop.xlane.xlu2 %2228  ;;  %v2878_v42 = vld [vmem:[#allocation4 + $0x4c0] sm:$0xff] }
 0x747   : > { %3806 = vrcp.f32 %v2229_v63  ;;  %v2958_v10 = vld [vmem:[#allocation4 + $0x740] sm:$0xff] }
 0x748   : > { %3697 = vmatmul.msk.f32.vlgmr.msra.gmra.mxu3 %vm943_vm7, %v2678_v20  ;;  %v2899_v20 = vld [vmem:[#allocation4 + $0x568] sm:$0xff]  ;;  %v2838_v63 = vld [vmem:[#allocation4 + $0x380] sm:$0xff] }
 0x74d   : > { %v3807_v22 = vpop.eup %3806 }
 0x74e   : > { %v2231_v56 = vmul.f32 %v3807_v22, %v3791_v34  ;;  %v2485_v60 = vpop.xlane.xlu2 %2484  ;;  %v2866_v34 = vld [vmem:[#allocation4 + $0x460] sm:$0xff]  ;;  %v2783_v22 = vld [vmem:[#allocation4 + $0x1c8] sm:$0xff] }
 0x750   : > { %3676 = vmatmul.msk.f32.vlgmr.msrb.gmra.mxu1 %vm943_vm7, %v2231_v56  ;;  %v2954_v56 = vld [vmem:[#allocation4 + $0x720] sm:$0xff] }
 0x751   : > { %2506 = vmatpush.msrb.mxu1 %v870_v36  ;;  %v2886_v36 = vld [vmem:[#allocation4 + $0x500] sm:$0xff] }
 0x756   : > { %v2613_v2 = vpop.xlane.xlu2 %2612 }
 0x764   : > { %v2357_v28 = vpop.xlane.xlu0 %2356 }
 0x765   : > { %3808 = vrcp.f32 %v2357_v28  ;;  %v2895_v28 = vld [vmem:[#allocation4 + $0x548] sm:$0xff] }
 0x766   : > { %3810 = vrcp.f32 %v2485_v60  ;;  %v2834_v60 = vld [vmem:[#allocation4 + $0x360] sm:$0xff] }
 0x767   : > { %3812 = vrcp.f32 %v2613_v2  ;;  %v2891_v2 = vld [vmem:[#allocation4 + $0x528] sm:$0xff] }
 0x76b   : > { %v3809_v59 = vpop.eup %3808 }
 0x76c   : > { %v2359_v1 = vmul.f32 %v3809_v59, %v3797_v37  ;;  %v3811_v3 = vpop.eup %3810  ;;  %v2738_v37 = vld [vmem:[#allocation4 + $0x60] sm:$0xff]  ;;  %v2779_v59 = vld [vmem:[#allocation4 + $0x1a8] sm:$0xff] }
 0x76d   : > { %v2487_v5 = vmul.f32 %v3811_v3, %v3793_v24  ;;  %v3813_v14 = vpop.eup %3812  ;;  %v2858_v24 = vld [vmem:[#allocation4 + $0x420] sm:$0xff]  ;;  %3006 = vmatpush.msrb.mxu0 %v2738_v37  ;;  %v2731_v37 = vld [vmem:[#allocation4 + $0x28] sm:$0xff] }
 0x76e   : > { %3682 = vmatmul.msk.f32.vlgmr.msra.gmra.mxu1 %vm943_vm7, %v2359_v1  ;;  %v2615_v16 = vmul.f32 %v3813_v14, %v3795_v8  ;;  %v2978_v8 = vld [vmem:[#allocation4 + $0x7e0] sm:$0xff] }
 0x76f   : > { %2634 = vmatpush.msra.mxu1 %v4365_v30  ;;  %v2902_v30 = vld [vmem:[#allocation4 + $0x580] sm:$0xff]  ;;  %3054 = vmatpush.msrb.mxu3 %v2978_v8 }
 0x770   : > { %3037 = vmatpush.msrb.mxu2 %v2902_v30  ;;  %3007 = vmatpush.msrb.mxu0 %v2734_v40  ;;  %v2950_v1 = vld [vmem:[#allocation4 + $0x700] sm:$0xff]  ;;  %v2767_v30 = vld [vmem:[#allocation4 + $0x148] sm:$0xff] }
 0x771   : > { %3055 = vmatpush.msrb.mxu3 %v2974_v45  ;;  %v2830_v3 = vld [vmem:[#allocation4 + $0x340] sm:$0xff]  ;;  %v2975_v45 = vld [vmem:[#allocation4 + $0x7c8] sm:$0xff] }
 0x772   : > { %3038 = vmatpush.msrb.mxu2 %v2898_v12  ;;  %3008 = vmatpush.msrb.mxu0 %v2730_v47  ;;  %v2946_v14 = vld [vmem:[#allocation4 + $0x6e0] sm:$0xff]  ;;  %v2727_v40 = vld [vmem:[#allocation4 + $0x8] sm:$0xff] }
 0x773   : > { %3056 = vmatpush.msrb.mxu3 %v2970_v38  ;;  %v2938_v12 = vld [vmem:[#allocation4 + $0x6a0] sm:$0xff]  ;;  %v2971_v38 = vld [vmem:[#allocation4 + $0x7a8] sm:$0xff] }
 0x774   : > { %3039 = vmatpush.msrb.mxu2 %v2894_v49  ;;  %3009 = vmatpush.msrb.mxu0 %v2726_v53  ;;  %v2875_v49 = vld [vmem:[#allocation4 + $0x4a8] sm:$0xff]  ;;  %v2802_v8 = vld [vmem:[#allocation4 + $0x260] sm:$0xff] }
 0x775   : > { %3057 = vmatpush.msrb.mxu3 %v2966_v43  ;;  %v2790_v43 = vld [vmem:[#allocation4 + $0x200] sm:$0xff]  ;;  %v2963_v47 = vld [vmem:[#allocation4 + $0x768] sm:$0xff] }
 0x776   : > { %3688 = vmatmul.msk.f32.vlgmr.msrb.gmra.mxu1 %vm943_vm7, %v2487_v5  ;;  %3040 = vmatpush.msrb.mxu2 %v2890_v26  ;;  %v2775_v5 = vld [vmem:[#allocation4 + $0x188] sm:$0xff] }
 0x777   : > { %3014 = vmatpush.msrb.mxu1 %v2850_v41  ;;  %3058 = vmatpush.msrb.mxu3 %v2962_v48  ;;  %v2759_v26 = vld [vmem:[#allocation4 + $0x108] sm:$0xff] }
 0x778   : > { %3041 = vmatpush.msrb.mxu2 %v2886_v36  ;;  %3074 = vmatpush.msra.mxu0 %v2787_v55  ;;  %v2871_v36 = vld [vmem:[#allocation4 + $0x488] sm:$0xff] }
 0x779   : > { %3015 = vmatpush.msrb.mxu1 %v2846_v46  ;;  %3059 = vmatpush.msrb.mxu3 %v2958_v10  ;;  %v2967_v41 = vld [vmem:[#allocation4 + $0x788] sm:$0xff] }
 0x77a   : > { %3042 = vmatpush.msrb.mxu2 %v2882_v4  ;;  %3075 = vmatpush.msra.mxu0 %v2783_v22  ;;  %v2755_v4 = vld [vmem:[#allocation4 + $0xe8] sm:$0xff] }
 0x77b   : > { %3016 = vmatpush.msrb.mxu1 %v2842_v50  ;;  %3060 = vmatpush.msrb.mxu3 %v2954_v56  ;;  %v2847_v46 = vld [vmem:[#allocation4 + $0x3c8] sm:$0xff] }
 0x77c   : > { %3043 = vmatpush.msrb.mxu2 %v2878_v42  ;;  %3076 = vmatpush.msra.mxu0 %v2779_v59  ;;  %v2867_v42 = vld [vmem:[#allocation4 + $0x468] sm:$0xff] }
 0x77d   : > { %3017 = vmatpush.msrb.mxu1 %v2838_v63  ;;  %3061 = vmatpush.msrb.mxu3 %v2950_v1  ;;  %v2959_v48 = vld [vmem:[#allocation4 + $0x748] sm:$0xff] }
 0x77e   : > { %3694 = vmatmul.msk.f32.vlgmr.msra.gmra.mxu1 %vm943_vm7, %v2615_v16  ;;  %3044 = vmatpush.msrb.mxu2 %v2874_v58  ;;  %v2887_v16 = vld [vmem:[#allocation4 + $0x508] sm:$0xff]  ;;  %v2922_v58 = vld [vmem:[#allocation4 + $0x620] sm:$0xff] }
 0x77f   : > { %3018 = vmatpush.msrb.mxu1 %v2834_v60  ;;  %3077 = vmatpush.msra.mxu0 %v2775_v5  ;;  %v2955_v53 = vld [vmem:[#allocation4 + $0x728] sm:$0xff] }
 0x780   : > { %3045 = vmatpush.msrb.mxu2 %v2870_v35  ;;  %3062 = vmatpush.msrb.mxu3 %v2946_v14  ;;  %v2747_v35 = vld [vmem:[#allocation4 + $0xa8] sm:$0xff] }
 0x781   : > { %3019 = vmatpush.msrb.mxu1 %v2830_v3  ;;  %3078 = vmatpush.msra.mxu0 %v2771_v6  ;;  %v2839_v55 = vld [vmem:[#allocation4 + $0x388] sm:$0xff] }
 0x782   : > { %3046 = vmatpush.msrb.mxu2 %v2866_v34  ;;  %3063 = vmatpush.msrb.mxu3 %v2942_v7  ;;  %v2743_v34 = vld [vmem:[#allocation4 + $0x88] sm:$0xff] }
 0x783   : > { %3079 = vmatpush.msra.mxu0 %v2767_v30  ;;  %v2951_v10 = vld [vmem:[#allocation4 + $0x708] sm:$0xff] }
 0x784   : > { %3047 = vmatpush.msrb.mxu2 %v2862_v17  ;;  %3064 = vmatpush.msrb.mxu3 %v2938_v12  ;;  %v2806_v17 = vld [vmem:[#allocation4 + $0x280] sm:$0xff]  ;;  %v2947_v63 = vld [vmem:[#allocation4 + $0x6e8] sm:$0xff] }
 0x785   : > { %v2831_v22 = vld [vmem:[#allocation4 + $0x348] sm:$0xff] }
 0x786   : > { %3048 = vmatpush.msrb.mxu2 %v2858_v24  ;;  %3065 = vmatpush.msrb.mxu3 %v2934_v15  ;;  %v2739_v24 = vld [vmem:[#allocation4 + $0x68] sm:$0xff] }
 0x787   : > { %v2943_v56 = vld [vmem:[#allocation4 + $0x6c8] sm:$0xff] }
 0x788   : > { %3049 = vmatpush.msrb.mxu2 %v2854_v27  ;;  %3066 = vmatpush.msrb.mxu3 %v2930_v32  ;;  %v2735_v27 = vld [vmem:[#allocation4 + $0x48] sm:$0xff]  ;;  %v2788_v32 = vld [vmem:[#allocation4 + $0x1f0] sm:$0xff] }
 0x789   : > { %v2827_v60 = vld [vmem:[#allocation4 + $0x328] sm:$0xff] }
 0x78a   : > { %3114 = vmatpush.msra.mxu2 %v2915_v9  ;;  %3067 = vmatpush.msrb.mxu3 %v2926_v33  ;;  %v2798_v9 = vld [vmem:[#allocation4 + $0x240] sm:$0xff]  ;;  %v2939_v59 = vld [vmem:[#allocation4 + $0x6a8] sm:$0xff]  ;;  %v2784_v33 = vld [vmem:[#allocation4 + $0x1d0] sm:$0xff] }
 0x78b   : > { %v2823_v1 = vld [vmem:[#allocation4 + $0x308] sm:$0xff] }
 0x78c   : > { %3115 = vmatpush.msra.mxu2 %v2911_v39  ;;  %3068 = vmatpush.msrb.mxu3 %v2922_v58  ;;  %v2794_v39 = vld [vmem:[#allocation4 + $0x220] sm:$0xff]  ;;  %v2819_v3 = vld [vmem:[#allocation4 + $0x2e8] sm:$0xff]  ;;  %v2780_v58 = vld [vmem:[#allocation4 + $0x1b0] sm:$0xff] }
 0x78d   : > { %v2931_v5 = vld [vmem:[#allocation4 + $0x668] sm:$0xff] }
 0x78e   : > { %3116 = vmatpush.msra.mxu2 %v2907_v23  ;;  %3069 = vmatpush.msrb.mxu3 %v2918_v29  ;;  %v2851_v23 = vld [vmem:[#allocation4 + $0x3e8] sm:$0xff]  ;;  %v2880_v29 = vld [vmem:[#allocation4 + $0x4d0] sm:$0xff] }
 0x78f   : > { %v2815_v14 = vld [vmem:[#allocation4 + $0x2c8] sm:$0xff] }
 0x790   : > { %3117 = vmatpush.msra.mxu2 %v2903_v0  ;;  %3134 = vmatpush.msra.mxu3 %v2979_v13  ;;  %v2843_v0 = vld [vmem:[#allocation4 + $0x3a8] sm:$0xff]  ;;  %v2876_v13 = vld [vmem:[#allocation4 + $0x4b0] sm:$0xff] }
 0x791   : > { %v2923_v6 = vld [vmem:[#allocation4 + $0x628] sm:$0xff] }
 0x792   : > { %3118 = vmatpush.msra.mxu2 %v2899_v20  ;;  %3135 = vmatpush.msra.mxu3 %v2975_v45  ;;  %v2835_v20 = vld [vmem:[#allocation4 + $0x368] sm:$0xff]  ;;  %v2756_v45 = vld [vmem:[#allocation4 + $0xf0] sm:$0xff] }
 0x793   : > { %v2807_v12 = vld [vmem:[#allocation4 + $0x288] sm:$0xff] }
 0x794   : > { %3119 = vmatpush.msra.mxu2 %v2895_v28  ;;  %3136 = vmatpush.msra.mxu3 %v2971_v38  ;;  %v2803_v15 = vld [vmem:[#allocation4 + $0x268] sm:$0xff]  ;;  %v2864_v38 = vld [vmem:[#allocation4 + $0x450] sm:$0xff] }
 0x796   : > { %3120 = vmatpush.msra.mxu2 %v2891_v2  ;;  %3137 = vmatpush.msra.mxu3 %v2967_v41  ;;  %v2935_v2 = vld [vmem:[#allocation4 + $0x688] sm:$0xff]  ;;  %v2744_v41 = vld [vmem:[#allocation4 + $0x90] sm:$0xff] }
 0x798   : > { %3121 = vmatpush.msra.mxu2 %v2887_v16  ;;  %3138 = vmatpush.msra.mxu3 %v2963_v47  ;;  %v2927_v16 = vld [vmem:[#allocation4 + $0x648] sm:$0xff] }
 0x79a   : > { %3122 = vmatpush.msra.mxu2 %v2883_v57  ;;  %3139 = vmatpush.msra.mxu3 %v2959_v48  ;;  %v2740_v48 = vld [vmem:[#allocation4 + $0x70] sm:$0xff] }
 0x79c   : > { %3140 = vmatpush.msra.mxu3 %v2955_v53  ;;  %v2913_v53 = vld [vmem:[#allocation4 + $0x5d8] sm:$0xff] }
 0x79e   : > { %3141 = vmatpush.msra.mxu3 %v2951_v10  ;;  %v2976_v10 = vld [vmem:[#allocation4 + $0x7d0] sm:$0xff] }
 0x7a0   : > { %3142 = vmatpush.msra.mxu3 %v2947_v63  ;;  %v2732_v63 = vld [vmem:[#allocation4 + $0x30] sm:$0xff] }
 0x7a2   : > { %3143 = vmatpush.msra.mxu3 %v2943_v56  ;;  %v2905_v56 = vld [vmem:[#allocation4 + $0x598] sm:$0xff] }
 0x7a4   : > { %3144 = vmatpush.msra.mxu3 %v2939_v59  ;;  %v2968_v59 = vld [vmem:[#allocation4 + $0x790] sm:$0xff] }
 0x7a6   : > { %3145 = vmatpush.msra.mxu3 %v2935_v2  ;;  %v2789_v2 = vld [vmem:[#allocation4 + $0x1f8] sm:$0xff] }
 0x7a8   : > { %3146 = vmatpush.msra.mxu3 %v2931_v5 }
 0x7aa   : > { %3147 = vmatpush.msra.mxu3 %v2927_v16  ;;  %v2964_v16 = vld [vmem:[#allocation4 + $0x770] sm:$0xff] }
 0x7ac   : > { %3148 = vmatpush.msra.mxu3 %v2923_v6  ;;  %v2897_v6 = vld [vmem:[#allocation4 + $0x558] sm:$0xff] }
 0x7b3   : > { %v2319_v18 = vpop.f32.mrf.mxu3 }
 0x7b4   : > { %2707 = vrot.lane.b32.xlu1 %v2319_v18, %s3897_s24  ;;  %v2826_v18 = vld [vmem:[#allocation4 + $0x320] sm:$0xff] }
 0x7b5   : > { %3020 = vmatpush.msrb.mxu1 %v2826_v18  ;;  %v2811_v18 = vld [vmem:[#allocation4 + $0x2a8] sm:$0xff] }
 0x7b7   : > { %3021 = vmatpush.msrb.mxu1 %v2822_v11  ;;  %v2916_v11 = vld [vmem:[#allocation4 + $0x5f0] sm:$0xff] }
 0x7bb   : > { %v2447_v61 = vpop.f32.mrf.mxu3 }
 0x7c3   : > { %v2575_v25 = vpop.f32.mrf.mxu3 }
 0x7c4   : > { %2715 = vrot.lane.b32.xlu2 %v2575_v25, %s3897_s24  ;;  %v2818_v25 = vld [vmem:[#allocation4 + $0x2e0] sm:$0xff] }
 0x7c5   : > { %3022 = vmatpush.msrb.mxu1 %v2818_v25  ;;  %v2912_v25 = vld [vmem:[#allocation4 + $0x5d0] sm:$0xff] }
 0x7c7   : > { %3023 = vmatpush.msrb.mxu1 %v2814_v19  ;;  %v2799_v19 = vld [vmem:[#allocation4 + $0x248] sm:$0xff] }
 0x7c9   : > { %3024 = vmatpush.msrb.mxu1 %v2810_v62  ;;  %v2795_v62 = vld [vmem:[#allocation4 + $0x228] sm:$0xff] }
 0x7cb   : > { %v2703_v52 = vpop.f32.mrf.mxu3  ;;  %3025 = vmatpush.msrb.mxu1 %v2806_v17  ;;  %v2768_v17 = vld [vmem:[#allocation4 + $0x150] sm:$0xff] }
 0x7cc   : > { %2719 = vrot.lane.b32.xlu1 %v2703_v52, %s3897_s24  ;;  %v2763_v52 = vld [vmem:[#allocation4 + $0x128] sm:$0xff] }
 0x7cd   : > { %3080 = vmatpush.msra.mxu0 %v2763_v52  ;;  %3026 = vmatpush.msrb.mxu1 %v2802_v8  ;;  %v4560_v50 = vpop.f32.mrf.mxu1  ;;  %v2908_v52 = vld [vmem:[#allocation4 + $0x5b0] sm:$0xff] }
 0x7ce   : > { %v2760_v8 = vld [vmem:[#allocation4 + $0x110] sm:$0xff] }
 0x7cf   : > { %3081 = vmatpush.msra.mxu0 %v2759_v26  ;;  %3027 = vmatpush.msrb.mxu1 %v2798_v9  ;;  %v2868_v9 = vld [vmem:[#allocation4 + $0x470] sm:$0xff] }
 0x7d1   : > { %3082 = vmatpush.msra.mxu0 %v2755_v4  ;;  %3028 = vmatpush.msrb.mxu1 %v2794_v39  ;;  %v2748_v39 = vld [vmem:[#allocation4 + $0xb0] sm:$0xff] }
 0x7d3   : > { %3083 = vmatpush.msra.mxu0 %v2751_v54  ;;  %3029 = vmatpush.msrb.mxu1 %v2790_v43  ;;  %v2791_v54 = vld [vmem:[#allocation4 + $0x208] sm:$0xff]  ;;  %v2856_v43 = vld [vmem:[#allocation4 + $0x410] sm:$0xff] }
 0x7d4   : > { %2711 = vrot.lane.b32.xlu1 %v2447_v61, %s3897_s24  ;;  %v2879_v61 = vld [vmem:[#allocation4 + $0x4c8] sm:$0xff] }
 0x7d5   : > { %3123 = vmatpush.msra.mxu2 %v2879_v61  ;;  %3084 = vmatpush.msra.mxu0 %v2747_v35  ;;  %v2919_v61 = vld [vmem:[#allocation4 + $0x608] sm:$0xff]  ;;  %v2776_v35 = vld [vmem:[#allocation4 + $0x190] sm:$0xff] }
 0x7d6   : > { %3094 = vmatpush.msra.mxu1 %v2851_v23  ;;  %3149 = vmatpush.msra.mxu3 %v2919_v61  ;;  %v2956_v61 = vld [vmem:[#allocation4 + $0x730] sm:$0xff] }
 0x7d7   : > { %3124 = vmatpush.msra.mxu2 %v2875_v49  ;;  %3085 = vmatpush.msra.mxu0 %v2743_v34  ;;  %v2904_v49 = vld [vmem:[#allocation4 + $0x590] sm:$0xff] }
 0x7d8   : > { %3095 = vmatpush.msra.mxu1 %v2847_v46  ;;  %v2772_v34 = vld [vmem:[#allocation4 + $0x170] sm:$0xff]  ;;  %v2917_v46 = vld [vmem:[#allocation4 + $0x5f8] sm:$0xff] }
 0x7d9   : > { %3125 = vmatpush.msra.mxu2 %v2871_v36  ;;  %3086 = vmatpush.msra.mxu0 %v2739_v24  ;;  %v2900_v36 = vld [vmem:[#allocation4 + $0x570] sm:$0xff] }
 0x7da   : > { %3096 = vmatpush.msra.mxu1 %v2843_v0  ;;  %v2764_v24 = vld [vmem:[#allocation4 + $0x130] sm:$0xff] }
 0x7db   : > { %3126 = vmatpush.msra.mxu2 %v2867_v42  ;;  %3087 = vmatpush.msra.mxu0 %v2735_v27  ;;  %v2896_v42 = vld [vmem:[#allocation4 + $0x550] sm:$0xff] }
 0x7dc   : > { %3097 = vmatpush.msra.mxu1 %v2839_v55  ;;  %v2872_v27 = vld [vmem:[#allocation4 + $0x490] sm:$0xff] }
 0x7dd   : > { %3127 = vmatpush.msra.mxu2 %v2863_v44  ;;  %3088 = vmatpush.msra.mxu0 %v2731_v37  ;;  %v2892_v44 = vld [vmem:[#allocation4 + $0x530] sm:$0xff] }
 0x7de   : > { %3098 = vmatpush.msra.mxu1 %v2835_v20  ;;  %v2752_v37 = vld [vmem:[#allocation4 + $0xd0] sm:$0xff]  ;;  %v2909_v20 = vld [vmem:[#allocation4 + $0x5b8] sm:$0xff] }
 0x7df   : > { %3128 = vmatpush.msra.mxu2 %v2859_v51  ;;  %3089 = vmatpush.msra.mxu0 %v2727_v40  ;;  %v2888_v51 = vld [vmem:[#allocation4 + $0x510] sm:$0xff] }
 0x7e0   : > { %3099 = vmatpush.msra.mxu1 %v2831_v22  ;;  %v2860_v40 = vld [vmem:[#allocation4 + $0x430] sm:$0xff] }
 0x7e1   : > { %3129 = vmatpush.msra.mxu2 %v2855_v21  ;;  %v2884_v21 = vld [vmem:[#allocation4 + $0x4f0] sm:$0xff] }
 0x7e2   : > { %3100 = vmatpush.msra.mxu1 %v2827_v60  ;;  %v2980_v0 = vld [vmem:[#allocation4 + $0x7f0] sm:$0xff] }
 0x7e3   : > { %v2736_v55 = vld [vmem:[#allocation4 + $0x50] sm:$0xff] }
 0x7e4   : > { %3101 = vmatpush.msra.mxu1 %v2823_v1  ;;  %v2972_v22 = vld [vmem:[#allocation4 + $0x7b0] sm:$0xff] }
 0x7e5   : > { %v2728_v60 = vld [vmem:[#allocation4 + $0x10] sm:$0xff] }
 0x7e6   : > { %3102 = vmatpush.msra.mxu1 %v2819_v3  ;;  %v2901_v3 = vld [vmem:[#allocation4 + $0x578] sm:$0xff] }
 0x7e8   : > { %3103 = vmatpush.msra.mxu1 %v2815_v14  ;;  %v2852_v14 = vld [vmem:[#allocation4 + $0x3f0] sm:$0xff] }
 0x7ea   : > { %3104 = vmatpush.msra.mxu1 %v2811_v18  ;;  %v2785_v18 = vld [vmem:[#allocation4 + $0x1d8] sm:$0xff] }
 0x7eb   : > { %v4562_v28 = vpop.f32.mrf.mxu1 }
 0x7ec   : > { %3105 = vmatpush.msra.mxu1 %v2807_v12  ;;  %v2844_v12 = vld [vmem:[#allocation4 + $0x3b0] sm:$0xff] }
 0x7ee   : > { %3106 = vmatpush.msra.mxu1 %v2803_v15  ;;  %v2840_v15 = vld [vmem:[#allocation4 + $0x390] sm:$0xff] }
 0x7f0   : > { %3107 = vmatpush.msra.mxu1 %v2799_v19  ;;  %v2773_v19 = vld [vmem:[#allocation4 + $0x178] sm:$0xff] }
 0x7f2   : > { %3108 = vmatpush.msra.mxu1 %v2795_v62  ;;  %v2769_v62 = vld [vmem:[#allocation4 + $0x158] sm:$0xff] }
 0x7f3   : > { %v2508_v7 = vpop.f32.mrf.mxu1 }
 0x7f4   : > { %3109 = vmatpush.msra.mxu1 %v2791_v54  ;;  %v2832_v54 = vld [vmem:[#allocation4 + $0x350] sm:$0xff] }
 0x7fb   : > { %v2636_v23 = vpop.f32.mrf.mxu1 }
 0x81e   : > { %v2716_v57 = vpop.permute.xlu2 %2715 }
 0x81f   : > { %v4565_v30 = vsel %vm915_vm2, %v2508_v7, %v2716_v57  ;;  %v2848_v7 = vld [vmem:[#allocation4 + $0x3d0] sm:$0xff] }
 0x820   : > { %3050 = vmatmul.f32.vlgmr.msrb.gmra.mxu2 %v4565_v30  ;;  %v2960_v57 = vld [vmem:[#allocation4 + $0x750] sm:$0xff] }
 0x821   : > { %3194 = vmatpush.msrb.mxu2 %v2916_v11  ;;  %v2781_v11 = vld [vmem:[#allocation4 + $0x1b8] sm:$0xff] }
 0x823   : > { %3195 = vmatpush.msrb.mxu2 %v2912_v25  ;;  %v2777_v25 = vld [vmem:[#allocation4 + $0x198] sm:$0xff] }
 0x825   : > { %3196 = vmatpush.msrb.mxu2 %v2908_v52  ;;  %v2889_v52 = vld [vmem:[#allocation4 + $0x518] sm:$0xff] }
 0x826   : > { %v2708_v26 = vpop.permute.xlu1 %2707 }
 0x827   : > { %v4570_v4 = vsel %vm915_vm2, %v4560_v50, %v2708_v26  ;;  %3197 = vmatpush.msrb.mxu2 %v2904_v49  ;;  %v2952_v49 = vld [vmem:[#allocation4 + $0x710] sm:$0xff]  ;;  %v2885_v26 = vld [vmem:[#allocation4 + $0x4f8] sm:$0xff] }
 0x828   : > { %3010 = vmatmul.f32.vlgmr.msrb.gmra.mxu0 %v4570_v4  ;;  %3130 = vmatmul.f32.vlgmr.msra.gmra.mxu2 %v4565_v30 }
 0x829   : > { %3154 = vmatpush.msrb.mxu0 %v2788_v32  ;;  %3198 = vmatpush.msrb.mxu2 %v2900_v36  ;;  %v2948_v32 = vld [vmem:[#allocation4 + $0x6f0] sm:$0xff] }
 0x82a   : > { %v2836_v36 = vld [vmem:[#allocation4 + $0x370] sm:$0xff] }
 0x82b   : > { %3155 = vmatpush.msrb.mxu0 %v2784_v33  ;;  %3199 = vmatpush.msrb.mxu2 %v2896_v42  ;;  %v2881_v33 = vld [vmem:[#allocation4 + $0x4d8] sm:$0xff]  ;;  %v2944_v42 = vld [vmem:[#allocation4 + $0x6d0] sm:$0xff] }
 0x82d   : > { %3156 = vmatpush.msrb.mxu0 %v2780_v58  ;;  %3200 = vmatpush.msrb.mxu2 %v2892_v44  ;;  %v2765_v58 = vld [vmem:[#allocation4 + $0x138] sm:$0xff] }
 0x82e   : > { %v2877_v44 = vld [vmem:[#allocation4 + $0x4b8] sm:$0xff] }
 0x82f   : > { %3157 = vmatpush.msrb.mxu0 %v2776_v35  ;;  %3201 = vmatpush.msrb.mxu2 %v2888_v51  ;;  %v2940_v35 = vld [vmem:[#allocation4 + $0x6b0] sm:$0xff] }
 0x830   : > { %3090 = vmatmul.f32.vlgmr.msra.gmra.mxu0 %v4570_v4  ;;  %v2828_v51 = vld [vmem:[#allocation4 + $0x330] sm:$0xff] }
 0x831   : > { %3158 = vmatpush.msrb.mxu0 %v2772_v34  ;;  %3202 = vmatpush.msrb.mxu2 %v2884_v21  ;;  %v2761_v34 = vld [vmem:[#allocation4 + $0x118] sm:$0xff] }
 0x832   : > { %v2873_v21 = vld [vmem:[#allocation4 + $0x498] sm:$0xff] }
 0x833   : > { %3159 = vmatpush.msrb.mxu0 %v2768_v17  ;;  %3203 = vmatpush.msrb.mxu2 %v2880_v29  ;;  %v2936_v17 = vld [vmem:[#allocation4 + $0x690] sm:$0xff] }
 0x834   : > { %v2824_v29 = vld [vmem:[#allocation4 + $0x310] sm:$0xff] }
 0x835   : > { %3160 = vmatpush.msrb.mxu0 %v2764_v24  ;;  %3204 = vmatpush.msrb.mxu2 %v2876_v13  ;;  %v2757_v24 = vld [vmem:[#allocation4 + $0xf8] sm:$0xff] }
 0x836   : > { %v2869_v13 = vld [vmem:[#allocation4 + $0x478] sm:$0xff] }
 0x837   : > { %3161 = vmatpush.msrb.mxu0 %v2760_v8  ;;  %3205 = vmatpush.msrb.mxu2 %v2872_v27  ;;  %v2932_v8 = vld [vmem:[#allocation4 + $0x670] sm:$0xff] }
 0x838   : > { %v2820_v27 = vld [vmem:[#allocation4 + $0x2f0] sm:$0xff] }
 0x839   : > { %3162 = vmatpush.msrb.mxu0 %v2756_v45  ;;  %3206 = vmatpush.msrb.mxu2 %v2868_v9  ;;  %v2753_v45 = vld [vmem:[#allocation4 + $0xd8] sm:$0xff] }
 0x83a   : > { %v2865_v9 = vld [vmem:[#allocation4 + $0x458] sm:$0xff] }
 0x83b   : > { %3163 = vmatpush.msrb.mxu0 %v2752_v37  ;;  %3207 = vmatpush.msrb.mxu2 %v2864_v38  ;;  %v2928_v37 = vld [vmem:[#allocation4 + $0x650] sm:$0xff] }
 0x83c   : > { %v2816_v38 = vld [vmem:[#allocation4 + $0x2d0] sm:$0xff] }
 0x83d   : > { %3164 = vmatpush.msrb.mxu0 %v2748_v39  ;;  %3208 = vmatpush.msrb.mxu2 %v2860_v40  ;;  %v2749_v39 = vld [vmem:[#allocation4 + $0xb8] sm:$0xff] }
 0x83e   : > { %v2720_v47 = vpop.permute.xlu1 %2719  ;;  %v2861_v40 = vld [vmem:[#allocation4 + $0x438] sm:$0xff] }
 0x83f   : > { %3165 = vmatpush.msrb.mxu0 %v2744_v41  ;;  %3209 = vmatpush.msrb.mxu2 %v2856_v43  ;;  %v4576_v50 = vsel %vm915_vm2, %v2636_v23, %v2720_v47  ;;  %v2924_v41 = vld [vmem:[#allocation4 + $0x630] sm:$0xff]  ;;  %v2745_v23 = vld [vmem:[#allocation4 + $0x98] sm:$0xff] }
 0x840   : > { %3210 = vmatmul.f32.vlgmr.msrb.gmra.mxu2 %v4565_v30  ;;  %3070 = vmatmul.f32.vlgmr.msrb.gmra.mxu3 %v4576_v50  ;;  %v2812_v43 = vld [vmem:[#allocation4 + $0x2b0] sm:$0xff]  ;;  %v2857_v47 = vld [vmem:[#allocation4 + $0x418] sm:$0xff] }
 0x841   : > { %3274 = vmatpush.msra.mxu2 %v2917_v46  ;;  %3166 = vmatpush.msrb.mxu0 %v2740_v48  ;;  %v2920_v46 = vld [vmem:[#allocation4 + $0x610] sm:$0xff] }
 0x842   : > { %3214 = vmatpush.msrb.mxu3 %v2980_v0  ;;  %v2808_v48 = vld [vmem:[#allocation4 + $0x290] sm:$0xff]  ;;  %v2741_v0 = vld [vmem:[#allocation4 + $0x78] sm:$0xff] }
 0x843   : > { %3275 = vmatpush.msra.mxu2 %v2913_v53  ;;  %3167 = vmatpush.msrb.mxu0 %v2736_v55  ;;  %v2981_v53 = vld [vmem:[#allocation4 + $0x7f8] sm:$0xff]  ;;  %v2804_v55 = vld [vmem:[#allocation4 + $0x270] sm:$0xff] }
 0x844   : > { %3215 = vmatpush.msrb.mxu3 %v2976_v10  ;;  %v2737_v10 = vld [vmem:[#allocation4 + $0x58] sm:$0xff] }
 0x845   : > { %3276 = vmatpush.msra.mxu2 %v2909_v20  ;;  %3168 = vmatpush.msrb.mxu0 %v2732_v63  ;;  %v2977_v20 = vld [vmem:[#allocation4 + $0x7d8] sm:$0xff]  ;;  %v2800_v63 = vld [vmem:[#allocation4 + $0x250] sm:$0xff] }
 0x846   : > { %3216 = vmatpush.msrb.mxu3 %v2972_v22  ;;  %v2712_v1 = vpop.permute.xlu1 %2711  ;;  %v2733_v22 = vld [vmem:[#allocation4 + $0x38] sm:$0xff] }
 0x847   : > { %3277 = vmatpush.msra.mxu2 %v2905_v56  ;;  %3169 = vmatpush.msrb.mxu0 %v2728_v60  ;;  %v4582_v5 = vsel %vm915_vm2, %v4562_v28, %v2712_v1  ;;  %v2893_v28 = vld [vmem:[#allocation4 + $0x538] sm:$0xff]  ;;  %v2796_v60 = vld [vmem:[#allocation4 + $0x230] sm:$0xff] }
 0x848   : > { %3217 = vmatpush.msrb.mxu3 %v2968_v59  ;;  %3170 = vmatmul.f32.vlgmr.msrb.gmra.mxu0 %v4570_v4  ;;  %v2973_v56 = vld [vmem:[#allocation4 + $0x7b8] sm:$0xff] }
 0x849   : > { %3234 = vmatpush.msra.mxu0 %v2789_v2  ;;  %3278 = vmatpush.msra.mxu2 %v2901_v3  ;;  %v2729_v59 = vld [vmem:[#allocation4 + $0x18] sm:$0xff]  ;;  %v2792_v2 = vld [vmem:[#allocation4 + $0x210] sm:$0xff] }
 0x84a   : > { %3030 = vmatmul.f32.vlgmr.msrb.gmra.mxu1 %v4582_v5  ;;  %3150 = vmatmul.f32.vlgmr.msra.gmra.mxu3 %v4576_v50  ;;  %v2969_v1 = vld [vmem:[#allocation4 + $0x798] sm:$0xff] }
 0x84b   : > { %3174 = vmatpush.msrb.mxu1 %v2852_v14  ;;  %3218 = vmatpush.msrb.mxu3 %v2964_v16  ;;  %v2853_v3 = vld [vmem:[#allocation4 + $0x3f8] sm:$0xff] }
 0x84c   : > { %3235 = vmatpush.msra.mxu0 %v2785_v18  ;;  %3279 = vmatpush.msra.mxu2 %v2897_v6  ;;  %v2965_v14 = vld [vmem:[#allocation4 + $0x778] sm:$0xff] }
 0x84d   : > { %3175 = vmatpush.msrb.mxu1 %v2848_v7  ;;  %3219 = vmatpush.msrb.mxu3 %v2960_v57  ;;  %v2849_v16 = vld [vmem:[#allocation4 + $0x3d8] sm:$0xff] }
 0x84e   : > { %3236 = vmatpush.msra.mxu0 %v2781_v11  ;;  %3280 = vmatpush.msra.mxu2 %v2893_v28  ;;  %v2961_v18 = vld [vmem:[#allocation4 + $0x758] sm:$0xff] }
 0x84f   : > { %3176 = vmatpush.msrb.mxu1 %v2844_v12  ;;  %3220 = vmatpush.msrb.mxu3 %v2956_v61  ;;  %v2845_v6 = vld [vmem:[#allocation4 + $0x3b8] sm:$0xff] }
 0x850   : > { %3237 = vmatpush.msra.mxu0 %v2777_v25  ;;  %3281 = vmatpush.msra.mxu2 %v2889_v52  ;;  %v2957_v7 = vld [vmem:[#allocation4 + $0x738] sm:$0xff] }
 0x851   : > { %3177 = vmatpush.msrb.mxu1 %v2840_v15  ;;  %3221 = vmatpush.msrb.mxu3 %v2952_v49  ;;  %v2841_v57 = vld [vmem:[#allocation4 + $0x398] sm:$0xff] }
 0x852   : > { %3238 = vmatpush.msra.mxu0 %v2773_v19  ;;  %3282 = vmatpush.msra.mxu2 %v2885_v26  ;;  %v2953_v11 = vld [vmem:[#allocation4 + $0x718] sm:$0xff] }
 0x853   : > { %3110 = vmatmul.f32.vlgmr.msra.gmra.mxu1 %v4582_v5  ;;  %3222 = vmatpush.msrb.mxu3 %v2948_v32  ;;  %v2837_v28 = vld [vmem:[#allocation4 + $0x378] sm:$0xff] }
 0x854   : > { %3178 = vmatpush.msrb.mxu1 %v2836_v36  ;;  %3239 = vmatpush.msra.mxu0 %v2769_v62  ;;  %v2949_v12 = vld [vmem:[#allocation4 + $0x6f8] sm:$0xff] }
 0x855   : > { %3283 = vmatpush.msra.mxu2 %v2881_v33  ;;  %3223 = vmatpush.msrb.mxu3 %v2944_v42  ;;  %v2833_v61 = vld [vmem:[#allocation4 + $0x358] sm:$0xff] }
 0x856   : > { %3179 = vmatpush.msrb.mxu1 %v2832_v54  ;;  %3240 = vmatpush.msra.mxu0 %v2765_v58  ;;  %v2945_v25 = vld [vmem:[#allocation4 + $0x6d8] sm:$0xff] }
 0x857   : > { %3284 = vmatpush.msra.mxu2 %v2877_v44  ;;  %3224 = vmatpush.msrb.mxu3 %v2940_v35  ;;  %v2829_v52 = vld [vmem:[#allocation4 + $0x338] sm:$0xff] }
 0x858   : > { %3180 = vmatpush.msrb.mxu1 %v2828_v51  ;;  %3241 = vmatpush.msra.mxu0 %v2761_v34  ;;  %v2941_v15 = vld [vmem:[#allocation4 + $0x6b8] sm:$0xff] }
 0x859   : > { %3285 = vmatpush.msra.mxu2 %v2873_v21  ;;  %3225 = vmatpush.msrb.mxu3 %v2936_v17  ;;  %v2825_v49 = vld [vmem:[#allocation4 + $0x318] sm:$0xff] }
 0x85a   : > { %3181 = vmatpush.msrb.mxu1 %v2824_v29  ;;  %3242 = vmatpush.msra.mxu0 %v2757_v24  ;;  %v2937_v19 = vld [vmem:[#allocation4 + $0x698] sm:$0xff] }
 0x85b   : > { %3286 = vmatpush.msra.mxu2 %v2869_v13  ;;  %3226 = vmatpush.msrb.mxu3 %v2932_v8  ;;  %v2821_v26 = vld [vmem:[#allocation4 + $0x2f8] sm:$0xff] }
 0x85c   : > { %3182 = vmatpush.msrb.mxu1 %v2820_v27  ;;  %3243 = vmatpush.msra.mxu0 %v2753_v45  ;;  %v2933_v32 = vld [vmem:[#allocation4 + $0x678] sm:$0xff]  ;;  %v2982_v27 = vld [vmem:[%s4627_s10] sm:$0xf] }
 0x85d   : > { %3287 = vmatpush.msra.mxu2 %v2865_v9  ;;  %3227 = vmatpush.msrb.mxu3 %v2928_v37  ;;  %v2817_v36 = vld [vmem:[#allocation4 + $0x2d8] sm:$0xff]  ;;  %v2987_v45 = vperm.slane %v2982_v27, 1  ;;  %v2986_v9 = vperm.slane %v2982_v27, 0  ;;  %v2988_v37 = vperm.slane %v2982_v27, 2 }
 0x85e   : > { %3183 = vmatpush.msrb.mxu1 %v2816_v38  ;;  %3244 = vmatpush.msra.mxu0 %v2749_v39  ;;  %v2929_v62 = vld [vmem:[#allocation4 + $0x658] sm:$0xff] }
 0x85f   : > { %3288 = vmatpush.msra.mxu2 %v2861_v40  ;;  %3228 = vmatpush.msrb.mxu3 %v2924_v41  ;;  %v2813_v33 = vld [vmem:[#allocation4 + $0x2b8] sm:$0xff] }
 0x860   : > { %3184 = vmatpush.msrb.mxu1 %v2812_v43  ;;  %3245 = vmatpush.msra.mxu0 %v2745_v23  ;;  %v2925_v42 = vld [vmem:[#allocation4 + $0x638] sm:$0xff] }
 0x861   : > { %3289 = vmatpush.msra.mxu2 %v2857_v47  ;;  %3229 = vmatpush.msrb.mxu3 %v2920_v46  ;;  %v2809_v54 = vld [vmem:[#allocation4 + $0x298] sm:$0xff] }
 0x862   : > { %3185 = vmatpush.msrb.mxu1 %v2808_v48  ;;  %3290 = vmatmul.f32.vlgmr.msra.gmra.mxu2 %v4565_v30  ;;  %v2921_v58 = vld [vmem:[#allocation4 + $0x618] sm:$0xff] }
 0x863   : > { %3230 = vmatmul.f32.vlgmr.msrb.gmra.mxu3 %v4576_v50  ;;  %3246 = vmatpush.msra.mxu0 %v2741_v0  ;;  %v2805_v44 = vld [vmem:[#allocation4 + $0x278] sm:$0xff] }
 0x864   : > { %3294 = vmatpush.msra.mxu3 %v2981_v53  ;;  %3186 = vmatpush.msrb.mxu1 %v2804_v55  ;;  %v2801_v35 = vld [vmem:[#allocation4 + $0x258] sm:$0xff] }
 0x865   : > { %3247 = vmatpush.msra.mxu0 %v2737_v10  ;;  %v2797_v51 = vld [vmem:[#allocation4 + $0x238] sm:$0xff] }
 0x866   : > { %3295 = vmatpush.msra.mxu3 %v2977_v20  ;;  %3187 = vmatpush.msrb.mxu1 %v2800_v63  ;;  %v2793_v34 = vld [vmem:[#allocation4 + $0x218] sm:$0xff]  ;;  %v2989_v20 = vperm.slane %v2982_v27, 3 }
 0x867   : > { %3248 = vmatpush.msra.mxu0 %v2733_v22 }
 0x868   : > { %3296 = vmatpush.msra.mxu3 %v2973_v56  ;;  %3188 = vmatpush.msrb.mxu1 %v2796_v60 }
 0x869   : > { %3249 = vmatpush.msra.mxu0 %v2729_v59 }
 0x86a   : > { %3297 = vmatpush.msra.mxu3 %v2969_v1  ;;  %3189 = vmatpush.msrb.mxu1 %v2792_v2 }
 0x86b   : > { %3250 = vmatmul.f32.vlgmr.msra.gmra.mxu0 %v4570_v4  ;;  %3190 = vmatmul.f32.vlgmr.msrb.gmra.mxu1 %v4582_v5 }
 0x86c   : > { %3254 = vmatpush.msra.mxu1 %v2853_v3  ;;  %3298 = vmatpush.msra.mxu3 %v2965_v14 }
 0x86e   : > { %3255 = vmatpush.msra.mxu1 %v2849_v16  ;;  %3299 = vmatpush.msra.mxu3 %v2961_v18 }
 0x870   : > { %3256 = vmatpush.msra.mxu1 %v2845_v6  ;;  %3300 = vmatpush.msra.mxu3 %v2957_v7 }
 0x872   : > { %3257 = vmatpush.msra.mxu1 %v2841_v57  ;;  %3301 = vmatpush.msra.mxu3 %v2953_v11 }
 0x874   : > { %3258 = vmatpush.msra.mxu1 %v2837_v28  ;;  %3302 = vmatpush.msra.mxu3 %v2949_v12 }
 0x876   : > { %3259 = vmatpush.msra.mxu1 %v2833_v61  ;;  %3303 = vmatpush.msra.mxu3 %v2945_v25 }
 0x878   : > { %3260 = vmatpush.msra.mxu1 %v2829_v52  ;;  %3304 = vmatpush.msra.mxu3 %v2941_v15 }
 0x87a   : > { %3261 = vmatpush.msra.mxu1 %v2825_v49  ;;  %3305 = vmatpush.msra.mxu3 %v2937_v19 }
 0x87c   : > { %3262 = vmatpush.msra.mxu1 %v2821_v26  ;;  %3306 = vmatpush.msra.mxu3 %v2933_v32 }
 0x87e   : > { %3263 = vmatpush.msra.mxu1 %v2817_v36  ;;  %3307 = vmatpush.msra.mxu3 %v2929_v62 }
 0x880   : > { %3264 = vmatpush.msra.mxu1 %v2813_v33  ;;  %3308 = vmatpush.msra.mxu3 %v2925_v42 }
 0x882   : > { %3265 = vmatpush.msra.mxu1 %v2809_v54  ;;  %3309 = vmatpush.msra.mxu3 %v2921_v58 }
 0x883   : > { %3310 = vmatmul.f32.vlgmr.msra.gmra.mxu3 %v4576_v50 }
 0x884   : > { %3266 = vmatpush.msra.mxu1 %v2805_v44 }
 0x886   : > { %3267 = vmatpush.msra.mxu1 %v2801_v35 }
 0x888   : > { %3268 = vmatpush.msra.mxu1 %v2797_v51 }
 0x88a   : > { %3269 = vmatpush.msra.mxu1 %v2793_v34 }
 0x88b   : > { %3270 = vmatmul.f32.vlgmr.msra.gmra.mxu1 %v4582_v5 }
 0x8a3   : > { %v3051_v29 = vpop.f32.mrf.mxu2 }
 0x8a5   : > { %v3011_v21 = vpop.f32.mrf.mxu0 }
 0x8a6   : > { %v3012_v23 = vadd.f32 %v3011_v21, %v2986_v9 }
 0x8ab   : > { %v3131_v38 = vpop.f32.mrf.mxu2 }
 0x8ad   : > { %v3091_v24 = vpop.f32.mrf.mxu0 }
 0x8ae   : > { %v3092_v40 = vadd.f32 %v3091_v24, %v2987_v45  ;;  %v2984_v24 = vld [vmem:[%s4631_s14] sm:$0xf] }
 0x8c3   : > { %v3071_v13 = vpop.f32.mrf.mxu3  ;;  %v3211_v55 = vpop.f32.mrf.mxu2 }
 0x8c5   : > { %v3171_v39 = vpop.f32.mrf.mxu0 }
 0x8c6   : > { %v3172_v47 = vadd.f32 %v3171_v39, %v2988_v37  ;;  %v3369_v39 = vperm.slane %v2984_v24, 2 }
 0x8c7   : > { %v3031_v17 = vpop.f32.mrf.mxu1 }
 0x8c8   : > { %v3032_v48 = vadd.f32 %v3031_v17, %v3012_v23  ;;  %v2983_v17 = vld [vmem:[%s4630_s13] sm:$0xf] }
 0x8c9   : > { %v3355_v27 = vperm.slane %v2983_v17, 1  ;;  %v3356_v45 = vperm.slane %v2983_v17, 2  ;;  %v3357_v9 = vperm.slane %v2983_v17, 3 }
 0x8ca   : > { %v3052_v10 = vadd.f32 %v3051_v29, %v3032_v48 }
 0x8cc   : > { %v3072_v59 = vadd.f32 %v3071_v13, %v3052_v10 }
 0x8cd   : > { %v3151_v41 = vpop.f32.mrf.mxu3 }
 0x8ce   : > { %v3314_v6 = vadd.f32 %v3072_v59, %v4570_v4 }
 0x8d0   : > { %v3111_v8 = vpop.f32.mrf.mxu1 }
 0x8d1   : > { %v3112_v46 = vadd.f32 %v3111_v8, %v3092_v40  ;;  %v3354_v8 = vperm.slane %v2983_v17, 0  ;;  %v3370_v40 = vperm.slane %v2984_v24, 3 }
 0x8d3   : > { %v3132_v53 = vadd.f32 %v3131_v38, %v3112_v46  ;;  %v3368_v38 = vperm.slane %v2984_v24, 1 }
 0x8d5   : > { %v3152_v60 = vadd.f32 %v3151_v41, %v3132_v53 }
 0x8d7   : > { %v3315_v14 = vadd.f32 %v3152_v60, %v4582_v5 }
 0x8d9   : > { %v3318_v12 = vadd.f32 %v3315_v14, %v3314_v6 }
 0x8e5   : > { %v3291_v18 = vpop.f32.mrf.mxu2 }
 0x8e6   : > { %v3231_v22 = vpop.f32.mrf.mxu3 }
 0x8e8   : > { %v3191_v43 = vpop.f32.mrf.mxu1  ;;  %v3251_v56 = vpop.f32.mrf.mxu0 }
 0x8e9   : > { %v3192_v0 = vadd.f32 %v3191_v43, %v3172_v47  ;;  %v3252_v1 = vadd.f32 %v3251_v56, %v2989_v20 }
 0x8eb   : > { %v3212_v63 = vadd.f32 %v3211_v55, %v3192_v0 }
 0x8ed   : > { %v3232_v2 = vadd.f32 %v3231_v22, %v3212_v63 }
 0x8ef   : > { %v3316_v57 = vadd.f32 %v3232_v2, %v4565_v30 }
 0x8f1   : > { %v3319_v25 = vadd.f32 %v3318_v12, %v3316_v57 }
 0x906   : > { %v3311_v11 = vpop.f32.mrf.mxu3 }
 0x908   : > { %v3271_v3 = vpop.f32.mrf.mxu1 }
 0x909   : > { %v3272_v16 = vadd.f32 %v3271_v3, %v3252_v1 }
 0x90b   : > { %v3292_v7 = vadd.f32 %v3291_v18, %v3272_v16 }
 0x90d   : > { %v3312_v28 = vadd.f32 %v3311_v11, %v3292_v7 }
 0x90f   : > { %v3317_v61 = vadd.f32 %v3312_v28, %v4576_v50 }
 0x911   : > { %v3320_v52 = vadd.f32 %v3319_v25, %v3317_v61 }
 0x913   : > { %3321 = vadd.xlane.f32.xlu0 %v3320_v52 }
 0x986   : > { %v3322_v15 = vpop.xlane.xlu0 %3321 }
 0x987   : > { %v3323_v49 = vmul.f32 %v3322_v15, %v4456_v31 }
 0x989   : > { %v3324_v19 = vsub.f32 %v3314_v6, %v3323_v49  ;;  %v3325_v5 = vsub.f32 %v3315_v14, %v3323_v49  ;;  %v3326_v26 = vsub.f32 %v3316_v57, %v3323_v49  ;;  %v3327_v32 = vsub.f32 %v3317_v61, %v3323_v49 }
 0x98b   : > { %v3328_v36 = vmul.f32 %v3324_v19, %v3324_v19  ;;  %v3329_v4 = vmul.f32 %v3325_v5, %v3325_v5  ;;  %v3330_v62 = vmul.f32 %v3326_v26, %v3326_v26  ;;  %v3331_v30 = vmul.f32 %v3327_v32, %v3327_v32 }
 0x98d   : > { %v3332_v33 = vadd.f32 %v3329_v4, %v3328_v36 }
 0x98f   : > { %v3333_v42 = vadd.f32 %v3332_v33, %v3330_v62 }
 0x991   : > { %v3334_v54 = vadd.f32 %v3333_v42, %v3331_v30 }
 0x993   : > { %3335 = vadd.xlane.f32.xlu2 %v3334_v54 }
 0xa06   : > { %v3336_v58 = vpop.xlane.xlu2 %3335 }
 0xa07   : > { %v3337_v50 = vmul.f32 %v3336_v58, %v4456_v31  ;;  %v3367_v31 = vperm.slane %v2984_v24, 0 }
 0xa09   : > { %v3338_v44 = vadd.f32 1e-05, %v3337_v50 }
 0xa0b   : > { %3814 = vrsqrt.f32 %v3338_v44  ;;  %vm3345_vm13 = vweird.f32 %v3338_v44 }
 0xa11   : > { %v3815_v35 = vpop.eup %3814 }
 0xa12   : > { %v3340_v51 = vmul.f32 %v3815_v35, %v3338_v44  ;;  %vm3346_vm12 = vweird.f32 %v3815_v35 }
 0xa13   : > { %vm3347_vm14 = vmor %vm3345_vm13, %vm3346_vm12 }
 0xa14   : > { %v3341_v34 = vmul.f32 %v3815_v35, %v3340_v51 }
 0xa16   : > { %v3342_v21 = vmul.f32 0.5, %v3341_v34 }
 0xa18   : > { %v3343_v29 = vsub.f32 1.5, %v3342_v21 }
 0xa1a   : > { %v3344_v13 = vmul.f32 %v3815_v35, %v3343_v29 }
 0xa1c   : > { %v3348_v37 = vsel %vm3347_vm14, %v3815_v35, %v3344_v13 }
 0xa1d   : > { %v3349_v41 = vmul.f32 %v3348_v37, %v3324_v19  ;;  %v3350_v43 = vmul.f32 %v3348_v37, %v3325_v5  ;;  %v3351_v23 = vmul.f32 %v3348_v37, %v3326_v26  ;;  %v3352_v47 = vmul.f32 %v3348_v37, %v3327_v32 }
 0xa1f   : > { %v3362_v46 = vmul.f32 %v3354_v8, %v3349_v41  ;;  %v3363_v48 = vmul.f32 %v3355_v27, %v3350_v43  ;;  %v3364_v0 = vmul.f32 %v3356_v45, %v3351_v23  ;;  %v3365_v53 = vmul.f32 %v3357_v9, %v3352_v47 }
 0xa21   : > { %v3375_v55 = vadd.f32 %v3367_v31, %v3362_v46  ;;  %v3376_v10 = vadd.f32 %v3368_v38, %v3363_v48  ;;  %v3377_v20 = vadd.f32 %v3369_v39, %v3364_v0  ;;  %v3378_v63 = vadd.f32 %v3370_v40, %v3365_v53 }
 0xa23   : > { %3394 = vmatpush.xpose.msrb.mxu0 %v3375_v55  ;;  %3414 = vmatpush.xpose.msrb.mxu1 %v3376_v10 }
 0xa24   : > { %3434 = vmatpush.xpose.msrb.mxu2 %v3377_v20  ;;  %3454 = vmatpush.xpose.msrb.mxu3 %v3378_v63 }
 0xa26   : > { %3395 = vmatmul.f32.vlgmr.msrb.gmra.mxu0 %v3375_v55  ;;  %3415 = vmatmul.f32.vlgmr.msrb.gmra.mxu1 %v3376_v10 }
 0xa27   : > { %3435 = vmatmul.f32.vlgmr.msrb.gmra.mxu2 %v3377_v20  ;;  %3455 = vmatmul.f32.vlgmr.msrb.gmra.mxu3 %v3378_v63 }
 0xaa3   : > { %v3396_v22 = vpop.f32.mrf.mxu0  ;;  %v3416_v56 = vpop.f32.mrf.mxu1 }
 0xaa4   : > { %v3417_v60 = vadd.f32 %v3416_v56, %v3396_v22 }
 0xaaa   : > { %v3436_v59 = vpop.f32.mrf.mxu2  ;;  %v3456_v2 = vpop.f32.mrf.mxu3 }
 0xaab   : > { %v3437_v1 = vadd.f32 %v3436_v59, %v3417_v60 }
 0xaad   : > { %v3457_v3 = vadd.f32 %v3456_v2, %v3437_v1 }
 0xaaf   : > { %3459 = vst.msk [vmem:[%s626_s27] sm:$0xff] %vm943_vm7, %v3457_v3 }
 0xab0 PF: > { %s29_s21 = sadd.s32 1, %s3890_s21  }
 0xab1   : > { %p26_p7 = scmp.ge.s32.totalorder %s29_s21, 4  }
 0xab3   :  { %28 = sbr.rel (!%p26_p7) target bundleno = 4 (0x4), region = 143 }
 0xab8   :  { %3493 = vsyncpa [#allocation3], 1 }
 0xab9   :  { %3495 = vsyncpa [#allocation3 + $0x1], 1 }
 0xaba   :  { %3496 = vsyncpa [#allocation5], 1 }

</bundles_post_ra>
